<compile_context>
chip_gen: v7x
topology: tpu7x:2x2x1
jax: 0.10.0
libtpu: 0.0.40
codegen_flags: <defaults>
</compile_context>

<pallas_src>
import math
import functools

import jax
import jax.numpy as jnp
from jax import lax
from jax.experimental import pallas as pl
from jax.experimental.pallas import tpu as pltpu


# ----------------------------- config ---------------------------------------
class Config:
    enlarge_gap = True
    enlarge_seq_channel = 32     # d_model of TransformerPositionEncoding
    max_enlarge_seq_len = 64
    single_channel = 32          # transformer embed dim
    ffn_embed_dim = 64
    attention_heads = 4
    layers = 2
    dropout = 0.0                # eval semantics: dropout is a no-op


# row layout of the per-layer slice of the packed vector slab (width C each)
ROWS_PER_LAYER = 11
(R_LN1G, R_LN1B, R_BQ, R_BK, R_BV,
 R_BIASK, R_BIASV, R_BO, R_LN2G, R_LN2B, R_FC2B) = range(ROWS_PER_LAYER)


# ----------------------------- fused Pallas kernel ---------------------------
def _encoder_kernel(emb_ref, mask_col_ref, mask_row_ref,
                    w_in_ref, w_main_ref, w_fc2_ref, vec_ref,
                    o_ref, *, n_layers, H, d, F, eps):
    """Whole SingleEncoder forward for one sequence ([L, C] slab), fully in VMEM."""
    C = H * d
    NEG = jnp.float32(-1e30)          # masked_fill(-inf) stand-in; exp underflows to 0

    mask_col = mask_col_ref[0]        # [L, 1]  1.0 => real token
    key_pad = mask_row_ref[0] <= 0.0  # [1, L]  True => padded key (blocked)

    def vrow(r):                      # static sublane slice of the vector slab (free)
        return vec_ref[r:r + 1, :]    # [1, C]

    def layer_norm(y, g, b):          # ESM1LayerNorm (eps = 1e-12)
        mu = jnp.mean(y, axis=-1, keepdims=True)
        yc = y - mu
        var = jnp.mean(yc * yc, axis=-1, keepdims=True)
        return yc * lax.rsqrt(var + eps) * g + b

    # input embedding:  x = emb @ W_in + b_in
    x = jnp.dot(emb_ref[0], w_in_ref[...],
                preferred_element_type=jnp.float32) + vrow(0)              # [L, C]

    # NOTE: small static trip counts (layers=2, heads=4) -> Python loops are fine here.
    for li in range(n_layers):
        base = 1 + li * ROWS_PER_LAYER

        # ---------------- self-attention block (pre-norm) ----------------
        residual = x
        xn = layer_norm(x, vrow(base + R_LN1G), vrow(base + R_LN1B))       # [L, C]

        acc = jnp.zeros_like(x)                                            # [L, C]
        for h in range(H):
            c0 = h * d
            # Per-head Q/K/V via static column slices of the *weight Ref* (no relayout
            # of live values). Q scaling already folded into weights/bias at pack time.
            qh = jnp.dot(xn, w_main_ref[li, 0:C, c0:c0 + d],
                         preferred_element_type=jnp.float32) \
                 + vec_ref[base + R_BQ:base + R_BQ + 1, c0:c0 + d]         # [L, d]
            kh = jnp.dot(xn, w_main_ref[li, 0:C, C + c0:C + c0 + d],
                         preferred_element_type=jnp.float32) \
                 + vec_ref[base + R_BK:base + R_BK + 1, c0:c0 + d]         # [L, d]
            vh = jnp.dot(xn, w_main_ref[li, 0:C, 2 * C + c0:2 * C + c0 + d],
                         preferred_element_type=jnp.float32) \
                 + vec_ref[base + R_BV:base + R_BV + 1, c0:c0 + d]         # [L, d]
            bkh = vec_ref[base + R_BIASK:base + R_BIASK + 1, c0:c0 + d]    # [1, d]
            bvh = vec_ref[base + R_BIASV:base + R_BIASV + 1, c0:c0 + d]    # [1, d]

            # scores vs. same-sequence keys; padded keys -> -1e30
            s = lax.dot_general(qh, kh, (((1,), (1,)), ((), ())),
                                preferred_element_type=jnp.float32)        # [L, L]
            s = jnp.where(key_pad, NEG, s)
            # learned bias-K key (add_bias_kv=True): one extra, never-masked column,
            # folded analytically into the softmax (guarantees a finite row max).
            sb = lax.dot_general(qh, bkh, (((1,), (1,)), ((), ())),
                                 preferred_element_type=jnp.float32)       # [L, 1]

            m = jnp.maximum(jnp.max(s, axis=-1, keepdims=True), sb)
            p = jnp.exp(s - m)                                             # [L, L]
            pb = jnp.exp(sb - m)                                           # [L, 1]
            inv = pl.reciprocal(jnp.sum(p, axis=-1, keepdims=True) + pb,
                                approx=True)                               # EUP slot
            ctx = (jnp.dot(p, vh, preferred_element_type=jnp.float32)
                   + pb * bvh) * inv                                       # [L, d]

            # accumulate directly through the matching rows of Wo (sublane Ref slice):
            # avoids the H-way lane concat of the previous version.
            acc = acc + jnp.dot(ctx, w_main_ref[li, c0:c0 + d, 3 * C:4 * C],
                                preferred_element_type=jnp.float32)        # [L, C]

        x = residual + acc + vrow(base + R_BO)

        # ---------------- feed-forward block ----------------
        residual = x
        xn = layer_norm(x, vrow(base + R_LN2G), vrow(base + R_LN2B))
        h1 = jnp.dot(xn, w_main_ref[li, 0:C, 4 * C:4 * C + F],
                     preferred_element_type=jnp.float32) \
             + w_main_ref[li, C:C + 1, 4 * C:4 * C + F]                    # [L, F]
        # exact erf-GELU, matching ESM's gelu()
        h1 = 0.5 * h1 * (1.0 + lax.erf(h1 * (1.0 / math.sqrt(2.0))))
        ffn = jnp.dot(h1, w_fc2_ref[li],
                      preferred_element_type=jnp.float32) + vrow(base + R_FC2B)
        x = residual + ffn

    # final `x = x * mask[..., None]`
    o_ref[0] = (x * mask_col).astype(o_ref.dtype)


# ----------------------------- parameters -----------------------------------
def sinusoidal_pe(max_len, d_model):
    pos = jnp.arange(max_len, dtype=jnp.float32)[:, None]
    div = jnp.exp(jnp.arange(0, d_model, 2, dtype=jnp.float32)
                  * (-math.log(10000.0) / d_model))
    pe = jnp.zeros((max_len, d_model), jnp.float32)
    pe = pe.at[:, 0::2].set(jnp.sin(pos * div))
    pe = pe.at[:, 1::2].set(jnp.cos(pos * div))
    return pe


def init_params(key, cfg):
    def dense(k, fan_in, fan_out):
        kw, kb = jax.random.split(k)
        w = jax.random.normal(kw, (fan_in, fan_out), jnp.float32) * 0.02
        b = jax.random.normal(kb, (fan_out,), jnp.float32) * 0.02
        return w, b

    C = cfg.single_channel
    keys = jax.random.split(key, 1 + cfg.layers)
    params = {
        "pe_table": sinusoidal_pe(cfg.max_enlarge_seq_len, cfg.enlarge_seq_channel),
    }
    params["input_emb_w"], params["input_emb_b"] = dense(
        keys[0], cfg.enlarge_seq_channel, C)

    layers = []
    for li in range(cfg.layers):
        lk = jax.random.split(keys[1 + li], 8)
        layer = {
            "ln1_g": jnp.ones((C,), jnp.float32), "ln1_b": jnp.zeros((C,), jnp.float32),
            "ln2_g": jnp.ones((C,), jnp.float32), "ln2_b": jnp.zeros((C,), jnp.float32),
        }
        layer["wq"], layer["bq"] = dense(lk[0], C, C)
        layer["wk"], layer["bk"] = dense(lk[1], C, C)
        layer["wv"], layer["bv"] = dense(lk[2], C, C)
        layer["wo"], layer["bo"] = dense(lk[3], C, C)
        layer["bias_k"] = jax.random.normal(lk[4], (C,), jnp.float32) * 0.02
        layer["bias_v"] = jax.random.normal(lk[5], (C,), jnp.float32) * 0.02
        layer["fc1_w"], layer["fc1_b"] = dense(lk[6], C, cfg.ffn_embed_dim)
        layer["fc2_w"], layer["fc2_b"] = dense(lk[7], cfg.ffn_embed_dim, C)
        layers.append(layer)
    params["layers"] = layers
    return params


def pack_params(params, cfg):
    """Pack all weights into 4 slabs; fuse QKV|Wo|FC1, fold 1/sqrt(d) into Q and
    stash FC1's bias as one extra sublane row of the main slab."""
    C = cfg.single_channel
    F = cfg.ffn_embed_dim
    H = cfg.attention_heads
    d = C // H
    scaling = 1.0 / math.sqrt(d)

    w_main_layers = []
    for l in params["layers"]:
        wqkv = jnp.concatenate([l["wq"] * scaling, l["wk"], l["wv"]], axis=1)   # [C, 3C]
        big = jnp.concatenate([wqkv, l["wo"], l["fc1_w"]], axis=1)              # [C, 4C+F]
        extra = jnp.zeros((1, 4 * C + F), jnp.float32)
        extra = extra.at[0, 4 * C:4 * C + F].set(l["fc1_b"])                    # fc1 bias row
        w_main_layers.append(jnp.concatenate([big, extra], axis=0))             # [C+1, 4C+F]
    w_main = jnp.stack(w_main_layers, axis=0)                                   # [NL, C+1, 4C+F]

    w_fc2 = jnp.stack([l["fc2_w"] for l in params["layers"]], axis=0)           # [NL, F, C]

    rows = [params["input_emb_b"]]                                              # global row 0
    for l in params["layers"]:
        rows += [l["ln1_g"], l["ln1_b"],
                 l["bq"] * scaling, l["bk"], l["bv"],
                 l["bias_k"], l["bias_v"], l["bo"],
                 l["ln2_g"], l["ln2_b"], l["fc2_b"]]
    vec_c = jnp.stack(rows, axis=0)                                             # [1+11*NL, C]

    return {"pe_table": params["pe_table"],
            "w_in": params["input_emb_w"],                                      # [Cin, C]
            "w_main": w_main, "w_fc2": w_fc2, "vec_c": vec_c}


# ----------------------------- forward pass ----------------------------------
def single_encoder_forward(packed, cfg, single, mask):
    single_res_rel = single["single_res_rel"]            # [B, L] int positions
    B, L = single_res_rel.shape
    C = cfg.single_channel
    H = cfg.attention_heads
    d = C // H
    F = cfg.ffn_embed_dim
    Cin = cfg.enlarge_seq_channel

    # TransformerPositionEncoding(..., index_select=True): row gather from PE table (glue)
    emb = jnp.take(packed["pe_table"], single_res_rel, axis=0)          # [B, L, Cin]
    maskf = mask.astype(jnp.float32)
    mask_col = maskf.reshape(B, L, 1)                                   # per-query mask
    mask_row = maskf.reshape(B, 1, L)                                   # per-key mask

    kernel = functools.partial(_encoder_kernel,
                               n_layers=cfg.layers, H=H, d=d, F=F, eps=1e-12)

    grid_spec = pltpu.PrefetchScalarGridSpec(
        num_scalar_prefetch=0,
        grid=(B,),
        in_specs=[
            pl.BlockSpec((1, L, Cin), lambda b: (b, 0, 0)),             # emb (per seq)
            pl.BlockSpec((1, L, 1), lambda b: (b, 0, 0)),               # mask_col
            pl.BlockSpec((1, 1, L), lambda b: (b, 0, 0)),               # mask_row
            pl.BlockSpec(packed["w_in"].shape, lambda b: (0, 0)),       # weights: resident
            pl.BlockSpec(packed["w_main"].shape, lambda b: (0, 0, 0)),
            pl.BlockSpec(packed["w_fc2"].shape, lambda b: (0, 0, 0)),
            pl.BlockSpec(packed["vec_c"].shape, lambda b: (0, 0)),
        ],
        out_specs=pl.BlockSpec((1, L, C), lambda b: (b, 0, 0)),
    )

    out = pl.pallas_call(
        kernel,
        out_shape=jax.ShapeDtypeStruct((B, L, C), jnp.float32),
        grid_spec=grid_spec,
        compiler_params=pltpu.CompilerParams(
            dimension_semantics=("parallel",),      # shards batch across TCs on v7x
            vmem_limit_bytes=32 * 1024 * 1024,
        ),
    )(emb, mask_col, mask_row,
      packed["w_in"], packed["w_main"], packed["w_fc2"], packed["vec_c"])
    return out


# ----------------------------- main ------------------------------------------
if __name__ == "__main__":
    cfg = Config()
    key = jax.random.PRNGKey(0)
    kp, kd = jax.random.split(key)
    params = init_params(kp, cfg)
    packed = pack_params(params, cfg)

    B, L = 2, 8
    single_res_rel = jax.random.randint(kd, (B, L), 0, cfg.max_enlarge_seq_len,
                                        dtype=jnp.int32)
    mask = jnp.ones((B, L), jnp.float32).at[1, -2:].set(0.0)  # batch 1: 2 padded positions
    single = {"single_res_rel": single_res_rel}

    fwd = jax.jit(lambda p, s, m: single_encoder_forward(p, cfg, s, m))
    out = fwd(packed, single, mask)
    out = jax.block_until_ready(out)

    assert out.shape == (B, L, cfg.single_channel)
    assert bool(jnp.all(jnp.isfinite(out)))
    assert bool(jnp.all(out[1, -2:] == 0.0))   # padded rows zeroed by final mask multiply
    print("KERNEL_OK")
</pallas_src>

<mosaic_0001>
module attributes {stable_mosaic.version = 11 : i64} {
  func.func @_encoder_kernel(%arg0: i32, %arg1: memref<1x8x32xf32, #tpu.memory_space<vmem>>, %arg2: memref<1x8x1xf32, #tpu.memory_space<vmem>>, %arg3: memref<1x1x8xf32, #tpu.memory_space<vmem>>, %arg4: memref<32x32xf32, #tpu.memory_space<vmem>>, %arg5: memref<2x33x192xf32, #tpu.memory_space<vmem>>, %arg6: memref<2x64x32xf32, #tpu.memory_space<vmem>>, %arg7: memref<23x32xf32, #tpu.memory_space<vmem>>, %arg8: memref<1x8x32xf32, #tpu.memory_space<vmem>>) attributes {dimension_semantics = [#tpu.dimension_semantics<parallel>], iteration_bounds = array<i64: 2>, scalar_prefetch = 0 : i64, scratch_operands = 0 : i64, tpu.core_type = #tpu.core_type<tc>, window_params = [{transform_indices = @transform_0, window_bounds = array<i64: 1, 8, 32>}, {transform_indices = @transform_1, window_bounds = array<i64: 1, 8, 1>}, {transform_indices = @transform_2, window_bounds = array<i64: 1, 1, 8>}, {pipeline_mode = #tpu.pipeline_mode<synchronous>, transform_indices = @transform_3, window_bounds = array<i64: 32, 32>}, {pipeline_mode = #tpu.pipeline_mode<synchronous>, transform_indices = @transform_4, window_bounds = array<i64: 2, 33, 192>}, {pipeline_mode = #tpu.pipeline_mode<synchronous>, transform_indices = @transform_5, window_bounds = array<i64: 2, 64, 32>}, {pipeline_mode = #tpu.pipeline_mode<synchronous>, transform_indices = @transform_6, window_bounds = array<i64: 23, 32>}, {transform_indices = @transform_7, window_bounds = array<i64: 1, 8, 32>}]} {
    %c0 = arith.constant 0 : index
    %c0_0 = arith.constant 0 : index
    %c0_1 = arith.constant 0 : index
    %0 = vector.load %arg2[%c0, %c0_0, %c0_1] : memref<1x8x1xf32, #tpu.memory_space<vmem>>, vector<1x8x1xf32>
    %1 = vector.shape_cast %0 : vector<1x8x1xf32> to vector<8x1xf32>
    %c0_2 = arith.constant 0 : index
    %c0_3 = arith.constant 0 : index
    %c0_4 = arith.constant 0 : index
    %2 = vector.load %arg3[%c0_2, %c0_3, %c0_4] : memref<1x1x8xf32, #tpu.memory_space<vmem>>, vector<1x1x8xf32>
    %3 = vector.shape_cast %2 : vector<1x1x8xf32> to vector<1x8xf32>
    %cst = arith.constant 0.000000e+00 : f32
    %4 = vector.broadcast %cst : f32 to vector<1x8xf32>
    %5 = arith.cmpf ole, %3, %4 : vector<1x8xf32>
    %c0_5 = arith.constant 0 : index
    %c0_6 = arith.constant 0 : index
    %c0_7 = arith.constant 0 : index
    %6 = vector.load %arg1[%c0_5, %c0_6, %c0_7] : memref<1x8x32xf32, #tpu.memory_space<vmem>>, vector<1x8x32xf32>
    %7 = vector.shape_cast %6 : vector<1x8x32xf32> to vector<8x32xf32>
    %c0_8 = arith.constant 0 : index
    %c0_9 = arith.constant 0 : index
    %8 = vector.load %arg4[%c0_8, %c0_9] : memref<32x32xf32, #tpu.memory_space<vmem>>, vector<32x32xf32>
    %cst_10 = arith.constant dense<0.000000e+00> : vector<8x32xf32>
    %9 = tpu.matmul %7, %8, %cst_10 {dimension_numbers = #tpu.dot_dimension_numbers<[1], [0], [0], [1], [0, 0, 1, 1], [], []>} : vector<8x32xf32>, vector<32x32xf32>, vector<8x32xf32> -> vector<8x32xf32>
    %c0_11 = arith.constant 0 : index
    %c0_12 = arith.constant 0 : index
    %10 = vector.load %arg7[%c0_11, %c0_12] : memref<23x32xf32, #tpu.memory_space<vmem>>, vector<1x32xf32>
    %11 = vector.broadcast %10 : vector<1x32xf32> to vector<8x32xf32>
    %12 = arith.addf %9, %11 : vector<8x32xf32>
    %c1 = arith.constant 1 : index
    %c0_13 = arith.constant 0 : index
    %13 = vector.load %arg7[%c1, %c0_13] : memref<23x32xf32, #tpu.memory_space<vmem>>, vector<1x32xf32>
    %c2 = arith.constant 2 : index
    %c0_14 = arith.constant 0 : index
    %14 = vector.load %arg7[%c2, %c0_14] : memref<23x32xf32, #tpu.memory_space<vmem>>, vector<1x32xf32>
    %cst_15 = arith.constant dense<0.000000e+00> : vector<8xf32>
    %15 = vector.multi_reduction <add>, %12, %cst_15 [1] : vector<8x32xf32> to vector<8xf32>
    %16 = vector.shape_cast %15 : vector<8xf32> to vector<8x1xf32>
    %cst_16 = arith.constant 3.200000e+01 : f32
    %17 = vector.broadcast %cst_16 : f32 to vector<8x1xf32>
    %18 = arith.divf %16, %17 : vector<8x1xf32>
    %19 = vector.broadcast %18 : vector<8x1xf32> to vector<8x32xf32>
    %20 = arith.subf %12, %19 : vector<8x32xf32>
    %21 = arith.mulf %20, %20 : vector<8x32xf32>
    %cst_17 = arith.constant dense<0.000000e+00> : vector<8xf32>
    %22 = vector.multi_reduction <add>, %21, %cst_17 [1] : vector<8x32xf32> to vector<8xf32>
    %23 = vector.shape_cast %22 : vector<8xf32> to vector<8x1xf32>
    %cst_18 = arith.constant 3.200000e+01 : f32
    %24 = vector.broadcast %cst_18 : f32 to vector<8x1xf32>
    %25 = arith.divf %23, %24 : vector<8x1xf32>
    %cst_19 = arith.constant 9.99999996E-13 : f32
    %26 = vector.broadcast %cst_19 : f32 to vector<8x1xf32>
    %27 = arith.addf %25, %26 : vector<8x1xf32>
    %28 = math.rsqrt %27 : vector<8x1xf32>
    %29 = vector.broadcast %28 : vector<8x1xf32> to vector<8x32xf32>
    %30 = arith.mulf %20, %29 : vector<8x32xf32>
    %31 = vector.broadcast %13 : vector<1x32xf32> to vector<8x32xf32>
    %32 = arith.mulf %30, %31 : vector<8x32xf32>
    %33 = vector.broadcast %14 : vector<1x32xf32> to vector<8x32xf32>
    %34 = arith.addf %32, %33 : vector<8x32xf32>
    %cst_20 = arith.constant 0.000000e+00 : f32
    %35 = vector.broadcast %cst_20 : f32 to vector<8x32xf32>
    %c0_21 = arith.constant 0 : index
    %c0_22 = arith.constant 0 : index
    %c0_23 = arith.constant 0 : index
    %36 = vector.load %arg5[%c0_21, %c0_22, %c0_23] : memref<2x33x192xf32, #tpu.memory_space<vmem>>, vector<1x32x8xf32>
    %37 = vector.shape_cast %36 : vector<1x32x8xf32> to vector<32x8xf32>
    %cst_24 = arith.constant dense<0.000000e+00> : vector<8x8xf32>
    %38 = tpu.matmul %34, %37, %cst_24 {dimension_numbers = #tpu.dot_dimension_numbers<[1], [0], [0], [1], [0, 0, 1, 1], [], []>} : vector<8x32xf32>, vector<32x8xf32>, vector<8x8xf32> -> vector<8x8xf32>
    %c3 = arith.constant 3 : index
    %c0_25 = arith.constant 0 : index
    %39 = vector.load %arg7[%c3, %c0_25] : memref<23x32xf32, #tpu.memory_space<vmem>>, vector<1x8xf32>
    %40 = vector.broadcast %39 : vector<1x8xf32> to vector<8x8xf32>
    %41 = arith.addf %38, %40 : vector<8x8xf32>
    %c0_26 = arith.constant 0 : index
    %c0_27 = arith.constant 0 : index
    %c32 = arith.constant 32 : index
    %42 = vector.load %arg5[%c0_26, %c0_27, %c32] : memref<2x33x192xf32, #tpu.memory_space<vmem>>, vector<1x32x8xf32>
    %43 = vector.shape_cast %42 : vector<1x32x8xf32> to vector<32x8xf32>
    %cst_28 = arith.constant dense<0.000000e+00> : vector<8x8xf32>
    %44 = tpu.matmul %34, %43, %cst_28 {dimension_numbers = #tpu.dot_dimension_numbers<[1], [0], [0], [1], [0, 0, 1, 1], [], []>} : vector<8x32xf32>, vector<32x8xf32>, vector<8x8xf32> -> vector<8x8xf32>
    %c4 = arith.constant 4 : index
    %c0_29 = arith.constant 0 : index
    %45 = vector.load %arg7[%c4, %c0_29] : memref<23x32xf32, #tpu.memory_space<vmem>>, vector<1x8xf32>
    %46 = vector.broadcast %45 : vector<1x8xf32> to vector<8x8xf32>
    %47 = arith.addf %44, %46 : vector<8x8xf32>
    %c0_30 = arith.constant 0 : index
    %c0_31 = arith.constant 0 : index
    %c64 = arith.constant 64 : index
    %48 = vector.load %arg5[%c0_30, %c0_31, %c64] : memref<2x33x192xf32, #tpu.memory_space<vmem>>, vector<1x32x8xf32>
    %49 = vector.shape_cast %48 : vector<1x32x8xf32> to vector<32x8xf32>
    %cst_32 = arith.constant dense<0.000000e+00> : vector<8x8xf32>
    %50 = tpu.matmul %34, %49, %cst_32 {dimension_numbers = #tpu.dot_dimension_numbers<[1], [0], [0], [1], [0, 0, 1, 1], [], []>} : vector<8x32xf32>, vector<32x8xf32>, vector<8x8xf32> -> vector<8x8xf32>
    %c5 = arith.constant 5 : index
    %c0_33 = arith.constant 0 : index
    %51 = vector.load %arg7[%c5, %c0_33] : memref<23x32xf32, #tpu.memory_space<vmem>>, vector<1x8xf32>
    %52 = vector.broadcast %51 : vector<1x8xf32> to vector<8x8xf32>
    %53 = arith.addf %50, %52 : vector<8x8xf32>
    %c6 = arith.constant 6 : index
    %c0_34 = arith.constant 0 : index
    %54 = vector.load %arg7[%c6, %c0_34] : memref<23x32xf32, #tpu.memory_space<vmem>>, vector<1x8xf32>
    %c7 = arith.constant 7 : index
    %c0_35 = arith.constant 0 : index
    %55 = vector.load %arg7[%c7, %c0_35] : memref<23x32xf32, #tpu.memory_space<vmem>>, vector<1x8xf32>
    %cst_36 = arith.constant dense<0.000000e+00> : vector<8x8xf32>
    %56 = tpu.matmul %41, %47, %cst_36 {dimension_numbers = #tpu.dot_dimension_numbers<[1], [1], [0], [0], [0, 0, 1, 0], [], []>} : vector<8x8xf32>, vector<8x8xf32>, vector<8x8xf32> -> vector<8x8xf32>
    %cst_37 = arith.constant -1.000000e+30 : f32
    %57 = vector.shape_cast %5 : vector<1x8xi1> to vector<1x8xi1>
    %58 = vector.broadcast %57 : vector<1x8xi1> to vector<8x8xi1>
    %59 = vector.broadcast %cst_37 : f32 to vector<8x8xf32>
    %60 = arith.select %58, %59, %56 : vector<8x8xi1>, vector<8x8xf32>
    %cst_38 = arith.constant dense<0.000000e+00> : vector<8x1xf32>
    %61 = tpu.matmul %41, %54, %cst_38 {dimension_numbers = #tpu.dot_dimension_numbers<[1], [1], [0], [0], [0, 0, 1, 0], [], []>} : vector<8x8xf32>, vector<1x8xf32>, vector<8x1xf32> -> vector<8x1xf32>
    %cst_39 = arith.constant dense<0xFF800000> : vector<8xf32>
    %62 = vector.multi_reduction <maximumf>, %60, %cst_39 [1] : vector<8x8xf32> to vector<8xf32>
    %63 = vector.shape_cast %62 : vector<8xf32> to vector<8x1xf32>
    %64 = arith.maximumf %63, %61 : vector<8x1xf32>
    %65 = vector.broadcast %64 : vector<8x1xf32> to vector<8x8xf32>
    %66 = arith.subf %60, %65 : vector<8x8xf32>
    %67 = math.exp %66 : vector<8x8xf32>
    %68 = arith.subf %61, %64 : vector<8x1xf32>
    %69 = math.exp %68 : vector<8x1xf32>
    %cst_40 = arith.constant dense<0.000000e+00> : vector<8xf32>
    %70 = vector.multi_reduction <add>, %67, %cst_40 [1] : vector<8x8xf32> to vector<8xf32>
    %71 = vector.shape_cast %70 : vector<8xf32> to vector<8x1xf32>
    %72 = arith.addf %71, %69 : vector<8x1xf32>
    %73 = tpu.reciprocal %72 {approx = true} : vector<8x1xf32> -> vector<8x1xf32>
    %cst_41 = arith.constant dense<0.000000e+00> : vector<8x8xf32>
    %74 = tpu.matmul %67, %53, %cst_41 {dimension_numbers = #tpu.dot_dimension_numbers<[1], [0], [0], [1], [0, 0, 1, 1], [], []>} : vector<8x8xf32>, vector<8x8xf32>, vector<8x8xf32> -> vector<8x8xf32>
    %75 = vector.broadcast %69 : vector<8x1xf32> to vector<8x8xf32>
    %76 = vector.broadcast %55 : vector<1x8xf32> to vector<8x8xf32>
    %77 = arith.mulf %75, %76 : vector<8x8xf32>
    %78 = arith.addf %74, %77 : vector<8x8xf32>
    %79 = vector.broadcast %73 : vector<8x1xf32> to vector<8x8xf32>
    %80 = arith.mulf %78, %79 : vector<8x8xf32>
    %c0_42 = arith.constant 0 : index
    %c0_43 = arith.constant 0 : index
    %c96 = arith.constant 96 : index
    %81 = vector.load %arg5[%c0_42, %c0_43, %c96] : memref<2x33x192xf32, #tpu.memory_space<vmem>>, vector<1x8x32xf32>
    %82 = vector.shape_cast %81 : vector<1x8x32xf32> to vector<8x32xf32>
    %cst_44 = arith.constant dense<0.000000e+00> : vector<8x32xf32>
    %83 = tpu.matmul %80, %82, %cst_44 {dimension_numbers = #tpu.dot_dimension_numbers<[1], [0], [0], [1], [0, 0, 1, 1], [], []>} : vector<8x8xf32>, vector<8x32xf32>, vector<8x32xf32> -> vector<8x32xf32>
    %84 = arith.addf %35, %83 : vector<8x32xf32>
    %c0_45 = arith.constant 0 : index
    %c0_46 = arith.constant 0 : index
    %c8 = arith.constant 8 : index
    %85 = vector.load %arg5[%c0_45, %c0_46, %c8] : memref<2x33x192xf32, #tpu.memory_space<vmem>>, vector<1x32x8xf32>
    %86 = vector.shape_cast %85 : vector<1x32x8xf32> to vector<32x8xf32>
    %cst_47 = arith.constant dense<0.000000e+00> : vector<8x8xf32>
    %87 = tpu.matmul %34, %86, %cst_47 {dimension_numbers = #tpu.dot_dimension_numbers<[1], [0], [0], [1], [0, 0, 1, 1], [], []>} : vector<8x32xf32>, vector<32x8xf32>, vector<8x8xf32> -> vector<8x8xf32>
    %c3_48 = arith.constant 3 : index
    %c8_49 = arith.constant 8 : index
    %88 = vector.load %arg7[%c3_48, %c8_49] : memref<23x32xf32, #tpu.memory_space<vmem>>, vector<1x8xf32>
    %89 = vector.broadcast %88 : vector<1x8xf32> to vector<8x8xf32>
    %90 = arith.addf %87, %89 : vector<8x8xf32>
    %c0_50 = arith.constant 0 : index
    %c0_51 = arith.constant 0 : index
    %c40 = arith.constant 40 : index
    %91 = vector.load %arg5[%c0_50, %c0_51, %c40] : memref<2x33x192xf32, #tpu.memory_space<vmem>>, vector<1x32x8xf32>
    %92 = vector.shape_cast %91 : vector<1x32x8xf32> to vector<32x8xf32>
    %cst_52 = arith.constant dense<0.000000e+00> : vector<8x8xf32>
    %93 = tpu.matmul %34, %92, %cst_52 {dimension_numbers = #tpu.dot_dimension_numbers<[1], [0], [0], [1], [0, 0, 1, 1], [], []>} : vector<8x32xf32>, vector<32x8xf32>, vector<8x8xf32> -> vector<8x8xf32>
    %c4_53 = arith.constant 4 : index
    %c8_54 = arith.constant 8 : index
    %94 = vector.load %arg7[%c4_53, %c8_54] : memref<23x32xf32, #tpu.memory_space<vmem>>, vector<1x8xf32>
    %95 = vector.broadcast %94 : vector<1x8xf32> to vector<8x8xf32>
    %96 = arith.addf %93, %95 : vector<8x8xf32>
    %c0_55 = arith.constant 0 : index
    %c0_56 = arith.constant 0 : index
    %c72 = arith.constant 72 : index
    %97 = vector.load %arg5[%c0_55, %c0_56, %c72] : memref<2x33x192xf32, #tpu.memory_space<vmem>>, vector<1x32x8xf32>
    %98 = vector.shape_cast %97 : vector<1x32x8xf32> to vector<32x8xf32>
    %cst_57 = arith.constant dense<0.000000e+00> : vector<8x8xf32>
    %99 = tpu.matmul %34, %98, %cst_57 {dimension_numbers = #tpu.dot_dimension_numbers<[1], [0], [0], [1], [0, 0, 1, 1], [], []>} : vector<8x32xf32>, vector<32x8xf32>, vector<8x8xf32> -> vector<8x8xf32>
    %c5_58 = arith.constant 5 : index
    %c8_59 = arith.constant 8 : index
    %100 = vector.load %arg7[%c5_58, %c8_59] : memref<23x32xf32, #tpu.memory_space<vmem>>, vector<1x8xf32>
    %101 = vector.broadcast %100 : vector<1x8xf32> to vector<8x8xf32>
    %102 = arith.addf %99, %101 : vector<8x8xf32>
    %c6_60 = arith.constant 6 : index
    %c8_61 = arith.constant 8 : index
    %103 = vector.load %arg7[%c6_60, %c8_61] : memref<23x32xf32, #tpu.memory_space<vmem>>, vector<1x8xf32>
    %c7_62 = arith.constant 7 : index
    %c8_63 = arith.constant 8 : index
    %104 = vector.load %arg7[%c7_62, %c8_63] : memref<23x32xf32, #tpu.memory_space<vmem>>, vector<1x8xf32>
    %cst_64 = arith.constant dense<0.000000e+00> : vector<8x8xf32>
    %105 = tpu.matmul %90, %96, %cst_64 {dimension_numbers = #tpu.dot_dimension_numbers<[1], [1], [0], [0], [0, 0, 1, 0], [], []>} : vector<8x8xf32>, vector<8x8xf32>, vector<8x8xf32> -> vector<8x8xf32>
    %cst_65 = arith.constant -1.000000e+30 : f32
    %106 = vector.shape_cast %5 : vector<1x8xi1> to vector<1x8xi1>
    %107 = vector.broadcast %106 : vector<1x8xi1> to vector<8x8xi1>
    %108 = vector.broadcast %cst_65 : f32 to vector<8x8xf32>
    %109 = arith.select %107, %108, %105 : vector<8x8xi1>, vector<8x8xf32>
    %cst_66 = arith.constant dense<0.000000e+00> : vector<8x1xf32>
    %110 = tpu.matmul %90, %103, %cst_66 {dimension_numbers = #tpu.dot_dimension_numbers<[1], [1], [0], [0], [0, 0, 1, 0], [], []>} : vector<8x8xf32>, vector<1x8xf32>, vector<8x1xf32> -> vector<8x1xf32>
    %cst_67 = arith.constant dense<0xFF800000> : vector<8xf32>
    %111 = vector.multi_reduction <maximumf>, %109, %cst_67 [1] : vector<8x8xf32> to vector<8xf32>
    %112 = vector.shape_cast %111 : vector<8xf32> to vector<8x1xf32>
    %113 = arith.maximumf %112, %110 : vector<8x1xf32>
    %114 = vector.broadcast %113 : vector<8x1xf32> to vector<8x8xf32>
    %115 = arith.subf %109, %114 : vector<8x8xf32>
    %116 = math.exp %115 : vector<8x8xf32>
    %117 = arith.subf %110, %113 : vector<8x1xf32>
    %118 = math.exp %117 : vector<8x1xf32>
    %cst_68 = arith.constant dense<0.000000e+00> : vector<8xf32>
    %119 = vector.multi_reduction <add>, %116, %cst_68 [1] : vector<8x8xf32> to vector<8xf32>
    %120 = vector.shape_cast %119 : vector<8xf32> to vector<8x1xf32>
    %121 = arith.addf %120, %118 : vector<8x1xf32>
    %122 = tpu.reciprocal %121 {approx = true} : vector<8x1xf32> -> vector<8x1xf32>
    %cst_69 = arith.constant dense<0.000000e+00> : vector<8x8xf32>
    %123 = tpu.matmul %116, %102, %cst_69 {dimension_numbers = #tpu.dot_dimension_numbers<[1], [0], [0], [1], [0, 0, 1, 1], [], []>} : vector<8x8xf32>, vector<8x8xf32>, vector<8x8xf32> -> vector<8x8xf32>
    %124 = vector.broadcast %118 : vector<8x1xf32> to vector<8x8xf32>
    %125 = vector.broadcast %104 : vector<1x8xf32> to vector<8x8xf32>
    %126 = arith.mulf %124, %125 : vector<8x8xf32>
    %127 = arith.addf %123, %126 : vector<8x8xf32>
    %128 = vector.broadcast %122 : vector<8x1xf32> to vector<8x8xf32>
    %129 = arith.mulf %127, %128 : vector<8x8xf32>
    %c0_70 = arith.constant 0 : index
    %c8_71 = arith.constant 8 : index
    %c96_72 = arith.constant 96 : index
    %130 = vector.load %arg5[%c0_70, %c8_71, %c96_72] : memref<2x33x192xf32, #tpu.memory_space<vmem>>, vector<1x8x32xf32>
    %131 = vector.shape_cast %130 : vector<1x8x32xf32> to vector<8x32xf32>
    %cst_73 = arith.constant dense<0.000000e+00> : vector<8x32xf32>
    %132 = tpu.matmul %129, %131, %cst_73 {dimension_numbers = #tpu.dot_dimension_numbers<[1], [0], [0], [1], [0, 0, 1, 1], [], []>} : vector<8x8xf32>, vector<8x32xf32>, vector<8x32xf32> -> vector<8x32xf32>
    %133 = arith.addf %84, %132 : vector<8x32xf32>
    %c0_74 = arith.constant 0 : index
    %c0_75 = arith.constant 0 : index
    %c16 = arith.constant 16 : index
    %134 = vector.load %arg5[%c0_74, %c0_75, %c16] : memref<2x33x192xf32, #tpu.memory_space<vmem>>, vector<1x32x8xf32>
    %135 = vector.shape_cast %134 : vector<1x32x8xf32> to vector<32x8xf32>
    %cst_76 = arith.constant dense<0.000000e+00> : vector<8x8xf32>
    %136 = tpu.matmul %34, %135, %cst_76 {dimension_numbers = #tpu.dot_dimension_numbers<[1], [0], [0], [1], [0, 0, 1, 1], [], []>} : vector<8x32xf32>, vector<32x8xf32>, vector<8x8xf32> -> vector<8x8xf32>
    %c3_77 = arith.constant 3 : index
    %c16_78 = arith.constant 16 : index
    %137 = vector.load %arg7[%c3_77, %c16_78] : memref<23x32xf32, #tpu.memory_space<vmem>>, vector<1x8xf32>
    %138 = vector.broadcast %137 : vector<1x8xf32> to vector<8x8xf32>
    %139 = arith.addf %136, %138 : vector<8x8xf32>
    %c0_79 = arith.constant 0 : index
    %c0_80 = arith.constant 0 : index
    %c48 = arith.constant 48 : index
    %140 = vector.load %arg5[%c0_79, %c0_80, %c48] : memref<2x33x192xf32, #tpu.memory_space<vmem>>, vector<1x32x8xf32>
    %141 = vector.shape_cast %140 : vector<1x32x8xf32> to vector<32x8xf32>
    %cst_81 = arith.constant dense<0.000000e+00> : vector<8x8xf32>
    %142 = tpu.matmul %34, %141, %cst_81 {dimension_numbers = #tpu.dot_dimension_numbers<[1], [0], [0], [1], [0, 0, 1, 1], [], []>} : vector<8x32xf32>, vector<32x8xf32>, vector<8x8xf32> -> vector<8x8xf32>
    %c4_82 = arith.constant 4 : index
    %c16_83 = arith.constant 16 : index
    %143 = vector.load %arg7[%c4_82, %c16_83] : memref<23x32xf32, #tpu.memory_space<vmem>>, vector<1x8xf32>
    %144 = vector.broadcast %143 : vector<1x8xf32> to vector<8x8xf32>
    %145 = arith.addf %142, %144 : vector<8x8xf32>
    %c0_84 = arith.constant 0 : index
    %c0_85 = arith.constant 0 : index
    %c80 = arith.constant 80 : index
    %146 = vector.load %arg5[%c0_84, %c0_85, %c80] : memref<2x33x192xf32, #tpu.memory_space<vmem>>, vector<1x32x8xf32>
    %147 = vector.shape_cast %146 : vector<1x32x8xf32> to vector<32x8xf32>
    %cst_86 = arith.constant dense<0.000000e+00> : vector<8x8xf32>
    %148 = tpu.matmul %34, %147, %cst_86 {dimension_numbers = #tpu.dot_dimension_numbers<[1], [0], [0], [1], [0, 0, 1, 1], [], []>} : vector<8x32xf32>, vector<32x8xf32>, vector<8x8xf32> -> vector<8x8xf32>
    %c5_87 = arith.constant 5 : index
    %c16_88 = arith.constant 16 : index
    %149 = vector.load %arg7[%c5_87, %c16_88] : memref<23x32xf32, #tpu.memory_space<vmem>>, vector<1x8xf32>
    %150 = vector.broadcast %149 : vector<1x8xf32> to vector<8x8xf32>
    %151 = arith.addf %148, %150 : vector<8x8xf32>
    %c6_89 = arith.constant 6 : index
    %c16_90 = arith.constant 16 : index
    %152 = vector.load %arg7[%c6_89, %c16_90] : memref<23x32xf32, #tpu.memory_space<vmem>>, vector<1x8xf32>
    %c7_91 = arith.constant 7 : index
    %c16_92 = arith.constant 16 : index
    %153 = vector.load %arg7[%c7_91, %c16_92] : memref<23x32xf32, #tpu.memory_space<vmem>>, vector<1x8xf32>
    %cst_93 = arith.constant dense<0.000000e+00> : vector<8x8xf32>
    %154 = tpu.matmul %139, %145, %cst_93 {dimension_numbers = #tpu.dot_dimension_numbers<[1], [1], [0], [0], [0, 0, 1, 0], [], []>} : vector<8x8xf32>, vector<8x8xf32>, vector<8x8xf32> -> vector<8x8xf32>
    %cst_94 = arith.constant -1.000000e+30 : f32
    %155 = vector.shape_cast %5 : vector<1x8xi1> to vector<1x8xi1>
    %156 = vector.broadcast %155 : vector<1x8xi1> to vector<8x8xi1>
    %157 = vector.broadcast %cst_94 : f32 to vector<8x8xf32>
    %158 = arith.select %156, %157, %154 : vector<8x8xi1>, vector<8x8xf32>
    %cst_95 = arith.constant dense<0.000000e+00> : vector<8x1xf32>
    %159 = tpu.matmul %139, %152, %cst_95 {dimension_numbers = #tpu.dot_dimension_numbers<[1], [1], [0], [0], [0, 0, 1, 0], [], []>} : vector<8x8xf32>, vector<1x8xf32>, vector<8x1xf32> -> vector<8x1xf32>
    %cst_96 = arith.constant dense<0xFF800000> : vector<8xf32>
    %160 = vector.multi_reduction <maximumf>, %158, %cst_96 [1] : vector<8x8xf32> to vector<8xf32>
    %161 = vector.shape_cast %160 : vector<8xf32> to vector<8x1xf32>
    %162 = arith.maximumf %161, %159 : vector<8x1xf32>
    %163 = vector.broadcast %162 : vector<8x1xf32> to vector<8x8xf32>
    %164 = arith.subf %158, %163 : vector<8x8xf32>
    %165 = math.exp %164 : vector<8x8xf32>
    %166 = arith.subf %159, %162 : vector<8x1xf32>
    %167 = math.exp %166 : vector<8x1xf32>
    %cst_97 = arith.constant dense<0.000000e+00> : vector<8xf32>
    %168 = vector.multi_reduction <add>, %165, %cst_97 [1] : vector<8x8xf32> to vector<8xf32>
    %169 = vector.shape_cast %168 : vector<8xf32> to vector<8x1xf32>
    %170 = arith.addf %169, %167 : vector<8x1xf32>
    %171 = tpu.reciprocal %170 {approx = true} : vector<8x1xf32> -> vector<8x1xf32>
    %cst_98 = arith.constant dense<0.000000e+00> : vector<8x8xf32>
    %172 = tpu.matmul %165, %151, %cst_98 {dimension_numbers = #tpu.dot_dimension_numbers<[1], [0], [0], [1], [0, 0, 1, 1], [], []>} : vector<8x8xf32>, vector<8x8xf32>, vector<8x8xf32> -> vector<8x8xf32>
    %173 = vector.broadcast %167 : vector<8x1xf32> to vector<8x8xf32>
    %174 = vector.broadcast %153 : vector<1x8xf32> to vector<8x8xf32>
    %175 = arith.mulf %173, %174 : vector<8x8xf32>
    %176 = arith.addf %172, %175 : vector<8x8xf32>
    %177 = vector.broadcast %171 : vector<8x1xf32> to vector<8x8xf32>
    %178 = arith.mulf %176, %177 : vector<8x8xf32>
    %c0_99 = arith.constant 0 : index
    %c16_100 = arith.constant 16 : index
    %c96_101 = arith.constant 96 : index
    %179 = vector.load %arg5[%c0_99, %c16_100, %c96_101] : memref<2x33x192xf32, #tpu.memory_space<vmem>>, vector<1x8x32xf32>
    %180 = vector.shape_cast %179 : vector<1x8x32xf32> to vector<8x32xf32>
    %cst_102 = arith.constant dense<0.000000e+00> : vector<8x32xf32>
    %181 = tpu.matmul %178, %180, %cst_102 {dimension_numbers = #tpu.dot_dimension_numbers<[1], [0], [0], [1], [0, 0, 1, 1], [], []>} : vector<8x8xf32>, vector<8x32xf32>, vector<8x32xf32> -> vector<8x32xf32>
    %182 = arith.addf %133, %181 : vector<8x32xf32>
    %c0_103 = arith.constant 0 : index
    %c0_104 = arith.constant 0 : index
    %c24 = arith.constant 24 : index
    %183 = vector.load %arg5[%c0_103, %c0_104, %c24] : memref<2x33x192xf32, #tpu.memory_space<vmem>>, vector<1x32x8xf32>
    %184 = vector.shape_cast %183 : vector<1x32x8xf32> to vector<32x8xf32>
    %cst_105 = arith.constant dense<0.000000e+00> : vector<8x8xf32>
    %185 = tpu.matmul %34, %184, %cst_105 {dimension_numbers = #tpu.dot_dimension_numbers<[1], [0], [0], [1], [0, 0, 1, 1], [], []>} : vector<8x32xf32>, vector<32x8xf32>, vector<8x8xf32> -> vector<8x8xf32>
    %c3_106 = arith.constant 3 : index
    %c24_107 = arith.constant 24 : index
    %186 = vector.load %arg7[%c3_106, %c24_107] : memref<23x32xf32, #tpu.memory_space<vmem>>, vector<1x8xf32>
    %187 = vector.broadcast %186 : vector<1x8xf32> to vector<8x8xf32>
    %188 = arith.addf %185, %187 : vector<8x8xf32>
    %c0_108 = arith.constant 0 : index
    %c0_109 = arith.constant 0 : index
    %c56 = arith.constant 56 : index
    %189 = vector.load %arg5[%c0_108, %c0_109, %c56] : memref<2x33x192xf32, #tpu.memory_space<vmem>>, vector<1x32x8xf32>
    %190 = vector.shape_cast %189 : vector<1x32x8xf32> to vector<32x8xf32>
    %cst_110 = arith.constant dense<0.000000e+00> : vector<8x8xf32>
    %191 = tpu.matmul %34, %190, %cst_110 {dimension_numbers = #tpu.dot_dimension_numbers<[1], [0], [0], [1], [0, 0, 1, 1], [], []>} : vector<8x32xf32>, vector<32x8xf32>, vector<8x8xf32> -> vector<8x8xf32>
    %c4_111 = arith.constant 4 : index
    %c24_112 = arith.constant 24 : index
    %192 = vector.load %arg7[%c4_111, %c24_112] : memref<23x32xf32, #tpu.memory_space<vmem>>, vector<1x8xf32>
    %193 = vector.broadcast %192 : vector<1x8xf32> to vector<8x8xf32>
    %194 = arith.addf %191, %193 : vector<8x8xf32>
    %c0_113 = arith.constant 0 : index
    %c0_114 = arith.constant 0 : index
    %c88 = arith.constant 88 : index
    %195 = vector.load %arg5[%c0_113, %c0_114, %c88] : memref<2x33x192xf32, #tpu.memory_space<vmem>>, vector<1x32x8xf32>
    %196 = vector.shape_cast %195 : vector<1x32x8xf32> to vector<32x8xf32>
    %cst_115 = arith.constant dense<0.000000e+00> : vector<8x8xf32>
    %197 = tpu.matmul %34, %196, %cst_115 {dimension_numbers = #tpu.dot_dimension_numbers<[1], [0], [0], [1], [0, 0, 1, 1], [], []>} : vector<8x32xf32>, vector<32x8xf32>, vector<8x8xf32> -> vector<8x8xf32>
    %c5_116 = arith.constant 5 : index
    %c24_117 = arith.constant 24 : index
    %198 = vector.load %arg7[%c5_116, %c24_117] : memref<23x32xf32, #tpu.memory_space<vmem>>, vector<1x8xf32>
    %199 = vector.broadcast %198 : vector<1x8xf32> to vector<8x8xf32>
    %200 = arith.addf %197, %199 : vector<8x8xf32>
    %c6_118 = arith.constant 6 : index
    %c24_119 = arith.constant 24 : index
    %201 = vector.load %arg7[%c6_118, %c24_119] : memref<23x32xf32, #tpu.memory_space<vmem>>, vector<1x8xf32>
    %c7_120 = arith.constant 7 : index
    %c24_121 = arith.constant 24 : index
    %202 = vector.load %arg7[%c7_120, %c24_121] : memref<23x32xf32, #tpu.memory_space<vmem>>, vector<1x8xf32>
    %cst_122 = arith.constant dense<0.000000e+00> : vector<8x8xf32>
    %203 = tpu.matmul %188, %194, %cst_122 {dimension_numbers = #tpu.dot_dimension_numbers<[1], [1], [0], [0], [0, 0, 1, 0], [], []>} : vector<8x8xf32>, vector<8x8xf32>, vector<8x8xf32> -> vector<8x8xf32>
    %cst_123 = arith.constant -1.000000e+30 : f32
    %204 = vector.shape_cast %5 : vector<1x8xi1> to vector<1x8xi1>
    %205 = vector.broadcast %204 : vector<1x8xi1> to vector<8x8xi1>
    %206 = vector.broadcast %cst_123 : f32 to vector<8x8xf32>
    %207 = arith.select %205, %206, %203 : vector<8x8xi1>, vector<8x8xf32>
    %cst_124 = arith.constant dense<0.000000e+00> : vector<8x1xf32>
    %208 = tpu.matmul %188, %201, %cst_124 {dimension_numbers = #tpu.dot_dimension_numbers<[1], [1], [0], [0], [0, 0, 1, 0], [], []>} : vector<8x8xf32>, vector<1x8xf32>, vector<8x1xf32> -> vector<8x1xf32>
    %cst_125 = arith.constant dense<0xFF800000> : vector<8xf32>
    %209 = vector.multi_reduction <maximumf>, %207, %cst_125 [1] : vector<8x8xf32> to vector<8xf32>
    %210 = vector.shape_cast %209 : vector<8xf32> to vector<8x1xf32>
    %211 = arith.maximumf %210, %208 : vector<8x1xf32>
    %212 = vector.broadcast %211 : vector<8x1xf32> to vector<8x8xf32>
    %213 = arith.subf %207, %212 : vector<8x8xf32>
    %214 = math.exp %213 : vector<8x8xf32>
    %215 = arith.subf %208, %211 : vector<8x1xf32>
    %216 = math.exp %215 : vector<8x1xf32>
    %cst_126 = arith.constant dense<0.000000e+00> : vector<8xf32>
    %217 = vector.multi_reduction <add>, %214, %cst_126 [1] : vector<8x8xf32> to vector<8xf32>
    %218 = vector.shape_cast %217 : vector<8xf32> to vector<8x1xf32>
    %219 = arith.addf %218, %216 : vector<8x1xf32>
    %220 = tpu.reciprocal %219 {approx = true} : vector<8x1xf32> -> vector<8x1xf32>
    %cst_127 = arith.constant dense<0.000000e+00> : vector<8x8xf32>
    %221 = tpu.matmul %214, %200, %cst_127 {dimension_numbers = #tpu.dot_dimension_numbers<[1], [0], [0], [1], [0, 0, 1, 1], [], []>} : vector<8x8xf32>, vector<8x8xf32>, vector<8x8xf32> -> vector<8x8xf32>
    %222 = vector.broadcast %216 : vector<8x1xf32> to vector<8x8xf32>
    %223 = vector.broadcast %202 : vector<1x8xf32> to vector<8x8xf32>
    %224 = arith.mulf %222, %223 : vector<8x8xf32>
    %225 = arith.addf %221, %224 : vector<8x8xf32>
    %226 = vector.broadcast %220 : vector<8x1xf32> to vector<8x8xf32>
    %227 = arith.mulf %225, %226 : vector<8x8xf32>
    %c0_128 = arith.constant 0 : index
    %c24_129 = arith.constant 24 : index
    %c96_130 = arith.constant 96 : index
    %228 = vector.load %arg5[%c0_128, %c24_129, %c96_130] : memref<2x33x192xf32, #tpu.memory_space<vmem>>, vector<1x8x32xf32>
    %229 = vector.shape_cast %228 : vector<1x8x32xf32> to vector<8x32xf32>
    %cst_131 = arith.constant dense<0.000000e+00> : vector<8x32xf32>
    %230 = tpu.matmul %227, %229, %cst_131 {dimension_numbers = #tpu.dot_dimension_numbers<[1], [0], [0], [1], [0, 0, 1, 1], [], []>} : vector<8x8xf32>, vector<8x32xf32>, vector<8x32xf32> -> vector<8x32xf32>
    %231 = arith.addf %182, %230 : vector<8x32xf32>
    %232 = arith.addf %12, %231 : vector<8x32xf32>
    %c8_132 = arith.constant 8 : index
    %c0_133 = arith.constant 0 : index
    %233 = vector.load %arg7[%c8_132, %c0_133] : memref<23x32xf32, #tpu.memory_space<vmem>>, vector<1x32xf32>
    %234 = vector.broadcast %233 : vector<1x32xf32> to vector<8x32xf32>
    %235 = arith.addf %232, %234 : vector<8x32xf32>
    %c9 = arith.constant 9 : index
    %c0_134 = arith.constant 0 : index
    %236 = vector.load %arg7[%c9, %c0_134] : memref<23x32xf32, #tpu.memory_space<vmem>>, vector<1x32xf32>
    %c10 = arith.constant 10 : index
    %c0_135 = arith.constant 0 : index
    %237 = vector.load %arg7[%c10, %c0_135] : memref<23x32xf32, #tpu.memory_space<vmem>>, vector<1x32xf32>
    %cst_136 = arith.constant dense<0.000000e+00> : vector<8xf32>
    %238 = vector.multi_reduction <add>, %235, %cst_136 [1] : vector<8x32xf32> to vector<8xf32>
    %239 = vector.shape_cast %238 : vector<8xf32> to vector<8x1xf32>
    %cst_137 = arith.constant 3.200000e+01 : f32
    %240 = vector.broadcast %cst_137 : f32 to vector<8x1xf32>
    %241 = arith.divf %239, %240 : vector<8x1xf32>
    %242 = vector.broadcast %241 : vector<8x1xf32> to vector<8x32xf32>
    %243 = arith.subf %235, %242 : vector<8x32xf32>
    %244 = arith.mulf %243, %243 : vector<8x32xf32>
    %cst_138 = arith.constant dense<0.000000e+00> : vector<8xf32>
    %245 = vector.multi_reduction <add>, %244, %cst_138 [1] : vector<8x32xf32> to vector<8xf32>
    %246 = vector.shape_cast %245 : vector<8xf32> to vector<8x1xf32>
    %cst_139 = arith.constant 3.200000e+01 : f32
    %247 = vector.broadcast %cst_139 : f32 to vector<8x1xf32>
    %248 = arith.divf %246, %247 : vector<8x1xf32>
    %cst_140 = arith.constant 9.99999996E-13 : f32
    %249 = vector.broadcast %cst_140 : f32 to vector<8x1xf32>
    %250 = arith.addf %248, %249 : vector<8x1xf32>
    %251 = math.rsqrt %250 : vector<8x1xf32>
    %252 = vector.broadcast %251 : vector<8x1xf32> to vector<8x32xf32>
    %253 = arith.mulf %243, %252 : vector<8x32xf32>
    %254 = vector.broadcast %236 : vector<1x32xf32> to vector<8x32xf32>
    %255 = arith.mulf %253, %254 : vector<8x32xf32>
    %256 = vector.broadcast %237 : vector<1x32xf32> to vector<8x32xf32>
    %257 = arith.addf %255, %256 : vector<8x32xf32>
    %c0_141 = arith.constant 0 : index
    %c0_142 = arith.constant 0 : index
    %c128 = arith.constant 128 : index
    %258 = vector.load %arg5[%c0_141, %c0_142, %c128] : memref<2x33x192xf32, #tpu.memory_space<vmem>>, vector<1x32x64xf32>
    %259 = vector.shape_cast %258 : vector<1x32x64xf32> to vector<32x64xf32>
    %cst_143 = arith.constant dense<0.000000e+00> : vector<8x64xf32>
    %260 = tpu.matmul %257, %259, %cst_143 {dimension_numbers = #tpu.dot_dimension_numbers<[1], [0], [0], [1], [0, 0, 1, 1], [], []>} : vector<8x32xf32>, vector<32x64xf32>, vector<8x64xf32> -> vector<8x64xf32>
    %c0_144 = arith.constant 0 : index
    %c32_145 = arith.constant 32 : index
    %c128_146 = arith.constant 128 : index
    %261 = vector.load %arg5[%c0_144, %c32_145, %c128_146] : memref<2x33x192xf32, #tpu.memory_space<vmem>>, vector<1x1x64xf32>
    %262 = vector.shape_cast %261 : vector<1x1x64xf32> to vector<1x64xf32>
    %263 = vector.broadcast %262 : vector<1x64xf32> to vector<8x64xf32>
    %264 = arith.addf %260, %263 : vector<8x64xf32>
    %cst_147 = arith.constant 5.000000e-01 : f32
    %265 = vector.broadcast %cst_147 : f32 to vector<8x64xf32>
    %266 = arith.mulf %265, %264 : vector<8x64xf32>
    %cst_148 = arith.constant 0.707106769 : f32
    %267 = vector.broadcast %cst_148 : f32 to vector<8x64xf32>
    %268 = arith.mulf %264, %267 : vector<8x64xf32>
    %269 = math.erf %268 : vector<8x64xf32>
    %cst_149 = arith.constant 1.000000e+00 : f32
    %270 = vector.broadcast %cst_149 : f32 to vector<8x64xf32>
    %271 = arith.addf %270, %269 : vector<8x64xf32>
    %272 = arith.mulf %266, %271 : vector<8x64xf32>
    %c0_150 = arith.constant 0 : index
    %c0_151 = arith.constant 0 : index
    %c0_152 = arith.constant 0 : index
    %273 = vector.load %arg6[%c0_150, %c0_151, %c0_152] : memref<2x64x32xf32, #tpu.memory_space<vmem>>, vector<1x64x32xf32>
    %274 = vector.shape_cast %273 : vector<1x64x32xf32> to vector<64x32xf32>
    %cst_153 = arith.constant dense<0.000000e+00> : vector<8x32xf32>
    %275 = tpu.matmul %272, %274, %cst_153 {dimension_numbers = #tpu.dot_dimension_numbers<[1], [0], [0], [1], [0, 0, 1, 1], [], []>} : vector<8x64xf32>, vector<64x32xf32>, vector<8x32xf32> -> vector<8x32xf32>
    %c11 = arith.constant 11 : index
    %c0_154 = arith.constant 0 : index
    %276 = vector.load %arg7[%c11, %c0_154] : memref<23x32xf32, #tpu.memory_space<vmem>>, vector<1x32xf32>
    %277 = vector.broadcast %276 : vector<1x32xf32> to vector<8x32xf32>
    %278 = arith.addf %275, %277 : vector<8x32xf32>
    %279 = arith.addf %235, %278 : vector<8x32xf32>
    %c12 = arith.constant 12 : index
    %c0_155 = arith.constant 0 : index
    %280 = vector.load %arg7[%c12, %c0_155] : memref<23x32xf32, #tpu.memory_space<vmem>>, vector<1x32xf32>
    %c13 = arith.constant 13 : index
    %c0_156 = arith.constant 0 : index
    %281 = vector.load %arg7[%c13, %c0_156] : memref<23x32xf32, #tpu.memory_space<vmem>>, vector<1x32xf32>
    %cst_157 = arith.constant dense<0.000000e+00> : vector<8xf32>
    %282 = vector.multi_reduction <add>, %279, %cst_157 [1] : vector<8x32xf32> to vector<8xf32>
    %283 = vector.shape_cast %282 : vector<8xf32> to vector<8x1xf32>
    %cst_158 = arith.constant 3.200000e+01 : f32
    %284 = vector.broadcast %cst_158 : f32 to vector<8x1xf32>
    %285 = arith.divf %283, %284 : vector<8x1xf32>
    %286 = vector.broadcast %285 : vector<8x1xf32> to vector<8x32xf32>
    %287 = arith.subf %279, %286 : vector<8x32xf32>
    %288 = arith.mulf %287, %287 : vector<8x32xf32>
    %cst_159 = arith.constant dense<0.000000e+00> : vector<8xf32>
    %289 = vector.multi_reduction <add>, %288, %cst_159 [1] : vector<8x32xf32> to vector<8xf32>
    %290 = vector.shape_cast %289 : vector<8xf32> to vector<8x1xf32>
    %cst_160 = arith.constant 3.200000e+01 : f32
    %291 = vector.broadcast %cst_160 : f32 to vector<8x1xf32>
    %292 = arith.divf %290, %291 : vector<8x1xf32>
    %cst_161 = arith.constant 9.99999996E-13 : f32
    %293 = vector.broadcast %cst_161 : f32 to vector<8x1xf32>
    %294 = arith.addf %292, %293 : vector<8x1xf32>
    %295 = math.rsqrt %294 : vector<8x1xf32>
    %296 = vector.broadcast %295 : vector<8x1xf32> to vector<8x32xf32>
    %297 = arith.mulf %287, %296 : vector<8x32xf32>
    %298 = vector.broadcast %280 : vector<1x32xf32> to vector<8x32xf32>
    %299 = arith.mulf %297, %298 : vector<8x32xf32>
    %300 = vector.broadcast %281 : vector<1x32xf32> to vector<8x32xf32>
    %301 = arith.addf %299, %300 : vector<8x32xf32>
    %cst_162 = arith.constant 0.000000e+00 : f32
    %302 = vector.broadcast %cst_162 : f32 to vector<8x32xf32>
    %c1_163 = arith.constant 1 : index
    %c0_164 = arith.constant 0 : index
    %c0_165 = arith.constant 0 : index
    %303 = vector.load %arg5[%c1_163, %c0_164, %c0_165] : memref<2x33x192xf32, #tpu.memory_space<vmem>>, vector<1x32x8xf32>
    %304 = vector.shape_cast %303 : vector<1x32x8xf32> to vector<32x8xf32>
    %cst_166 = arith.constant dense<0.000000e+00> : vector<8x8xf32>
    %305 = tpu.matmul %301, %304, %cst_166 {dimension_numbers = #tpu.dot_dimension_numbers<[1], [0], [0], [1], [0, 0, 1, 1], [], []>} : vector<8x32xf32>, vector<32x8xf32>, vector<8x8xf32> -> vector<8x8xf32>
    %c14 = arith.constant 14 : index
    %c0_167 = arith.constant 0 : index
    %306 = vector.load %arg7[%c14, %c0_167] : memref<23x32xf32, #tpu.memory_space<vmem>>, vector<1x8xf32>
    %307 = vector.broadcast %306 : vector<1x8xf32> to vector<8x8xf32>
    %308 = arith.addf %305, %307 : vector<8x8xf32>
    %c1_168 = arith.constant 1 : index
    %c0_169 = arith.constant 0 : index
    %c32_170 = arith.constant 32 : index
    %309 = vector.load %arg5[%c1_168, %c0_169, %c32_170] : memref<2x33x192xf32, #tpu.memory_space<vmem>>, vector<1x32x8xf32>
    %310 = vector.shape_cast %309 : vector<1x32x8xf32> to vector<32x8xf32>
    %cst_171 = arith.constant dense<0.000000e+00> : vector<8x8xf32>
    %311 = tpu.matmul %301, %310, %cst_171 {dimension_numbers = #tpu.dot_dimension_numbers<[1], [0], [0], [1], [0, 0, 1, 1], [], []>} : vector<8x32xf32>, vector<32x8xf32>, vector<8x8xf32> -> vector<8x8xf32>
    %c15 = arith.constant 15 : index
    %c0_172 = arith.constant 0 : index
    %312 = vector.load %arg7[%c15, %c0_172] : memref<23x32xf32, #tpu.memory_space<vmem>>, vector<1x8xf32>
    %313 = vector.broadcast %312 : vector<1x8xf32> to vector<8x8xf32>
    %314 = arith.addf %311, %313 : vector<8x8xf32>
    %c1_173 = arith.constant 1 : index
    %c0_174 = arith.constant 0 : index
    %c64_175 = arith.constant 64 : index
    %315 = vector.load %arg5[%c1_173, %c0_174, %c64_175] : memref<2x33x192xf32, #tpu.memory_space<vmem>>, vector<1x32x8xf32>
    %316 = vector.shape_cast %315 : vector<1x32x8xf32> to vector<32x8xf32>
    %cst_176 = arith.constant dense<0.000000e+00> : vector<8x8xf32>
    %317 = tpu.matmul %301, %316, %cst_176 {dimension_numbers = #tpu.dot_dimension_numbers<[1], [0], [0], [1], [0, 0, 1, 1], [], []>} : vector<8x32xf32>, vector<32x8xf32>, vector<8x8xf32> -> vector<8x8xf32>
    %c16_177 = arith.constant 16 : index
    %c0_178 = arith.constant 0 : index
    %318 = vector.load %arg7[%c16_177, %c0_178] : memref<23x32xf32, #tpu.memory_space<vmem>>, vector<1x8xf32>
    %319 = vector.broadcast %318 : vector<1x8xf32> to vector<8x8xf32>
    %320 = arith.addf %317, %319 : vector<8x8xf32>
    %c17 = arith.constant 17 : index
    %c0_179 = arith.constant 0 : index
    %321 = vector.load %arg7[%c17, %c0_179] : memref<23x32xf32, #tpu.memory_space<vmem>>, vector<1x8xf32>
    %c18 = arith.constant 18 : index
    %c0_180 = arith.constant 0 : index
    %322 = vector.load %arg7[%c18, %c0_180] : memref<23x32xf32, #tpu.memory_space<vmem>>, vector<1x8xf32>
    %cst_181 = arith.constant dense<0.000000e+00> : vector<8x8xf32>
    %323 = tpu.matmul %308, %314, %cst_181 {dimension_numbers = #tpu.dot_dimension_numbers<[1], [1], [0], [0], [0, 0, 1, 0], [], []>} : vector<8x8xf32>, vector<8x8xf32>, vector<8x8xf32> -> vector<8x8xf32>
    %cst_182 = arith.constant -1.000000e+30 : f32
    %324 = vector.shape_cast %5 : vector<1x8xi1> to vector<1x8xi1>
    %325 = vector.broadcast %324 : vector<1x8xi1> to vector<8x8xi1>
    %326 = vector.broadcast %cst_182 : f32 to vector<8x8xf32>
    %327 = arith.select %325, %326, %323 : vector<8x8xi1>, vector<8x8xf32>
    %cst_183 = arith.constant dense<0.000000e+00> : vector<8x1xf32>
    %328 = tpu.matmul %308, %321, %cst_183 {dimension_numbers = #tpu.dot_dimension_numbers<[1], [1], [0], [0], [0, 0, 1, 0], [], []>} : vector<8x8xf32>, vector<1x8xf32>, vector<8x1xf32> -> vector<8x1xf32>
    %cst_184 = arith.constant dense<0xFF800000> : vector<8xf32>
    %329 = vector.multi_reduction <maximumf>, %327, %cst_184 [1] : vector<8x8xf32> to vector<8xf32>
    %330 = vector.shape_cast %329 : vector<8xf32> to vector<8x1xf32>
    %331 = arith.maximumf %330, %328 : vector<8x1xf32>
    %332 = vector.broadcast %331 : vector<8x1xf32> to vector<8x8xf32>
    %333 = arith.subf %327, %332 : vector<8x8xf32>
    %334 = math.exp %333 : vector<8x8xf32>
    %335 = arith.subf %328, %331 : vector<8x1xf32>
    %336 = math.exp %335 : vector<8x1xf32>
    %cst_185 = arith.constant dense<0.000000e+00> : vector<8xf32>
    %337 = vector.multi_reduction <add>, %334, %cst_185 [1] : vector<8x8xf32> to vector<8xf32>
    %338 = vector.shape_cast %337 : vector<8xf32> to vector<8x1xf32>
    %339 = arith.addf %338, %336 : vector<8x1xf32>
    %340 = tpu.reciprocal %339 {approx = true} : vector<8x1xf32> -> vector<8x1xf32>
    %cst_186 = arith.constant dense<0.000000e+00> : vector<8x8xf32>
    %341 = tpu.matmul %334, %320, %cst_186 {dimension_numbers = #tpu.dot_dimension_numbers<[1], [0], [0], [1], [0, 0, 1, 1], [], []>} : vector<8x8xf32>, vector<8x8xf32>, vector<8x8xf32> -> vector<8x8xf32>
    %342 = vector.broadcast %336 : vector<8x1xf32> to vector<8x8xf32>
    %343 = vector.broadcast %322 : vector<1x8xf32> to vector<8x8xf32>
    %344 = arith.mulf %342, %343 : vector<8x8xf32>
    %345 = arith.addf %341, %344 : vector<8x8xf32>
    %346 = vector.broadcast %340 : vector<8x1xf32> to vector<8x8xf32>
    %347 = arith.mulf %345, %346 : vector<8x8xf32>
    %c1_187 = arith.constant 1 : index
    %c0_188 = arith.constant 0 : index
    %c96_189 = arith.constant 96 : index
    %348 = vector.load %arg5[%c1_187, %c0_188, %c96_189] : memref<2x33x192xf32, #tpu.memory_space<vmem>>, vector<1x8x32xf32>
    %349 = vector.shape_cast %348 : vector<1x8x32xf32> to vector<8x32xf32>
    %cst_190 = arith.constant dense<0.000000e+00> : vector<8x32xf32>
    %350 = tpu.matmul %347, %349, %cst_190 {dimension_numbers = #tpu.dot_dimension_numbers<[1], [0], [0], [1], [0, 0, 1, 1], [], []>} : vector<8x8xf32>, vector<8x32xf32>, vector<8x32xf32> -> vector<8x32xf32>
    %351 = arith.addf %302, %350 : vector<8x32xf32>
    %c1_191 = arith.constant 1 : index
    %c0_192 = arith.constant 0 : index
    %c8_193 = arith.constant 8 : index
    %352 = vector.load %arg5[%c1_191, %c0_192, %c8_193] : memref<2x33x192xf32, #tpu.memory_space<vmem>>, vector<1x32x8xf32>
    %353 = vector.shape_cast %352 : vector<1x32x8xf32> to vector<32x8xf32>
    %cst_194 = arith.constant dense<0.000000e+00> : vector<8x8xf32>
    %354 = tpu.matmul %301, %353, %cst_194 {dimension_numbers = #tpu.dot_dimension_numbers<[1], [0], [0], [1], [0, 0, 1, 1], [], []>} : vector<8x32xf32>, vector<32x8xf32>, vector<8x8xf32> -> vector<8x8xf32>
    %c14_195 = arith.constant 14 : index
    %c8_196 = arith.constant 8 : index
    %355 = vector.load %arg7[%c14_195, %c8_196] : memref<23x32xf32, #tpu.memory_space<vmem>>, vector<1x8xf32>
    %356 = vector.broadcast %355 : vector<1x8xf32> to vector<8x8xf32>
    %357 = arith.addf %354, %356 : vector<8x8xf32>
    %c1_197 = arith.constant 1 : index
    %c0_198 = arith.constant 0 : index
    %c40_199 = arith.constant 40 : index
    %358 = vector.load %arg5[%c1_197, %c0_198, %c40_199] : memref<2x33x192xf32, #tpu.memory_space<vmem>>, vector<1x32x8xf32>
    %359 = vector.shape_cast %358 : vector<1x32x8xf32> to vector<32x8xf32>
    %cst_200 = arith.constant dense<0.000000e+00> : vector<8x8xf32>
    %360 = tpu.matmul %301, %359, %cst_200 {dimension_numbers = #tpu.dot_dimension_numbers<[1], [0], [0], [1], [0, 0, 1, 1], [], []>} : vector<8x32xf32>, vector<32x8xf32>, vector<8x8xf32> -> vector<8x8xf32>
    %c15_201 = arith.constant 15 : index
    %c8_202 = arith.constant 8 : index
    %361 = vector.load %arg7[%c15_201, %c8_202] : memref<23x32xf32, #tpu.memory_space<vmem>>, vector<1x8xf32>
    %362 = vector.broadcast %361 : vector<1x8xf32> to vector<8x8xf32>
    %363 = arith.addf %360, %362 : vector<8x8xf32>
    %c1_203 = arith.constant 1 : index
    %c0_204 = arith.constant 0 : index
    %c72_205 = arith.constant 72 : index
    %364 = vector.load %arg5[%c1_203, %c0_204, %c72_205] : memref<2x33x192xf32, #tpu.memory_space<vmem>>, vector<1x32x8xf32>
    %365 = vector.shape_cast %364 : vector<1x32x8xf32> to vector<32x8xf32>
    %cst_206 = arith.constant dense<0.000000e+00> : vector<8x8xf32>
    %366 = tpu.matmul %301, %365, %cst_206 {dimension_numbers = #tpu.dot_dimension_numbers<[1], [0], [0], [1], [0, 0, 1, 1], [], []>} : vector<8x32xf32>, vector<32x8xf32>, vector<8x8xf32> -> vector<8x8xf32>
    %c16_207 = arith.constant 16 : index
    %c8_208 = arith.constant 8 : index
    %367 = vector.load %arg7[%c16_207, %c8_208] : memref<23x32xf32, #tpu.memory_space<vmem>>, vector<1x8xf32>
    %368 = vector.broadcast %367 : vector<1x8xf32> to vector<8x8xf32>
    %369 = arith.addf %366, %368 : vector<8x8xf32>
    %c17_209 = arith.constant 17 : index
    %c8_210 = arith.constant 8 : index
    %370 = vector.load %arg7[%c17_209, %c8_210] : memref<23x32xf32, #tpu.memory_space<vmem>>, vector<1x8xf32>
    %c18_211 = arith.constant 18 : index
    %c8_212 = arith.constant 8 : index
    %371 = vector.load %arg7[%c18_211, %c8_212] : memref<23x32xf32, #tpu.memory_space<vmem>>, vector<1x8xf32>
    %cst_213 = arith.constant dense<0.000000e+00> : vector<8x8xf32>
    %372 = tpu.matmul %357, %363, %cst_213 {dimension_numbers = #tpu.dot_dimension_numbers<[1], [1], [0], [0], [0, 0, 1, 0], [], []>} : vector<8x8xf32>, vector<8x8xf32>, vector<8x8xf32> -> vector<8x8xf32>
    %cst_214 = arith.constant -1.000000e+30 : f32
    %373 = vector.shape_cast %5 : vector<1x8xi1> to vector<1x8xi1>
    %374 = vector.broadcast %373 : vector<1x8xi1> to vector<8x8xi1>
    %375 = vector.broadcast %cst_214 : f32 to vector<8x8xf32>
    %376 = arith.select %374, %375, %372 : vector<8x8xi1>, vector<8x8xf32>
    %cst_215 = arith.constant dense<0.000000e+00> : vector<8x1xf32>
    %377 = tpu.matmul %357, %370, %cst_215 {dimension_numbers = #tpu.dot_dimension_numbers<[1], [1], [0], [0], [0, 0, 1, 0], [], []>} : vector<8x8xf32>, vector<1x8xf32>, vector<8x1xf32> -> vector<8x1xf32>
    %cst_216 = arith.constant dense<0xFF800000> : vector<8xf32>
    %378 = vector.multi_reduction <maximumf>, %376, %cst_216 [1] : vector<8x8xf32> to vector<8xf32>
    %379 = vector.shape_cast %378 : vector<8xf32> to vector<8x1xf32>
    %380 = arith.maximumf %379, %377 : vector<8x1xf32>
    %381 = vector.broadcast %380 : vector<8x1xf32> to vector<8x8xf32>
    %382 = arith.subf %376, %381 : vector<8x8xf32>
    %383 = math.exp %382 : vector<8x8xf32>
    %384 = arith.subf %377, %380 : vector<8x1xf32>
    %385 = math.exp %384 : vector<8x1xf32>
    %cst_217 = arith.constant dense<0.000000e+00> : vector<8xf32>
    %386 = vector.multi_reduction <add>, %383, %cst_217 [1] : vector<8x8xf32> to vector<8xf32>
    %387 = vector.shape_cast %386 : vector<8xf32> to vector<8x1xf32>
    %388 = arith.addf %387, %385 : vector<8x1xf32>
    %389 = tpu.reciprocal %388 {approx = true} : vector<8x1xf32> -> vector<8x1xf32>
    %cst_218 = arith.constant dense<0.000000e+00> : vector<8x8xf32>
    %390 = tpu.matmul %383, %369, %cst_218 {dimension_numbers = #tpu.dot_dimension_numbers<[1], [0], [0], [1], [0, 0, 1, 1], [], []>} : vector<8x8xf32>, vector<8x8xf32>, vector<8x8xf32> -> vector<8x8xf32>
    %391 = vector.broadcast %385 : vector<8x1xf32> to vector<8x8xf32>
    %392 = vector.broadcast %371 : vector<1x8xf32> to vector<8x8xf32>
    %393 = arith.mulf %391, %392 : vector<8x8xf32>
    %394 = arith.addf %390, %393 : vector<8x8xf32>
    %395 = vector.broadcast %389 : vector<8x1xf32> to vector<8x8xf32>
    %396 = arith.mulf %394, %395 : vector<8x8xf32>
    %c1_219 = arith.constant 1 : index
    %c8_220 = arith.constant 8 : index
    %c96_221 = arith.constant 96 : index
    %397 = vector.load %arg5[%c1_219, %c8_220, %c96_221] : memref<2x33x192xf32, #tpu.memory_space<vmem>>, vector<1x8x32xf32>
    %398 = vector.shape_cast %397 : vector<1x8x32xf32> to vector<8x32xf32>
    %cst_222 = arith.constant dense<0.000000e+00> : vector<8x32xf32>
    %399 = tpu.matmul %396, %398, %cst_222 {dimension_numbers = #tpu.dot_dimension_numbers<[1], [0], [0], [1], [0, 0, 1, 1], [], []>} : vector<8x8xf32>, vector<8x32xf32>, vector<8x32xf32> -> vector<8x32xf32>
    %400 = arith.addf %351, %399 : vector<8x32xf32>
    %c1_223 = arith.constant 1 : index
    %c0_224 = arith.constant 0 : index
    %c16_225 = arith.constant 16 : index
    %401 = vector.load %arg5[%c1_223, %c0_224, %c16_225] : memref<2x33x192xf32, #tpu.memory_space<vmem>>, vector<1x32x8xf32>
    %402 = vector.shape_cast %401 : vector<1x32x8xf32> to vector<32x8xf32>
    %cst_226 = arith.constant dense<0.000000e+00> : vector<8x8xf32>
    %403 = tpu.matmul %301, %402, %cst_226 {dimension_numbers = #tpu.dot_dimension_numbers<[1], [0], [0], [1], [0, 0, 1, 1], [], []>} : vector<8x32xf32>, vector<32x8xf32>, vector<8x8xf32> -> vector<8x8xf32>
    %c14_227 = arith.constant 14 : index
    %c16_228 = arith.constant 16 : index
    %404 = vector.load %arg7[%c14_227, %c16_228] : memref<23x32xf32, #tpu.memory_space<vmem>>, vector<1x8xf32>
    %405 = vector.broadcast %404 : vector<1x8xf32> to vector<8x8xf32>
    %406 = arith.addf %403, %405 : vector<8x8xf32>
    %c1_229 = arith.constant 1 : index
    %c0_230 = arith.constant 0 : index
    %c48_231 = arith.constant 48 : index
    %407 = vector.load %arg5[%c1_229, %c0_230, %c48_231] : memref<2x33x192xf32, #tpu.memory_space<vmem>>, vector<1x32x8xf32>
    %408 = vector.shape_cast %407 : vector<1x32x8xf32> to vector<32x8xf32>
    %cst_232 = arith.constant dense<0.000000e+00> : vector<8x8xf32>
    %409 = tpu.matmul %301, %408, %cst_232 {dimension_numbers = #tpu.dot_dimension_numbers<[1], [0], [0], [1], [0, 0, 1, 1], [], []>} : vector<8x32xf32>, vector<32x8xf32>, vector<8x8xf32> -> vector<8x8xf32>
    %c15_233 = arith.constant 15 : index
    %c16_234 = arith.constant 16 : index
    %410 = vector.load %arg7[%c15_233, %c16_234] : memref<23x32xf32, #tpu.memory_space<vmem>>, vector<1x8xf32>
    %411 = vector.broadcast %410 : vector<1x8xf32> to vector<8x8xf32>
    %412 = arith.addf %409, %411 : vector<8x8xf32>
    %c1_235 = arith.constant 1 : index
    %c0_236 = arith.constant 0 : index
    %c80_237 = arith.constant 80 : index
    %413 = vector.load %arg5[%c1_235, %c0_236, %c80_237] : memref<2x33x192xf32, #tpu.memory_space<vmem>>, vector<1x32x8xf32>
    %414 = vector.shape_cast %413 : vector<1x32x8xf32> to vector<32x8xf32>
    %cst_238 = arith.constant dense<0.000000e+00> : vector<8x8xf32>
    %415 = tpu.matmul %301, %414, %cst_238 {dimension_numbers = #tpu.dot_dimension_numbers<[1], [0], [0], [1], [0, 0, 1, 1], [], []>} : vector<8x32xf32>, vector<32x8xf32>, vector<8x8xf32> -> vector<8x8xf32>
    %c16_239 = arith.constant 16 : index
    %c16_240 = arith.constant 16 : index
    %416 = vector.load %arg7[%c16_239, %c16_240] : memref<23x32xf32, #tpu.memory_space<vmem>>, vector<1x8xf32>
    %417 = vector.broadcast %416 : vector<1x8xf32> to vector<8x8xf32>
    %418 = arith.addf %415, %417 : vector<8x8xf32>
    %c17_241 = arith.constant 17 : index
    %c16_242 = arith.constant 16 : index
    %419 = vector.load %arg7[%c17_241, %c16_242] : memref<23x32xf32, #tpu.memory_space<vmem>>, vector<1x8xf32>
    %c18_243 = arith.constant 18 : index
    %c16_244 = arith.constant 16 : index
    %420 = vector.load %arg7[%c18_243, %c16_244] : memref<23x32xf32, #tpu.memory_space<vmem>>, vector<1x8xf32>
    %cst_245 = arith.constant dense<0.000000e+00> : vector<8x8xf32>
    %421 = tpu.matmul %406, %412, %cst_245 {dimension_numbers = #tpu.dot_dimension_numbers<[1], [1], [0], [0], [0, 0, 1, 0], [], []>} : vector<8x8xf32>, vector<8x8xf32>, vector<8x8xf32> -> vector<8x8xf32>
    %cst_246 = arith.constant -1.000000e+30 : f32
    %422 = vector.shape_cast %5 : vector<1x8xi1> to vector<1x8xi1>
    %423 = vector.broadcast %422 : vector<1x8xi1> to vector<8x8xi1>
    %424 = vector.broadcast %cst_246 : f32 to vector<8x8xf32>
    %425 = arith.select %423, %424, %421 : vector<8x8xi1>, vector<8x8xf32>
    %cst_247 = arith.constant dense<0.000000e+00> : vector<8x1xf32>
    %426 = tpu.matmul %406, %419, %cst_247 {dimension_numbers = #tpu.dot_dimension_numbers<[1], [1], [0], [0], [0, 0, 1, 0], [], []>} : vector<8x8xf32>, vector<1x8xf32>, vector<8x1xf32> -> vector<8x1xf32>
    %cst_248 = arith.constant dense<0xFF800000> : vector<8xf32>
    %427 = vector.multi_reduction <maximumf>, %425, %cst_248 [1] : vector<8x8xf32> to vector<8xf32>
    %428 = vector.shape_cast %427 : vector<8xf32> to vector<8x1xf32>
    %429 = arith.maximumf %428, %426 : vector<8x1xf32>
    %430 = vector.broadcast %429 : vector<8x1xf32> to vector<8x8xf32>
    %431 = arith.subf %425, %430 : vector<8x8xf32>
    %432 = math.exp %431 : vector<8x8xf32>
    %433 = arith.subf %426, %429 : vector<8x1xf32>
    %434 = math.exp %433 : vector<8x1xf32>
    %cst_249 = arith.constant dense<0.000000e+00> : vector<8xf32>
    %435 = vector.multi_reduction <add>, %432, %cst_249 [1] : vector<8x8xf32> to vector<8xf32>
    %436 = vector.shape_cast %435 : vector<8xf32> to vector<8x1xf32>
    %437 = arith.addf %436, %434 : vector<8x1xf32>
    %438 = tpu.reciprocal %437 {approx = true} : vector<8x1xf32> -> vector<8x1xf32>
    %cst_250 = arith.constant dense<0.000000e+00> : vector<8x8xf32>
    %439 = tpu.matmul %432, %418, %cst_250 {dimension_numbers = #tpu.dot_dimension_numbers<[1], [0], [0], [1], [0, 0, 1, 1], [], []>} : vector<8x8xf32>, vector<8x8xf32>, vector<8x8xf32> -> vector<8x8xf32>
    %440 = vector.broadcast %434 : vector<8x1xf32> to vector<8x8xf32>
    %441 = vector.broadcast %420 : vector<1x8xf32> to vector<8x8xf32>
    %442 = arith.mulf %440, %441 : vector<8x8xf32>
    %443 = arith.addf %439, %442 : vector<8x8xf32>
    %444 = vector.broadcast %438 : vector<8x1xf32> to vector<8x8xf32>
    %445 = arith.mulf %443, %444 : vector<8x8xf32>
    %c1_251 = arith.constant 1 : index
    %c16_252 = arith.constant 16 : index
    %c96_253 = arith.constant 96 : index
    %446 = vector.load %arg5[%c1_251, %c16_252, %c96_253] : memref<2x33x192xf32, #tpu.memory_space<vmem>>, vector<1x8x32xf32>
    %447 = vector.shape_cast %446 : vector<1x8x32xf32> to vector<8x32xf32>
    %cst_254 = arith.constant dense<0.000000e+00> : vector<8x32xf32>
    %448 = tpu.matmul %445, %447, %cst_254 {dimension_numbers = #tpu.dot_dimension_numbers<[1], [0], [0], [1], [0, 0, 1, 1], [], []>} : vector<8x8xf32>, vector<8x32xf32>, vector<8x32xf32> -> vector<8x32xf32>
    %449 = arith.addf %400, %448 : vector<8x32xf32>
    %c1_255 = arith.constant 1 : index
    %c0_256 = arith.constant 0 : index
    %c24_257 = arith.constant 24 : index
    %450 = vector.load %arg5[%c1_255, %c0_256, %c24_257] : memref<2x33x192xf32, #tpu.memory_space<vmem>>, vector<1x32x8xf32>
    %451 = vector.shape_cast %450 : vector<1x32x8xf32> to vector<32x8xf32>
    %cst_258 = arith.constant dense<0.000000e+00> : vector<8x8xf32>
    %452 = tpu.matmul %301, %451, %cst_258 {dimension_numbers = #tpu.dot_dimension_numbers<[1], [0], [0], [1], [0, 0, 1, 1], [], []>} : vector<8x32xf32>, vector<32x8xf32>, vector<8x8xf32> -> vector<8x8xf32>
    %c14_259 = arith.constant 14 : index
    %c24_260 = arith.constant 24 : index
    %453 = vector.load %arg7[%c14_259, %c24_260] : memref<23x32xf32, #tpu.memory_space<vmem>>, vector<1x8xf32>
    %454 = vector.broadcast %453 : vector<1x8xf32> to vector<8x8xf32>
    %455 = arith.addf %452, %454 : vector<8x8xf32>
    %c1_261 = arith.constant 1 : index
    %c0_262 = arith.constant 0 : index
    %c56_263 = arith.constant 56 : index
    %456 = vector.load %arg5[%c1_261, %c0_262, %c56_263] : memref<2x33x192xf32, #tpu.memory_space<vmem>>, vector<1x32x8xf32>
    %457 = vector.shape_cast %456 : vector<1x32x8xf32> to vector<32x8xf32>
    %cst_264 = arith.constant dense<0.000000e+00> : vector<8x8xf32>
    %458 = tpu.matmul %301, %457, %cst_264 {dimension_numbers = #tpu.dot_dimension_numbers<[1], [0], [0], [1], [0, 0, 1, 1], [], []>} : vector<8x32xf32>, vector<32x8xf32>, vector<8x8xf32> -> vector<8x8xf32>
    %c15_265 = arith.constant 15 : index
    %c24_266 = arith.constant 24 : index
    %459 = vector.load %arg7[%c15_265, %c24_266] : memref<23x32xf32, #tpu.memory_space<vmem>>, vector<1x8xf32>
    %460 = vector.broadcast %459 : vector<1x8xf32> to vector<8x8xf32>
    %461 = arith.addf %458, %460 : vector<8x8xf32>
    %c1_267 = arith.constant 1 : index
    %c0_268 = arith.constant 0 : index
    %c88_269 = arith.constant 88 : index
    %462 = vector.load %arg5[%c1_267, %c0_268, %c88_269] : memref<2x33x192xf32, #tpu.memory_space<vmem>>, vector<1x32x8xf32>
    %463 = vector.shape_cast %462 : vector<1x32x8xf32> to vector<32x8xf32>
    %cst_270 = arith.constant dense<0.000000e+00> : vector<8x8xf32>
    %464 = tpu.matmul %301, %463, %cst_270 {dimension_numbers = #tpu.dot_dimension_numbers<[1], [0], [0], [1], [0, 0, 1, 1], [], []>} : vector<8x32xf32>, vector<32x8xf32>, vector<8x8xf32> -> vector<8x8xf32>
    %c16_271 = arith.constant 16 : index
    %c24_272 = arith.constant 24 : index
    %465 = vector.load %arg7[%c16_271, %c24_272] : memref<23x32xf32, #tpu.memory_space<vmem>>, vector<1x8xf32>
    %466 = vector.broadcast %465 : vector<1x8xf32> to vector<8x8xf32>
    %467 = arith.addf %464, %466 : vector<8x8xf32>
    %c17_273 = arith.constant 17 : index
    %c24_274 = arith.constant 24 : index
    %468 = vector.load %arg7[%c17_273, %c24_274] : memref<23x32xf32, #tpu.memory_space<vmem>>, vector<1x8xf32>
    %c18_275 = arith.constant 18 : index
    %c24_276 = arith.constant 24 : index
    %469 = vector.load %arg7[%c18_275, %c24_276] : memref<23x32xf32, #tpu.memory_space<vmem>>, vector<1x8xf32>
    %cst_277 = arith.constant dense<0.000000e+00> : vector<8x8xf32>
    %470 = tpu.matmul %455, %461, %cst_277 {dimension_numbers = #tpu.dot_dimension_numbers<[1], [1], [0], [0], [0, 0, 1, 0], [], []>} : vector<8x8xf32>, vector<8x8xf32>, vector<8x8xf32> -> vector<8x8xf32>
    %cst_278 = arith.constant -1.000000e+30 : f32
    %471 = vector.shape_cast %5 : vector<1x8xi1> to vector<1x8xi1>
    %472 = vector.broadcast %471 : vector<1x8xi1> to vector<8x8xi1>
    %473 = vector.broadcast %cst_278 : f32 to vector<8x8xf32>
    %474 = arith.select %472, %473, %470 : vector<8x8xi1>, vector<8x8xf32>
    %cst_279 = arith.constant dense<0.000000e+00> : vector<8x1xf32>
    %475 = tpu.matmul %455, %468, %cst_279 {dimension_numbers = #tpu.dot_dimension_numbers<[1], [1], [0], [0], [0, 0, 1, 0], [], []>} : vector<8x8xf32>, vector<1x8xf32>, vector<8x1xf32> -> vector<8x1xf32>
    %cst_280 = arith.constant dense<0xFF800000> : vector<8xf32>
    %476 = vector.multi_reduction <maximumf>, %474, %cst_280 [1] : vector<8x8xf32> to vector<8xf32>
    %477 = vector.shape_cast %476 : vector<8xf32> to vector<8x1xf32>
    %478 = arith.maximumf %477, %475 : vector<8x1xf32>
    %479 = vector.broadcast %478 : vector<8x1xf32> to vector<8x8xf32>
    %480 = arith.subf %474, %479 : vector<8x8xf32>
    %481 = math.exp %480 : vector<8x8xf32>
    %482 = arith.subf %475, %478 : vector<8x1xf32>
    %483 = math.exp %482 : vector<8x1xf32>
    %cst_281 = arith.constant dense<0.000000e+00> : vector<8xf32>
    %484 = vector.multi_reduction <add>, %481, %cst_281 [1] : vector<8x8xf32> to vector<8xf32>
    %485 = vector.shape_cast %484 : vector<8xf32> to vector<8x1xf32>
    %486 = arith.addf %485, %483 : vector<8x1xf32>
    %487 = tpu.reciprocal %486 {approx = true} : vector<8x1xf32> -> vector<8x1xf32>
    %cst_282 = arith.constant dense<0.000000e+00> : vector<8x8xf32>
    %488 = tpu.matmul %481, %467, %cst_282 {dimension_numbers = #tpu.dot_dimension_numbers<[1], [0], [0], [1], [0, 0, 1, 1], [], []>} : vector<8x8xf32>, vector<8x8xf32>, vector<8x8xf32> -> vector<8x8xf32>
    %489 = vector.broadcast %483 : vector<8x1xf32> to vector<8x8xf32>
    %490 = vector.broadcast %469 : vector<1x8xf32> to vector<8x8xf32>
    %491 = arith.mulf %489, %490 : vector<8x8xf32>
    %492 = arith.addf %488, %491 : vector<8x8xf32>
    %493 = vector.broadcast %487 : vector<8x1xf32> to vector<8x8xf32>
    %494 = arith.mulf %492, %493 : vector<8x8xf32>
    %c1_283 = arith.constant 1 : index
    %c24_284 = arith.constant 24 : index
    %c96_285 = arith.constant 96 : index
    %495 = vector.load %arg5[%c1_283, %c24_284, %c96_285] : memref<2x33x192xf32, #tpu.memory_space<vmem>>, vector<1x8x32xf32>
    %496 = vector.shape_cast %495 : vector<1x8x32xf32> to vector<8x32xf32>
    %cst_286 = arith.constant dense<0.000000e+00> : vector<8x32xf32>
    %497 = tpu.matmul %494, %496, %cst_286 {dimension_numbers = #tpu.dot_dimension_numbers<[1], [0], [0], [1], [0, 0, 1, 1], [], []>} : vector<8x8xf32>, vector<8x32xf32>, vector<8x32xf32> -> vector<8x32xf32>
    %498 = arith.addf %449, %497 : vector<8x32xf32>
    %499 = arith.addf %279, %498 : vector<8x32xf32>
    %c19 = arith.constant 19 : index
    %c0_287 = arith.constant 0 : index
    %500 = vector.load %arg7[%c19, %c0_287] : memref<23x32xf32, #tpu.memory_space<vmem>>, vector<1x32xf32>
    %501 = vector.broadcast %500 : vector<1x32xf32> to vector<8x32xf32>
    %502 = arith.addf %499, %501 : vector<8x32xf32>
    %c20 = arith.constant 20 : index
    %c0_288 = arith.constant 0 : index
    %503 = vector.load %arg7[%c20, %c0_288] : memref<23x32xf32, #tpu.memory_space<vmem>>, vector<1x32xf32>
    %c21 = arith.constant 21 : index
    %c0_289 = arith.constant 0 : index
    %504 = vector.load %arg7[%c21, %c0_289] : memref<23x32xf32, #tpu.memory_space<vmem>>, vector<1x32xf32>
    %cst_290 = arith.constant dense<0.000000e+00> : vector<8xf32>
    %505 = vector.multi_reduction <add>, %502, %cst_290 [1] : vector<8x32xf32> to vector<8xf32>
    %506 = vector.shape_cast %505 : vector<8xf32> to vector<8x1xf32>
    %cst_291 = arith.constant 3.200000e+01 : f32
    %507 = vector.broadcast %cst_291 : f32 to vector<8x1xf32>
    %508 = arith.divf %506, %507 : vector<8x1xf32>
    %509 = vector.broadcast %508 : vector<8x1xf32> to vector<8x32xf32>
    %510 = arith.subf %502, %509 : vector<8x32xf32>
    %511 = arith.mulf %510, %510 : vector<8x32xf32>
    %cst_292 = arith.constant dense<0.000000e+00> : vector<8xf32>
    %512 = vector.multi_reduction <add>, %511, %cst_292 [1] : vector<8x32xf32> to vector<8xf32>
    %513 = vector.shape_cast %512 : vector<8xf32> to vector<8x1xf32>
    %cst_293 = arith.constant 3.200000e+01 : f32
    %514 = vector.broadcast %cst_293 : f32 to vector<8x1xf32>
    %515 = arith.divf %513, %514 : vector<8x1xf32>
    %cst_294 = arith.constant 9.99999996E-13 : f32
    %516 = vector.broadcast %cst_294 : f32 to vector<8x1xf32>
    %517 = arith.addf %515, %516 : vector<8x1xf32>
    %518 = math.rsqrt %517 : vector<8x1xf32>
    %519 = vector.broadcast %518 : vector<8x1xf32> to vector<8x32xf32>
    %520 = arith.mulf %510, %519 : vector<8x32xf32>
    %521 = vector.broadcast %503 : vector<1x32xf32> to vector<8x32xf32>
    %522 = arith.mulf %520, %521 : vector<8x32xf32>
    %523 = vector.broadcast %504 : vector<1x32xf32> to vector<8x32xf32>
    %524 = arith.addf %522, %523 : vector<8x32xf32>
    %c1_295 = arith.constant 1 : index
    %c0_296 = arith.constant 0 : index
    %c128_297 = arith.constant 128 : index
    %525 = vector.load %arg5[%c1_295, %c0_296, %c128_297] : memref<2x33x192xf32, #tpu.memory_space<vmem>>, vector<1x32x64xf32>
    %526 = vector.shape_cast %525 : vector<1x32x64xf32> to vector<32x64xf32>
    %cst_298 = arith.constant dense<0.000000e+00> : vector<8x64xf32>
    %527 = tpu.matmul %524, %526, %cst_298 {dimension_numbers = #tpu.dot_dimension_numbers<[1], [0], [0], [1], [0, 0, 1, 1], [], []>} : vector<8x32xf32>, vector<32x64xf32>, vector<8x64xf32> -> vector<8x64xf32>
    %c1_299 = arith.constant 1 : index
    %c32_300 = arith.constant 32 : index
    %c128_301 = arith.constant 128 : index
    %528 = vector.load %arg5[%c1_299, %c32_300, %c128_301] : memref<2x33x192xf32, #tpu.memory_space<vmem>>, vector<1x1x64xf32>
    %529 = vector.shape_cast %528 : vector<1x1x64xf32> to vector<1x64xf32>
    %530 = vector.broadcast %529 : vector<1x64xf32> to vector<8x64xf32>
    %531 = arith.addf %527, %530 : vector<8x64xf32>
    %cst_302 = arith.constant 5.000000e-01 : f32
    %532 = vector.broadcast %cst_302 : f32 to vector<8x64xf32>
    %533 = arith.mulf %532, %531 : vector<8x64xf32>
    %cst_303 = arith.constant 0.707106769 : f32
    %534 = vector.broadcast %cst_303 : f32 to vector<8x64xf32>
    %535 = arith.mulf %531, %534 : vector<8x64xf32>
    %536 = math.erf %535 : vector<8x64xf32>
    %cst_304 = arith.constant 1.000000e+00 : f32
    %537 = vector.broadcast %cst_304 : f32 to vector<8x64xf32>
    %538 = arith.addf %537, %536 : vector<8x64xf32>
    %539 = arith.mulf %533, %538 : vector<8x64xf32>
    %c1_305 = arith.constant 1 : index
    %c0_306 = arith.constant 0 : index
    %c0_307 = arith.constant 0 : index
    %540 = vector.load %arg6[%c1_305, %c0_306, %c0_307] : memref<2x64x32xf32, #tpu.memory_space<vmem>>, vector<1x64x32xf32>
    %541 = vector.shape_cast %540 : vector<1x64x32xf32> to vector<64x32xf32>
    %cst_308 = arith.constant dense<0.000000e+00> : vector<8x32xf32>
    %542 = tpu.matmul %539, %541, %cst_308 {dimension_numbers = #tpu.dot_dimension_numbers<[1], [0], [0], [1], [0, 0, 1, 1], [], []>} : vector<8x64xf32>, vector<64x32xf32>, vector<8x32xf32> -> vector<8x32xf32>
    %c22 = arith.constant 22 : index
    %c0_309 = arith.constant 0 : index
    %543 = vector.load %arg7[%c22, %c0_309] : memref<23x32xf32, #tpu.memory_space<vmem>>, vector<1x32xf32>
    %544 = vector.broadcast %543 : vector<1x32xf32> to vector<8x32xf32>
    %545 = arith.addf %542, %544 : vector<8x32xf32>
    %546 = arith.addf %502, %545 : vector<8x32xf32>
    %547 = vector.broadcast %1 : vector<8x1xf32> to vector<8x32xf32>
    %548 = arith.mulf %546, %547 : vector<8x32xf32>
    %c0_310 = arith.constant 0 : index
    %c0_311 = arith.constant 0 : index
    %c0_312 = arith.constant 0 : index
    %549 = vector.load %arg8[%c0_310, %c0_311, %c0_312] : memref<1x8x32xf32, #tpu.memory_space<vmem>>, vector<1x8x32xf32>
    %550 = vector.shape_cast %549 : vector<1x8x32xf32> to vector<8x32xf32>
    %551 = vector.shape_cast %548 : vector<8x32xf32> to vector<1x8x32xf32>
    tpu.vector_store %arg8[%c0_310, %c0_311, %c0_312], %551 {strides = array<i32>} : memref<1x8x32xf32, #tpu.memory_space<vmem>>, vector<1x8x32xf32>,
    return
  }
  func.func @transform_0(%arg0: i32) -> (i32, i32, i32) {
    %c0_i32 = arith.constant 0 : i32
    %c0_i32_0 = arith.constant 0 : i32
    %c0_i32_1 = arith.constant 0 : i32
    return %arg0, %c0_i32, %c0_i32_0 : i32, i32, i32
  }
  func.func @transform_1(%arg0: i32) -> (i32, i32, i32) {
    %c0_i32 = arith.constant 0 : i32
    %c0_i32_0 = arith.constant 0 : i32
    %c0_i32_1 = arith.constant 0 : i32
    return %arg0, %c0_i32, %c0_i32_0 : i32, i32, i32
  }
  func.func @transform_2(%arg0: i32) -> (i32, i32, i32) {
    %c0_i32 = arith.constant 0 : i32
    %c0_i32_0 = arith.constant 0 : i32
    %c0_i32_1 = arith.constant 0 : i32
    return %arg0, %c0_i32, %c0_i32_0 : i32, i32, i32
  }
  func.func @transform_3(%arg0: i32) -> (i32, i32) {
    %c0_i32 = arith.constant 0 : i32
    %c0_i32_0 = arith.constant 0 : i32
    %c0_i32_1 = arith.constant 0 : i32
    return %c0_i32, %c0_i32_0 : i32, i32
  }
  func.func @transform_4(%arg0: i32) -> (i32, i32, i32) {
    %c0_i32 = arith.constant 0 : i32
    %c0_i32_0 = arith.constant 0 : i32
    %c0_i32_1 = arith.constant 0 : i32
    %c0_i32_2 = arith.constant 0 : i32
    return %c0_i32, %c0_i32_0, %c0_i32_1 : i32, i32, i32
  }
  func.func @transform_5(%arg0: i32) -> (i32, i32, i32) {
    %c0_i32 = arith.constant 0 : i32
    %c0_i32_0 = arith.constant 0 : i32
    %c0_i32_1 = arith.constant 0 : i32
    %c0_i32_2 = arith.constant 0 : i32
    return %c0_i32, %c0_i32_0, %c0_i32_1 : i32, i32, i32
  }
  func.func @transform_6(%arg0: i32) -> (i32, i32) {
    %c0_i32 = arith.constant 0 : i32
    %c0_i32_0 = arith.constant 0 : i32
    %c0_i32_1 = arith.constant 0 : i32
    return %c0_i32, %c0_i32_0 : i32, i32
  }
  func.func @transform_7(%arg0: i32) -> (i32, i32, i32) {
    %c0_i32 = arith.constant 0 : i32
    %c0_i32_0 = arith.constant 0 : i32
    %c0_i32_1 = arith.constant 0 : i32
    return %arg0, %c0_i32, %c0_i32_0 : i32, i32, i32
  }
}

</mosaic_0001>

<bundles_post_ra>
// kernel: _lambda_.1
= control target key start
LH: loop header
LB: loop body
LE: loop exit
PB: predicated region body
PF: predicated region fallthrough
CT: control target
= control target key end

     0   :  { %12 = vsyncpa [#allocation3], 0  ;;  %s7387_s0 = inlined_call_operand.vmem [shape: f32[2,8,32], index: 0, kind: input, shape index: {}]   ;;  %s7388_s1 = inlined_call_operand.vmem [shape: f32[2,8,1], index: 1, kind: input, shape index: {}]   ;;  %s7389_s2 = inlined_call_operand.vmem [shape: f32[2,1,8], index: 2, kind: input, shape index: {}]   ;;  %s7390_s3 = inlined_call_operand.vmem [shape: f32[32,32], index: 3, kind: input, shape index: {}]   ;;  %s7391_s4 = inlined_call_operand.vmem [shape: f32[2,33,192], index: 4, kind: input, shape index: {}]   ;;  %s7392_s5 = inlined_call_operand.vmem [shape: f32[2,64,32], index: 5, kind: input, shape index: {}]   ;;  %s7393_s6 = inlined_call_operand.vmem [shape: f32[23,32], index: 6, kind: input, shape index: {}]   ;;  %s7394_s7 = inlined_call_operand.hbm [shape: f32[2,8,32], index: 7, kind: output, shape index: {}]  }
   0x1   :  { %14 = vsyncpa [#allocation3 + $0x1], 0  ;;  %s6484_s24 = smov 0   ;;  %s6486_s25 = smov 0  }
   0x2   :  { %s6488_s26 = smov 0   ;;  %s6490_s27 = smov 0  }
   0x3 LB: > { %s6505_s28 = sadd.s32 4294967295, %s6425_s27   ;;  %s5070_s29 = sadd.s32 4294967294, %s6425_s27   ;;  %s6425_s27 = sphi %s6490_s27, %s7423_s27   ;;  %s6421_s26 = sphi %s6488_s26, %s7422_s26   ;;  %s6417_s25 = sphi %s6486_s25, %s7421_s25   ;;  %s6413_s24 = sphi %s6484_s24, %s7420_s24  }
   0x4   : > { %s6509_s30 = sadd.s32 1, %s6425_s27   ;;  %s189_s8 = sadd.s32 1, %s6421_s26 }
   0x5   : > { %s186_s9 = ssub.s32 %s6425_s27, %s6509_s30  ;;  %p199_p0 = scmp.ne.s32.totalorder %s6421_s26, %s6417_s25 }
   0x6   : > { %p187_p1 = scmp.eq.s32.totalorder %s186_s9, 0  ;;  %p200_p2 = scmp.eq.s32.totalorder %s6505_s28, 1 }
   0x7   : > { %p205_p3 = scmp.ne.s32.totalorder %s6417_s25, %s6413_s24  ;;  %p206_p4 = scmp.eq.s32.totalorder %s5070_s29, 1 }
   0x8   : > { %s6520_s10 = scalar_select %p187_p1, %s6421_s26, %s189_s8  }
   0x9   : > { %p6522_p5 = por %p200_p2, %p199_p0  ;;  %p6526_p6 = por %p206_p4, %p205_p3 }
   0xa   : > { %p5073_p7 = scmp.ge.s32.totalorder %s6425_s27, 1  ;;  %p256_p8 = scmp.lt.s32.totalorder %s6425_s27, 3 }
   0xc   : > { %p257_p9 = pnand %p5073_p7, %p256_p8 }
   0xd   : > { %v309_v0 = vld [vmem:[%s7390_s3] sm:$0xff] (!%p257_p9)  ;;  %v310_v1 = vld [vmem:[%s7390_s3 + $0x8] sm:$0xff] (!%p257_p9)  ;;  %v311_v2 = vld [vmem:[%s7390_s3 + $0x10] sm:$0xff] (!%p257_p9)  ;;  %v6427_v3 = vmov (!%p257_p9), 0.0|0.0   ;;  %vm6428_vm0 = vmmov (!%p257_p9), 0   ;;  %v6429_v6 = vmov (!%p257_p9), 0.0  }
   0xe   : > { %260 = sbr.rel (%p257_p9) target bundleno = 8901 (0x22c5), region = 48  ;;  %5841 = vmatprep.subr.bf16.mxu0 (!%p257_p9), %v6427_v3  ;;  %v5842_v4 = vpack.c.bf16 (!%p257_p9), %v310_v1, %v309_v0  ;;  %v312_v5 = vld [vmem:[%s7390_s3 + $0x18] sm:$0xff] (!%p257_p9)  ;;  %5394 = vmatprep.mubr.msk.f32.mxu0 (!%p257_p9), %vm6428_vm0, %v6429_v6  ;;  %p294_p10 = scmp.lt.s32.totalorder (!%p257_p9), %s6505_s28, 1  ;;  %v6430_v8 = vmov (!%p257_p9), 0   ;;  %vm318_vm2 = vcmask (!%p257_p9), 261120   ;;  %v6581_v17 = vld [vmem:[%s7391_s4] sm:$0xff] (!%p257_p9) }
   0xf   : > { %5847 = vmatprep.subr.bf16.mxu1 (!%p257_p9), %v6427_v3  ;;  %5405 = vmatprep.mubr.msk.f32.mxu1 (!%p257_p9), %vm6428_vm0, %v6429_v6  ;;  %v5845_v7 = vpack.c.bf16 (!%p257_p9), %v312_v5, %v311_v2  ;;  %v5077_v12 = vld [vmem:[%s7393_s6] ss:$0 sm:$0xff] (!%p257_p9)  ;;  %v6586_v18 = vld [vmem:[%s7391_s4 + $0x10] sm:$0xff] (!%p257_p9)  ;;  %s6431_s13 = smov (!%p257_p9), 96   ;;  %s6433_s15 = smov (!%p257_p9), 88   ;;  %vm680_vm3 = vcmask (!%p257_p9), 64512  }
  0x10   : > { %5843 = vmatpush3.bf16.msra.mxu0 (!%p257_p9), %v5842_v4  ;;  %6302 = vset.pattern.permute.xlu0 (!%p257_p9), %v6430_v8  ;;  %v6591_v19 = vld [vmem:[%s7391_s4 + $0x20] sm:$0xff] (!%p257_p9)  ;;  %v6595_v20 = vpack.i.bf16 (!%p257_p9), %v6586_v18, %v6581_v17  ;;  %v6600_v21 = vld [vmem:[%s7391_s4 + $0x30] sm:$0xff] (!%p257_p9)  ;;  %v5848_v31 = vpack.c.bf16 (!%p257_p9), %v6586_v18, %v6581_v17  ;;  %s6434_s19 = smov (!%p257_p9), 120   ;;  %s6435_s20 = smov (!%p257_p9), 56   ;;  %vm2609_vm5 = vcmask (!%p257_p9), 523264  }
  0x11   : > { %5844 = vmatprep.subr.bf16.mxu0 (!%p257_p9), %v6427_v3  ;;  %v6606_v22 = vpack.i.bf16 (!%p257_p9), %v6600_v21, %v6591_v19  ;;  %v5851_v36 = vpack.c.bf16 (!%p257_p9), %v6600_v21, %v6591_v19  ;;  %v5079_v43 = vld [vmem:[%s7393_s6 + $0x1] ss:$0 sm:$0xff] (!%p257_p9)  ;;  %v5080_v48 = vld [vmem:[%s7393_s6 + $0x2] ss:$0 sm:$0xff] (!%p257_p9)  ;;  %v6652_v59 = vld [vmem:[%s7393_s6 + $0x3] ss:$0 sm:$0xff] (!%p257_p9) }
  0x12   : > { %6083 = vrot.lane.b32.xlu1 (!%p257_p9), %v6595_v20, %s6431_s13  ;;  %5849 = vmatpush3.bf16.msra.mxu1 (!%p257_p9), %v5848_v31  ;;  %v6657_v60 = vld [vmem:[%s7393_s6 + $0x4] ss:$0 sm:$0xff] (!%p257_p9)  ;;  %v6662_v63 = vld [vmem:[%s7393_s6 + $0x6] ss:$0 sm:$0xff] (!%p257_p9)  ;;  %s7406_s9 = smov (!%p257_p9), 80   ;;  %s7404_s16 = smov (!%p257_p9), 112  }
  0x13   : > { %5850 = vmatprep.subr.bf16.mxu1 (!%p257_p9), %v6427_v3  ;;  %s7402_s17 = smov (!%p257_p9), 48   ;;  %s7398_s18 = smov (!%p257_p9), 104  }
  0x14   : > { %5846 = vmatpush3.bf16.msra.mxu0 (!%p257_p9), %v5845_v7  ;;  %s7396_s23 = smov (!%p257_p9), 40   ;;  %s7400_s29 = smov (!%p257_p9), 72  }
  0x15   : > { %s6552_s21 = scalar_select %p294_p10, %s6505_s28, 1  ;;  %5853 = vmatprep.subr.bf16.mxu0 %v6427_v3 }
  0x16   : > { %6088 = vrot.lane.b32.xlu1 %v6606_v22, %s6431_s13  ;;  %5852 = vmatpush3.bf16.msra.mxu1 %v5851_v36 }
  0x17   : > { %s7395_s22 = sshll.u32 %s6552_s21, 3  ;;  %s304_s8 = scalar_lea.vmem %s7389_s2, %s6552_s21  ;;  %5859 = vmatprep.subr.bf16.mxu1 %v6427_v3 }
  0x18   : > { %s297_s14 = scalar_lea.vmem %s7387_s0, %s7395_s22  ;;  %v306_v9 = vld [vmem:[%s304_s8] sm:$0x1]  ;;  %s7408_s8 = smov 32  }
  0x19   : > { %vm307_vm1 = vcmp.le.f32.partialorder %v306_v9, 0.0  ;;  %v308_v10 = vld [vmem:[%s297_s14] sm:$0xff]  ;;  %s6432_s14 = smov 64   ;;  %s5182_s22 = sshll.u32 %s6505_s28, 7 }
  0x1a   : > { %v6565_v11 = vsel %vm307_vm1, 1, %v6430_v8  ;;  %5395 = vmatmul.mubr.msk.f32.vlgmr.msra.gmra.mrb[0].mxu0 %vm318_vm2, %v308_v10  ;;  %6098 = vrot.lane.b32.xlu1 %v6606_v22, %s6432_s14  ;;  %v6674_v8 = vld [vmem:[%s7393_s6 + $0x5] ss:$0 sm:$0xff]  ;;  %s6443_s28 = smov [#allocation2]  }
  0x1b   : > { %5416 = vmatprep.mubr.msk.f32.mxu0 %vm6428_vm0, %v6429_v6 }
  0x1e   : > { %6103 = vrot.lane.b32.xlu1 %v6595_v20, %s6433_s15 }
  0x84   : > { %v6084_v28 = vpop.permute.xlu1 %6083 }
  0x85   : > { %v6086_v29 = vunpack.i.h.bf16 %v6084_v28  ;;  %v6085_v30 = vunpack.i.l.bf16 %v6084_v28 }
  0x87   : > { %v5854_v32 = vpack.c.bf16 %v6086_v29, %v6085_v30 }
  0x88   : > { %v6089_v33 = vpop.permute.xlu1 %6088 }
  0x89   : > { %v6091_v34 = vunpack.i.h.bf16 %v6089_v33  ;;  %v6090_v35 = vunpack.i.l.bf16 %v6089_v33  ;;  %5855 = vmatpush3.bf16.msra.mxu0 %v5854_v32 }
  0x8a   : > { %5856 = vmatprep.subr.bf16.mxu0 %v6427_v3 }
  0x8b   : > { %v5857_v37 = vpack.c.bf16 %v6091_v34, %v6090_v35 }
  0x8c   : > { %v6099_v47 = vpop.permute.xlu1 %6098 }
  0x8d   : > { %5858 = vmatpush3.bf16.msra.mxu0 %v5857_v37  ;;  %v6101_v51 = vunpack.i.h.bf16 %v6099_v47  ;;  %v6100_v52 = vunpack.i.l.bf16 %v6099_v47 }
  0x8e   : > { %5430 = vmatprep.subr.mxu0 %v6429_v6 }
  0x8f   : > { %v5863_v54 = vpack.c.bf16 %v6101_v51, %v6100_v52 }
  0x90   : > { %v6104_v55 = vpop.permute.xlu1 %6103 }
  0x91   : > { %v6106_v56 = vunpack.i.h.bf16 %v6104_v55  ;;  %v6105_v57 = vunpack.i.l.bf16 %v6104_v55 }
  0x93   : > { %v5872_v58 = vpack.c.bf16 %v6106_v56, %v6105_v57 }
  0xed   : > { %v388_v13 = vpop.f32.mrb[0].mxu0 }
  0xee   : > { %v6574_v14 = vadd.f32 %v5077_v12, %v388_v13  ;;  %v5396_v15 = vpop.f32.mrb[1].mxu0 }
  0xf0   : > { %v394_v16 = vsel %vm318_vm2, %v6574_v14, 0.0 }
  0xf1   : > { %395 = vadd.xlane.f32.xlu0 %v394_v16 }
 0x17e   : > { %v396_v23 = vpop.xlane.xlu0 %395 }
 0x17f   : > { %v398_v24 = vmul.f32 0.03125, %v396_v23 }
 0x181   : > { %v399_v25 = vsub.f32 %v6574_v14, %v398_v24 }
 0x183   : > { %v400_v26 = vmul.f32 %v399_v25, %v399_v25 }
 0x185   : > { %v401_v27 = vsel %vm318_vm2, %v400_v26, 0.0 }
 0x186   : > { %402 = vadd.xlane.f32.xlu0 %v401_v27 }
 0x19c   : > { %6093 = vrot.lane.b32.xlu0 %v6595_v20, %s6432_s14 }
 0x213   : > { %v403_v38 = vpop.xlane.xlu0 %402 }
 0x214   : > { %v404_v39 = vmul.f32 0.03125, %v403_v38 }
 0x216   : > { %v405_v40 = vadd.f32 1e-12, %v404_v39 }
 0x217   : > { %v6094_v41 = vpop.permute.xlu0 %6093 }
 0x218   : > { %6303 = vrsqrt.f32 %v405_v40  ;;  %v6096_v44 = vunpack.i.h.bf16 %v6094_v41  ;;  %v6095_v45 = vunpack.i.l.bf16 %v6094_v41 }
 0x21a   : > { %v5860_v50 = vpack.c.bf16 %v6096_v44, %v6095_v45 }
 0x222   : > { %v6304_v42 = vpop.eup %6303 }
 0x223   : > { %v407_v46 = vmul.f32 %v6304_v42, %v399_v25  ;;  %v758_v25 = vlaneseq }
 0x225   : > { %v412_v49 = vmul.f32 %v5079_v43, %v407_v46  ;;  %v759_v26 = vshrl.u32 %v758_v25, 7 }
 0x227   : > { %v6632_v53 = vadd.f32 %v5080_v48, %v412_v49  ;;  %v760_v27 = vsub.s32 0, %v759_v26 }
 0x229   : > { %5406 = vmatmul.mubr.msk.f32.vlgmr.msra.gmra.mrb[0].mxu1 %vm318_vm2, %v6632_v53  ;;  %5417 = vmatmul.mubr.msk.f32.vlgmr.msra.gmra.mrb[2].mxu0 %vm318_vm2, %v6632_v53  ;;  %v6700_v28 = vrot.slane %v6565_v11, %v760_v27 }
 0x22a   : > { %5861 = vmatpush3.bf16.msra.mxu1 %v5860_v50  ;;  %5427 = vmatprep.mubr.msk.f32.mxu1 %vm6428_vm0, %v6429_v6 }
 0x22b   : > { %5862 = vmatprep.subr.bf16.mxu1 %v6427_v3  ;;  %5432 = vmatprep.mubr.msk.f32.mxu0 %vm6428_vm0, %v6429_v6  ;;  %vm762_vm4 = vcmp.eq.s32.totalorder %v6700_v28, 1 }
 0x22e   : > { %5864 = vmatpush3.bf16.msra.mxu1 %v5863_v54 }
 0x22f   : > { %5871 = vmatprep.subr.bf16.mxu1 %v6427_v3 }
 0x231   : > { %5428 = vmatmul.mubr.msk.f32.vlgmr.msra.gmra.mrb[2].mxu1 %vm318_vm2, %v6632_v53 }
 0x232   : > { %5459 = vmatprep.mubr.msk.f32.mxu1 %vm6428_vm0, %v6429_v6  ;;  %5873 = vmatpush3.bf16.msra.mxu1 %v5872_v58 }
 0x233   : > { %5874 = vmatprep.subr.bf16.mxu1 %v6427_v3 }
 0x2fc   : > { %v496_v61 = vpop.f32.mrb[0].mxu1  ;;  %v587_v62 = vpop.f32.mrb[2].mxu0 }
 0x2fd   : > { %v497_v0 = vadd.f32 %v6652_v59, %v496_v61  ;;  %v588_v1 = vadd.f32 %v6657_v60, %v587_v62  ;;  %v5407_v2 = vpop.f32.mrb[1].mxu1  ;;  %v5418_v4 = vpop.f32.mrb[3].mxu0 }
 0x2ff   : > { %5431 = vmatpush3.xpose.msk.msra.mxu0 %vm680_vm3, %v588_v1  ;;  %v768_v5 = vmul.f32 %v6662_v63, %v497_v0  ;;  %v6732_v1 = vld [vmem:[%s7393_s6 + $0x7] ss:$0 sm:$0xff] }
 0x300   : > { %5435 = vmatprep.subr.mxu0 %v6429_v6 }
 0x301   : > { %v769_v7 = vsel %vm680_vm3, %v768_v5, 0.0 }
 0x302   : > { %770 = vadd.xlane.f32.xlu1 %v769_v7  ;;  %5433 = vmatmul.mubr.msk.f32.vlgmr.msra.gmra.mrb[4].mxu0 %vm680_vm3, %v497_v0 }
 0x303   : > { %5437 = vmatprep.mubr.msk.f32.mxu0 %vm6428_vm0, %v6429_v6 }
 0x304   : > { %v674_v9 = vpop.f32.mrb[2].mxu1 }
 0x305   : > { %v675_v10 = vadd.f32 %v6674_v8, %v674_v9  ;;  %v5429_v12 = vpop.f32.mrb[3].mxu1 }
 0x307   : > { %5436 = vmatpush3.msra.mxu0 %v675_v10 }
 0x308   : > { %5865 = vmatprep.subr.bf16.mxu0 %v6427_v3 }
 0x313   : > { %6113 = vrot.lane.b32.xlu1 %v6606_v22, %s6433_s15 }
 0x317   : > { %6118 = vrot.lane.b32.xlu1 %v6606_v22, %s6434_s19 }
 0x31b   : > { %966 = vrot.lane.b32.xlu1 %v6657_v60, %s6434_s19 }
 0x31f   : > { %880 = vrot.lane.b32.xlu1 %v6652_v59, %s6434_s19 }
 0x323   : > { %6123 = vrot.lane.b32.xlu1 %v6595_v20, %s6435_s20 }
 0x327   : > { %1203 = vrot.lane.b32.xlu1 %v6662_v63, %s6434_s19 }
 0x38f   : > { %v6692_v13 = vpop.xlane.xlu1 %770 }
 0x393   : > { %v6114_v15 = vpop.permute.xlu1 %6113 }
 0x394   : > { %v6116_v16 = vunpack.i.h.bf16 %v6114_v15  ;;  %v6115_v23 = vunpack.i.l.bf16 %v6114_v15 }
 0x396   : > { %v5875_v24 = vpack.c.bf16 %v6116_v16, %v6115_v23 }
 0x397   : > { %v6119_v34 = vpop.permute.xlu1 %6118 }
 0x398   : > { %5876 = vmatpush3.bf16.msra.mxu1 %v5875_v24  ;;  %v6121_v45 = vunpack.i.h.bf16 %v6119_v34  ;;  %v6120_v46 = vunpack.i.l.bf16 %v6119_v34 }
 0x399   : > { %5473 = vmatprep.subr.mxu1 %v6429_v6 }
 0x39a   : > { %v5869_v50 = vpack.c.bf16 %v6121_v45, %v6120_v46 }
 0x39b   : > { %5460 = vmatmul.mubr.msk.f32.vlgmr.msra.gmra.mrb[4].mxu1 %vm318_vm2, %v6632_v53  ;;  %v967_v37 = vpop.permute.xlu1 %966 }
 0x39c   : > { %5475 = vmatprep.mubr.msk.f32.mxu1 %vm6428_vm0, %v6429_v6 }
 0x39f   : > { %v881_v42 = vpop.permute.xlu1 %880 }
 0x3a3   : > { %v6124_v48 = vpop.permute.xlu1 %6123 }
 0x3a4   : > { %v6126_v51 = vunpack.i.h.bf16 %v6124_v48  ;;  %v6125_v52 = vunpack.i.l.bf16 %v6124_v48 }
 0x3a6   : > { %v5878_v55 = vpack.c.bf16 %v6126_v51, %v6125_v52 }
 0x3a7   : > { %v1204_v10 = vpop.permute.xlu1 %1203 }
 0x3d5   : > { %v753_v29 = vpop.f32.mrb[4].mxu0 }
 0x3d6   : > { %v763_v30 = vsel %vm762_vm4, -1e+30, %v753_v29  ;;  %v5434_v31 = vpop.f32.mrb[5].mxu0 }
 0x3d7   : > { %v772_v32 = vsel %vm680_vm3, %v763_v30, -inf }
 0x3d8   : > { %773 = vmax.xlane.f32.xlu0 %v772_v32 }
 0x3ee   : > { %6108 = vrot.lane.b32.xlu0 %v6595_v20, %s6434_s19 }
 0x3f2   : > { %6128 = vrot.lane.b32.xlu0 %v6606_v22, %s6435_s20 }
 0x465   : > { %v774_v33 = vpop.xlane.xlu0 %773 }
 0x466   : > { %v775_v11 = vmax.f32 %v774_v33, %v6692_v13 }
 0x468   : > { %v776_v35 = vsub.f32 %v763_v30, %v775_v11  ;;  %v779_v61 = vsub.f32 %v6692_v13, %v775_v11 }
 0x469   : > { %v6109_v38 = vpop.permute.xlu0 %6108 }
 0x46a   : > { %v777_v36 = vmul.f32 1.442695, %v776_v35  ;;  %v6111_v43 = vunpack.i.h.bf16 %v6109_v38  ;;  %v6110_v44 = vunpack.i.l.bf16 %v6109_v38  ;;  %v780_v62 = vmul.f32 1.442695, %v779_v61 }
 0x46c   : > { %6305 = vpow2.f32 %v777_v36  ;;  %v5866_v47 = vpack.c.bf16 %v6111_v43, %v6110_v44 }
 0x46d   : > { %v6129_v54 = vpop.permute.xlu0 %6128  ;;  %6307 = vpow2.f32 %v780_v62 }
 0x46e   : > { %v1035_v39 = vpop.f32.mrb[4].mxu1  ;;  %v6131_v56 = vunpack.i.h.bf16 %v6129_v54  ;;  %v6130_v57 = vunpack.i.l.bf16 %v6129_v54 }
 0x46f   : > { %v1036_v40 = vadd.f32 %v1035_v39, %v967_v37  ;;  %v5461_v41 = vpop.f32.mrb[5].mxu1 }
 0x470   : > { %v5881_v58 = vpack.c.bf16 %v6131_v56, %v6130_v57 }
 0x471   : > { %5474 = vmatpush3.xpose.msk.msra.mxu1 %vm680_vm3, %v1036_v40 }
 0x472   : > { %5478 = vmatprep.subr.mxu1 %v6429_v6 }
 0x476   : > { %v6306_v49 = vpop.eup %6305 }
 0x477   : > { %5438 = vmatmul.mubr.msk.f32.vlgmr.msra.gmra.mrb[6].mxu0 %vm680_vm3, %v6306_v49  ;;  %v6308_v0 = vpop.eup %6307  ;;  %v782_v33 = vsel %vm680_vm3, %v6306_v49, 0.0 }
 0x478   : > { %5867 = vmatpush3.bf16.msra.mxu0 %v5866_v47  ;;  %5448 = vmatprep.mubr.msk.f32.mxu0 %vm6428_vm0, %v6429_v6  ;;  %v791_v2 = vmul.f32 %v6308_v0, %v6732_v1 }
 0x479   : > { %5868 = vmatprep.subr.bf16.mxu0 %v6427_v3 }
 0x47c   : > { %5870 = vmatpush3.bf16.msra.mxu0 %v5869_v50 }
 0x47d   : > { %5877 = vmatprep.subr.bf16.mxu0 %v6427_v3 }
 0x47f   : > { %5449 = vmatmul.mubr.msk.f32.vlgmr.msra.gmra.mrb[8].mxu0 %vm318_vm2, %v6632_v53 }
 0x480   : > { %5879 = vmatpush3.bf16.msra.mxu0 %v5878_v55  ;;  %5470 = vmatprep.mubr.msk.f32.mxu0 %vm6428_vm0, %v6429_v6 }
 0x481   : > { %5880 = vmatprep.subr.bf16.mxu0 %v6427_v3 }
 0x484   : > { %5882 = vmatpush3.bf16.msra.mxu0 %v5881_v58 }
 0x485   : > { %5483 = vmatprep.subr.mxu0 %v6429_v6 }
 0x487   : > { %5471 = vmatmul.mubr.msk.f32.vlgmr.msra.gmra.mrb[10].mxu0 %vm318_vm2, %v6632_v53 }
 0x488   : > { %5485 = vmatprep.mubr.msk.f32.mxu0 %vm6428_vm0, %v6429_v6 }
 0x54a   : > { %v861_v4 = vpop.f32.mrb[6].mxu0 }
 0x54b   : > { %v862_v5 = vadd.f32 %v861_v4, %v791_v2  ;;  %v5439_v7 = vpop.f32.mrb[7].mxu0 }
 0x552   : > { %v949_v9 = vpop.f32.mrb[8].mxu0 }
 0x553   : > { %v950_v12 = vadd.f32 %v949_v9, %v881_v42  ;;  %v5450_v15 = vpop.f32.mrb[9].mxu0 }
 0x555   : > { %v1206_v16 = vmul.f32 %v1204_v10, %v950_v12  ;;  %5476 = vmatmul.mubr.msk.f32.vlgmr.msra.gmra.mrb[6].mxu1 %vm680_vm3, %v950_v12 }
 0x556   : > { %5480 = vmatprep.mubr.msk.f32.mxu1 %vm6428_vm0, %v6429_v6 }
 0x557   : > { %v1207_v13 = vsel %vm680_vm3, %v1206_v16, 0.0 }
 0x558   : > { %1208 = vadd.xlane.f32.xlu0 %v1207_v13 }
 0x55a   : > { %v1121_v23 = vpop.f32.mrb[10].mxu0 }
 0x55b   : > { %v5472_v24 = vpop.f32.mrb[11].mxu0 }
 0x56e   : > { %1052 = vrot.lane.b32.xlu0 %v6674_v8, %s6434_s19 }
 0x572   : > { %6133 = vrot.lane.b32.xlu0 %v6595_v20, %s7406_s9 }
 0x576   : > { %1306 = vrot.lane.b32.xlu0 %v6586_v18, %s7408_s8 }
 0x5e5   : > { %v1209_v25 = vpop.xlane.xlu0 %1208 }
 0x5e9   : > { %v1053_v26 = vpop.permute.xlu0 %1052 }
 0x5ea   : > { %v1122_v27 = vadd.f32 %v1121_v23, %v1053_v26 }
 0x5ec   : > { %5479 = vmatpush3.msra.mxu1 %v1122_v27 }
 0x5ed   : > { %5488 = vmatprep.subr.mxu1 %v6429_v6  ;;  %v6134_v34 = vpop.permute.xlu0 %6133 }
 0x5ee   : > { %v6136_v42 = vunpack.i.h.bf16 %v6134_v34  ;;  %v6135_v43 = vunpack.i.l.bf16 %v6134_v34 }
 0x5f0   : > { %v5890_v49 = vpack.c.bf16 %v6136_v42, %v6135_v43 }
 0x5f1   : > { %v1307_v35 = vpop.permute.xlu0 %1306 }
 0x5f2   : > { %5484 = vmatpush3.msra.mxu0 %v1307_v35 }
 0x5f3   : > { %5883 = vmatprep.subr.bf16.mxu0 %v6427_v3 }
 0x628   : > { %v1197_v29 = vpop.f32.mrb[6].mxu1 }
 0x629   : > { %v1201_v30 = vsel %vm762_vm4, -1e+30, %v1197_v29  ;;  %v5477_v31 = vpop.f32.mrb[7].mxu1 }
 0x62a   : > { %v1210_v32 = vsel %vm680_vm3, %v1201_v30, -inf }
 0x62b   : > { %1211 = vmax.xlane.f32.xlu1 %v1210_v32 }
 0x62f   : > { %783 = vadd.xlane.f32.xlu1 %v782_v33 }
 0x640   : > { %1383 = vrot.lane.b32.xlu1 %v6581_v17, %s7408_s8 }
 0x644   : > { %6138 = vrot.lane.b32.xlu1 %v6595_v20, %s7404_s16 }
 0x6b8   : > { %v1212_v11 = vpop.xlane.xlu1 %1211 }
 0x6b9   : > { %v1213_v36 = vmax.f32 %v1212_v11, %v1209_v25 }
 0x6bb   : > { %v1214_v37 = vsub.f32 %v1201_v30, %v1213_v36  ;;  %v1217_v17 = vsub.f32 %v1209_v25, %v1213_v36 }
 0x6bc   : > { %v784_v38 = vpop.xlane.xlu1 %783 }
 0x6bd   : > { %v1215_v39 = vmul.f32 1.442695, %v1214_v37  ;;  %v1218_v40 = vmul.f32 1.442695, %v1217_v17  ;;  %v785_v41 = vadd.f32 %v6308_v0, %v784_v38 }
 0x6bf   : > { %6309 = vpow2.f32 %v1215_v39 }
 0x6c0   : > { %6311 = vpow2.f32 %v1218_v40  ;;  %v1384_v44 = vpop.permute.xlu1 %1383 }
 0x6c1   : > { %6313 = vrcp.f32 %v785_v41 }
 0x6c4   : > { %v6139_v57 = vpop.permute.xlu1 %6138 }
 0x6c5   : > { %v6141_v2 = vunpack.i.h.bf16 %v6139_v57  ;;  %v6140_v4 = vunpack.i.l.bf16 %v6139_v57 }
 0x6c7   : > { %v5884_v24 = vpack.c.bf16 %v6141_v2, %v6140_v4 }
 0x6c9   : > { %v6310_v18 = vpop.eup %6309 }
 0x6ca   : > { %v6312_v45 = vpop.eup %6311  ;;  %5481 = vmatmul.mubr.msk.f32.vlgmr.msra.gmra.mrb[8].mxu1 %vm680_vm3, %v6310_v18  ;;  %v1220_v46 = vsel %vm680_vm3, %v6310_v18, 0.0 }
 0x6cb   : > { %v6314_v47 = vpop.eup %6313  ;;  %1221 = vadd.xlane.f32.xlu1 %v1220_v46  ;;  %v1225_v48 = vmul.f32 %v6312_v45, %v6732_v1  ;;  %5489 = vmatpush3.msra.mxu1 %v1384_v44 }
 0x6cc   : > { %5490 = vmatprep.mubr.msk.f32.mxu1 %vm6428_vm0, %v6429_v6  ;;  %v865_v50 = vmul.f32 %v6314_v47, %v862_v5  ;;  %5889 = vmatprep.subr.bf16.mxu1 %v6427_v3 }
 0x6cd   : > { %1227 = vrot.lane.b32.xlu0 %v1225_v48, %s6434_s19 }
 0x6ce   : > { %5491 = vmatmul.mubr.msk.f32.vlgmr.msra.gmra.mrb[10].mxu1 %vm680_vm3, %v865_v50 }
 0x6cf   : > { %5891 = vmatpush3.bf16.msra.mxu1 %v5890_v49  ;;  %5512 = vmatprep.mubr.msk.f32.mxu1 %vm6428_vm0, %v6429_v6 }
 0x6d0   : > { %5892 = vmatprep.subr.bf16.mxu1 %v6427_v3 }
 0x6d1   : > { %6143 = vrot.lane.b32.xlu0 %v6606_v22, %s7406_s9  ;;  %s7418_s9 = smov 40  }
 0x6d5   : > { %1556 = vrot.lane.b32.xlu0 %v6657_v60, %s7404_s16 }
 0x6d9   : > { %6153 = vrot.lane.b32.xlu0 %v6595_v20, %s7402_s17 }
 0x6dc   : > { %6148 = vrot.lane.b32.xlu1 %v6606_v22, %s7404_s16 }
 0x6dd   : > { %1791 = vrot.lane.b32.xlu0 %v6662_v63, %s7404_s16 }
 0x6e0   : > { %1471 = vrot.lane.b32.xlu1 %v6652_v59, %s7404_s16 }
 0x6e4   : > { %6158 = vrot.lane.b32.xlu1 %v6606_v22, %s7402_s17  ;;  %s7416_s17 = smov 72  }
 0x73f   : > { %v1228_v51 = vpop.permute.xlu0 %1227 }
 0x743   : > { %v6144_v52 = vpop.permute.xlu0 %6143 }
 0x744   : > { %v6146_v54 = vunpack.i.h.bf16 %v6144_v52  ;;  %v6145_v55 = vunpack.i.l.bf16 %v6144_v52 }
 0x746   : > { %v5893_v56 = vpack.c.bf16 %v6146_v54, %v6145_v55 }
 0x747   : > { %v1557_v0 = vpop.permute.xlu0 %1556 }
 0x748   : > { %5894 = vmatpush3.bf16.msra.mxu1 %v5893_v56 }
 0x749   : > { %5526 = vmatprep.subr.mxu1 %v6429_v6 }
 0x74b   : > { %5513 = vmatmul.mubr.msk.f32.vlgmr.msra.gmra.mrb[12].mxu1 %vm318_vm2, %v6632_v53  ;;  %v6154_v23 = vpop.permute.xlu0 %6153 }
 0x74c   : > { %5528 = vmatprep.mubr.msk.f32.mxu1 %vm6428_vm0, %v6429_v6  ;;  %v6156_v29 = vunpack.i.h.bf16 %v6154_v23  ;;  %v6155_v30 = vunpack.i.l.bf16 %v6154_v23 }
 0x74e   : > { %v5896_v32 = vpack.c.bf16 %v6156_v29, %v6155_v30 }
 0x74f   : > { %v1792_v41 = vpop.permute.xlu0 %1791 }
 0x758   : > { %v1222_v58 = vpop.xlane.xlu1 %1221 }
 0x759   : > { %v1223_v61 = vadd.f32 %v6312_v45, %v1222_v58 }
 0x75b   : > { %6315 = vrcp.f32 %v1223_v61 }
 0x75c   : > { %v6149_v62 = vpop.permute.xlu1 %6148 }
 0x75d   : > { %v6151_v15 = vunpack.i.h.bf16 %v6149_v62  ;;  %v6150_v16 = vunpack.i.l.bf16 %v6149_v62 }
 0x75f   : > { %v5887_v27 = vpack.c.bf16 %v6151_v15, %v6150_v16 }
 0x760   : > { %v1472_v10 = vpop.permute.xlu1 %1471 }
 0x764   : > { %v6159_v31 = vpop.permute.xlu1 %6158 }
 0x765   : > { %v6316_v12 = vpop.eup %6315  ;;  %v6161_v33 = vunpack.i.h.bf16 %v6159_v31  ;;  %v6160_v34 = vunpack.i.l.bf16 %v6159_v31 }
 0x767   : > { %v5899_v11 = vpack.c.bf16 %v6161_v33, %v6160_v34 }
 0x79d   : > { %v1299_v5 = vpop.f32.mrb[8].mxu1 }
 0x79e   : > { %v1300_v7 = vadd.f32 %v1299_v5, %v1228_v51  ;;  %v5482_v9 = vpop.f32.mrb[9].mxu1 }
 0x7a0   : > { %v1303_v13 = vmul.f32 %v6316_v12, %v1300_v7 }
 0x7a1   : > { %v1455_v25 = vpop.f32.mrb[10].mxu1 }
 0x7a2   : > { %5486 = vmatmul.mubr.msk.f32.vlgmr.msra.gmra.mrb[12].mxu0 %vm680_vm3, %v1303_v13  ;;  %v5492_v26 = vpop.f32.mrb[11].mxu1 }
 0x7a3   : > { %5885 = vmatpush3.bf16.msra.mxu0 %v5884_v24  ;;  %5501 = vmatprep.mubr.msk.f32.mxu0 %vm6428_vm0, %v6429_v6 }
 0x7a4   : > { %5886 = vmatprep.subr.bf16.mxu0 %v6427_v3 }
 0x7a7   : > { %5888 = vmatpush3.bf16.msra.mxu0 %v5887_v27 }
 0x7a8   : > { %5895 = vmatprep.subr.bf16.mxu0 %v6427_v3 }
 0x7aa   : > { %5502 = vmatmul.mubr.msk.f32.vlgmr.msra.gmra.mrb[14].mxu0 %vm318_vm2, %v6632_v53 }
 0x7ab   : > { %5897 = vmatpush3.bf16.msra.mxu0 %v5896_v32  ;;  %5523 = vmatprep.mubr.msk.f32.mxu0 %vm6428_vm0, %v6429_v6 }
 0x7ac   : > { %5898 = vmatprep.subr.bf16.mxu0 %v6427_v3 }
 0x7af   : > { %5900 = vmatpush3.bf16.msra.mxu0 %v5899_v11 }
 0x7b0   : > { %5536 = vmatprep.subr.mxu0 %v6429_v6 }
 0x7b2   : > { %5524 = vmatmul.mubr.msk.f32.vlgmr.msra.gmra.mrb[16].mxu0 %vm318_vm2, %v6632_v53 }
 0x7b3   : > { %5538 = vmatprep.mubr.msk.f32.mxu0 %vm6428_vm0, %v6429_v6 }
 0x81e   : > { %v1625_v35 = vpop.f32.mrb[12].mxu1 }
 0x81f   : > { %v1626_v36 = vadd.f32 %v1625_v35, %v1557_v0  ;;  %v5514_v37 = vpop.f32.mrb[13].mxu1 }
 0x821   : > { %5527 = vmatpush3.xpose.msk.msra.mxu1 %vm680_vm3, %v1626_v36 }
 0x822   : > { %5531 = vmatprep.subr.mxu1 %v6429_v6 }
 0x875   : > { %v1378_v17 = vpop.f32.mrb[12].mxu0 }
 0x876   : > { %v6802_v38 = vadd.f32 %v1455_v25, %v1378_v17  ;;  %v5487_v39 = vpop.f32.mrb[13].mxu0 }
 0x87d   : > { %v1540_v40 = vpop.f32.mrb[14].mxu0 }
 0x87e   : > { %v1541_v42 = vadd.f32 %v1540_v40, %v1472_v10  ;;  %v5503_v43 = vpop.f32.mrb[15].mxu0 }
 0x880   : > { %v1794_v44 = vmul.f32 %v1792_v41, %v1541_v42  ;;  %5529 = vmatmul.mubr.msk.f32.vlgmr.msra.gmra.mrb[14].mxu1 %vm680_vm3, %v1541_v42 }
 0x881   : > { %5533 = vmatprep.mubr.msk.f32.mxu1 %vm6428_vm0, %v6429_v6 }
 0x882   : > { %v1795_v18 = vsel %vm680_vm3, %v1794_v44, 0.0 }
 0x883   : > { %1796 = vadd.xlane.f32.xlu1 %v1795_v18 }
 0x885   : > { %v1710_v45 = vpop.f32.mrb[16].mxu0 }
 0x886   : > { %v5525_v46 = vpop.f32.mrb[17].mxu0 }
 0x910   : > { %v1797_v51 = vpop.xlane.xlu1 %1796 }
 0x953   : > { %v1786_v47 = vpop.f32.mrb[14].mxu1 }
 0x954   : > { %v1790_v48 = vsel %vm762_vm4, -1e+30, %v1786_v47  ;;  %v5530_v49 = vpop.f32.mrb[15].mxu1 }
 0x955   : > { %v1798_v50 = vsel %vm680_vm3, %v1790_v48, -inf }
 0x956   : > { %1799 = vmax.xlane.f32.xlu0 %v1798_v50 }
 0x96c   : > { %1641 = vrot.lane.b32.xlu0 %v6674_v8, %s7404_s16 }
 0x970   : > { %1894 = vrot.lane.b32.xlu0 %v6591_v19, %s7408_s8 }
 0x974   : > { %6168 = vrot.lane.b32.xlu0 %v6595_v20, %s7398_s18 }
 0x978   : > { %6178 = vrot.lane.b32.xlu0 %v6606_v22, %s7398_s18 }
 0x97c   : > { %1983 = vrot.lane.b32.xlu0 %v6652_v59, %s7398_s18 }
 0x980   : > { %6188 = vrot.lane.b32.xlu0 %v6606_v22, %s7396_s23 }
 0x9e3   : > { %v1800_v52 = vpop.xlane.xlu0 %1799 }
 0x9e4   : > { %v1801_v54 = vmax.f32 %v1800_v52, %v1797_v51 }
 0x9e6   : > { %v1802_v55 = vsub.f32 %v1790_v48, %v1801_v54  ;;  %v1805_v61 = vsub.f32 %v1797_v51, %v1801_v54 }
 0x9e7   : > { %v1642_v56 = vpop.permute.xlu0 %1641 }
 0x9e8   : > { %v1803_v19 = vmul.f32 1.442695, %v1802_v55  ;;  %v1711_v57 = vadd.f32 %v1710_v45, %v1642_v56  ;;  %v1806_v7 = vmul.f32 1.442695, %v1805_v61 }
 0x9ea   : > { %6317 = vpow2.f32 %v1803_v19  ;;  %5532 = vmatpush3.msra.mxu1 %v1711_v57 }
 0x9eb   : > { %v1895_v58 = vpop.permute.xlu0 %1894  ;;  %5901 = vmatprep.subr.bf16.mxu1 %v6427_v3  ;;  %6319 = vpow2.f32 %v1806_v7 }
 0x9ec   : > { %5537 = vmatpush3.msra.mxu0 %v1895_v58 }
 0x9ed   : > { %5907 = vmatprep.subr.bf16.mxu0 %v6427_v3 }
 0x9ef   : > { %v6169_v59 = vpop.permute.xlu0 %6168 }
 0x9f0   : > { %v6171_v62 = vunpack.i.h.bf16 %v6169_v59  ;;  %v6170_v0 = vunpack.i.l.bf16 %v6169_v59 }
 0x9f2   : > { %v5902_v2 = vpack.c.bf16 %v6171_v62, %v6170_v0 }
 0x9f3   : > { %v6179_v4 = vpop.permute.xlu0 %6178 }
 0x9f4   : > { %v6318_v5 = vpop.eup %6317  ;;  %v6181_v9 = vunpack.i.h.bf16 %v6179_v4  ;;  %v6180_v10 = vunpack.i.l.bf16 %v6179_v4 }
 0x9f5   : > { %5534 = vmatmul.mubr.msk.f32.vlgmr.msra.gmra.mrb[16].mxu1 %vm680_vm3, %v6318_v5  ;;  %v1808_v12 = vsel %vm680_vm3, %v6318_v5, 0.0  ;;  %v6320_v16 = vpop.eup %6319 }
 0x9f6   : > { %v5905_v15 = vpack.c.bf16 %v6181_v9, %v6180_v10  ;;  %5903 = vmatpush3.bf16.msra.mxu1 %v5902_v2  ;;  %1809 = vadd.xlane.f32.xlu1 %v1808_v12  ;;  %v1813_v13 = vmul.f32 %v6320_v16, %v6732_v1 }
 0x9f7   : > { %5904 = vmatprep.subr.bf16.mxu1 %v6427_v3  ;;  %5549 = vmatprep.mubr.msk.f32.mxu1 %vm6428_vm0, %v6429_v6  ;;  %v1984_v27 = vpop.permute.xlu0 %1983 }
 0x9fa   : > { %5906 = vmatpush3.bf16.msra.mxu1 %v5905_v15 }
 0x9fb   : > { %5913 = vmatprep.subr.bf16.mxu1 %v6427_v3  ;;  %v6189_v30 = vpop.permute.xlu0 %6188 }
 0x9fc   : > { %v6190_v34 = vunpack.i.l.bf16 %v6189_v30 }
 0x9fd   : > { %5550 = vmatmul.mubr.msk.f32.vlgmr.msra.gmra.mrb[18].mxu1 %vm318_vm2, %v6632_v53 }
 0x9fe   : > { %5571 = vmatprep.mubr.msk.f32.mxu1 %vm6428_vm0, %v6429_v6 }
 0xa07   : > { %1815 = vrot.lane.b32.xlu1 %v1813_v13, %s7404_s16  ;;  %s7414_s16 = smov 112  }
 0xa0b   : > { %6163 = vrot.lane.b32.xlu1 %v6595_v20, %s7400_s29 }
 0xa0f   : > { %6173 = vrot.lane.b32.xlu1 %v6606_v22, %s7400_s29  ;;  %v6191_v22 = vunpack.i.h.bf16 %v6189_v30  ;;  %s7413_s29 = smov 80  }
 0xa13   : > { %2068 = vrot.lane.b32.xlu1 %v6657_v60, %s7398_s18  ;;  %v5917_v60 = vpack.c.bf16 %v6191_v22, %v6190_v34 }
 0xa17   : > { %6183 = vrot.lane.b32.xlu1 %v6595_v20, %s7396_s23 }
 0xa1b   : > { %2303 = vrot.lane.b32.xlu1 %v6662_v63, %s7398_s18 }
 0xa83   : > { %v1810_v23 = vpop.xlane.xlu1 %1809 }
 0xa84   : > { %v1811_v20 = vadd.f32 %v6320_v16, %v1810_v23 }
 0xa86   : > { %6321 = vrcp.f32 %v1811_v20 }
 0xa87   : > { %v1816_v24 = vpop.permute.xlu1 %1815 }
 0xa8b   : > { %v6164_v25 = vpop.permute.xlu1 %6163 }
 0xa8c   : > { %v6166_v63 = vunpack.i.h.bf16 %v6164_v25  ;;  %v6165_v35 = vunpack.i.l.bf16 %v6164_v25 }
 0xa8e   : > { %v5908_v40 = vpack.c.bf16 %v6166_v63, %v6165_v35 }
 0xa8f   : > { %v6174_v26 = vpop.permute.xlu1 %6173 }
 0xa90   : > { %v6322_v39 = vpop.eup %6321  ;;  %v6176_v41 = vunpack.i.h.bf16 %v6174_v26  ;;  %v6175_v42 = vunpack.i.l.bf16 %v6174_v26 }
 0xa92   : > { %v5911_v44 = vpack.c.bf16 %v6176_v41, %v6175_v42 }
 0xa93   : > { %v2069_v29 = vpop.permute.xlu1 %2068 }
 0xa97   : > { %v6184_v31 = vpop.permute.xlu1 %6183 }
 0xa98   : > { %v6186_v32 = vunpack.i.h.bf16 %v6184_v31  ;;  %v6185_v33 = vunpack.i.l.bf16 %v6184_v31 }
 0xa9a   : > { %v5914_v11 = vpack.c.bf16 %v6186_v32, %v6185_v33  ;;  %v5114_v33 = vld [vmem:[%s7393_s6 + $0x8] ss:$0 sm:$0xff] }
 0xa9b   : > { %v2304_v45 = vpop.permute.xlu1 %2303 }
 0xa9c   : > { %5915 = vmatpush3.bf16.msra.mxu1 %v5914_v11 }
 0xa9d   : > { %5916 = vmatprep.subr.bf16.mxu1 %v6427_v3 }
 0xaa0   : > { %5918 = vmatpush3.bf16.msra.mxu1 %v5917_v60 }
 0xaa1   : > { %5584 = vmatprep.subr.mxu1 %v6429_v6 }
 0xaa3   : > { %5572 = vmatmul.mubr.msk.f32.vlgmr.msra.gmra.mrb[20].mxu1 %vm318_vm2, %v6632_v53 }
 0xaa4   : > { %5586 = vmatprep.mubr.msk.f32.mxu1 %vm6428_vm0, %v6429_v6 }
 0xac8   : > { %v1887_v36 = vpop.f32.mrb[16].mxu1 }
 0xac9   : > { %v1888_v37 = vadd.f32 %v1887_v36, %v1816_v24  ;;  %v5535_v17 = vpop.f32.mrb[17].mxu1 }
 0xacb   : > { %v1891_v43 = vmul.f32 %v6322_v39, %v1888_v37  ;;  %v2513_v37 = vld [vmem:[%s7391_s4 + $0x8] sm:$0xff] }
 0xacc   : > { %v2515_v39 = vld [vmem:[%s7391_s4 + $0x28] sm:$0xff] }
 0xacd   : > { %5539 = vmatmul.mubr.msk.f32.vlgmr.msra.gmra.mrb[18].mxu0 %vm680_vm3, %v1891_v43 }
 0xace   : > { %5909 = vmatpush3.bf16.msra.mxu0 %v5908_v40  ;;  %5560 = vmatprep.mubr.msk.f32.mxu0 %vm6428_vm0, %v6429_v6  ;;  %v2516_v40 = vld [vmem:[%s7391_s4 + $0x38] sm:$0xff] }
 0xacf   : > { %5910 = vmatprep.subr.bf16.mxu0 %v6427_v3  ;;  %v5923_v41 = vpack.c.bf16 %v2516_v40, %v2515_v39 }
 0xad0   : > { %v2052_v18 = vpop.f32.mrb[18].mxu1 }
 0xad1   : > { %v2053_v46 = vadd.f32 %v2052_v18, %v1984_v27  ;;  %v5551_v47 = vpop.f32.mrb[19].mxu1 }
 0xad2   : > { %5912 = vmatpush3.bf16.msra.mxu0 %v5911_v44  ;;  %v5116_v47 = vld [vmem:[%s7393_s6 + $0xa] ss:$0 sm:$0xff] }
 0xad3   : > { %v2306_v48 = vmul.f32 %v2304_v45, %v2053_v46  ;;  %5574 = vmatprep.subr.mxu0 %v6429_v6  ;;  %v5115_v45 = vld [vmem:[%s7393_s6 + $0x9] ss:$0 sm:$0xff] }
 0xad5   : > { %5561 = vmatmul.mubr.msk.f32.vlgmr.msra.gmra.mrb[20].mxu0 %vm318_vm2, %v6632_v53  ;;  %v2307_v49 = vsel %vm680_vm3, %v2306_v48, 0.0 }
 0xad6   : > { %2308 = vadd.xlane.f32.xlu0 %v2307_v49  ;;  %5576 = vmatprep.mubr.msk.f32.mxu0 %vm6428_vm0, %v6429_v6 }
 0xaec   : > { %2153 = vrot.lane.b32.xlu0 %v6674_v8, %s7398_s18 }
 0xaf0   : > { %2404 = vrot.lane.b32.xlu0 %v6600_v21, %s7408_s8  ;;  %s7417_s8 = smov 104  }
 0xb63   : > { %v2309_v56 = vpop.xlane.xlu0 %2308 }
 0xb67   : > { %v2154_v58 = vpop.permute.xlu0 %2153 }
 0xb6b   : > { %v2405_v16 = vpop.permute.xlu0 %2404 }
 0xb6c   : > { %5585 = vmatpush3.msra.mxu1 %v2405_v16 }
 0xb6d   : > { %5925 = vmatprep.subr.bf16.mxu1 %v6427_v3 }
 0xb76   : > { %v2222_v50 = vpop.f32.mrb[20].mxu1 }
 0xb77   : > { %v5573_v51 = vpop.f32.mrb[21].mxu1  ;;  %v2223_v59 = vadd.f32 %v2222_v50, %v2154_v58  ;;  %v2596_v50 = vld [vmem:[%s7392_s5] sm:$0xff]  ;;  %v2602_v58 = vld [vmem:[%s7392_s5 + $0x30] sm:$0xff] }
 0xb78   : > { %v2597_v51 = vld [vmem:[%s7392_s5 + $0x8] sm:$0xff] }
 0xba0   : > { %v1966_v52 = vpop.f32.mrb[18].mxu0 }
 0xba1   : > { %v1970_v54 = vadd.f32 %v1966_v52, %v6802_v38  ;;  %v5540_v55 = vpop.f32.mrb[19].mxu0  ;;  %v5926_v52 = vpack.c.bf16 %v2597_v51, %v2596_v50 }
 0xba2   : > { %v2599_v55 = vld [vmem:[%s7392_s5 + $0x18] sm:$0xff] }
 0xba8   : > { %v2137_v53 = vpop.f32.mrb[20].mxu0 }
 0xba9   : > { %v2138_v19 = vadd.f32 %v2137_v53, %v2069_v29  ;;  %v5562_v57 = vpop.f32.mrb[21].mxu0  ;;  %v2600_v53 = vld [vmem:[%s7392_s5 + $0x20] sm:$0xff] }
 0xbab   : > { %5575 = vmatpush3.xpose.msk.msra.mxu0 %vm680_vm3, %v2138_v19  ;;  %v2601_v19 = vld [vmem:[%s7392_s5 + $0x28] sm:$0xff] }
 0xbac   : > { %5579 = vmatprep.subr.mxu0 %v6429_v6  ;;  %v5932_v57 = vpack.c.bf16 %v2601_v19, %v2600_v53 }
 0xbae   : > { %5577 = vmatmul.mubr.msk.f32.vlgmr.msra.gmra.mrb[22].mxu0 %vm680_vm3, %v2053_v46 }
 0xbaf   : > { %5580 = vmatpush3.msra.mxu0 %v2223_v59  ;;  %5581 = vmatprep.mubr.msk.f32.mxu0 %vm6428_vm0, %v6429_v6  ;;  %v2603_v59 = vld [vmem:[%s7392_s5 + $0x38] sm:$0xff] }
 0xbb0   : > { %5919 = vmatprep.subr.bf16.mxu0 %v6427_v3 }
 0xc81   : > { %v2298_v21 = vpop.f32.mrb[22].mxu0 }
 0xc82   : > { %v2302_v8 = vsel %vm762_vm4, -1e+30, %v2298_v21  ;;  %v5578_v38 = vpop.f32.mrb[23].mxu0  ;;  %v5935_v21 = vpack.c.bf16 %v2603_v59, %v2602_v58 }
 0xc83   : > { %v2310_v61 = vsel %vm680_vm3, %v2302_v8, -inf }
 0xc84   : > { %2311 = vmax.xlane.f32.xlu1 %v2310_v61 }
 0xd11   : > { %v2312_v62 = vpop.xlane.xlu1 %2311 }
 0xd12   : > { %v2313_v0 = vmax.f32 %v2312_v62, %v2309_v56 }
 0xd14   : > { %v2314_v2 = vsub.f32 %v2302_v8, %v2313_v0  ;;  %v2317_v5 = vsub.f32 %v2309_v56, %v2313_v0  ;;  %v2517_v8 = vld [vmem:[%s7391_s4 + $0x48] ss:$0 sm:$0xff] }
 0xd16   : > { %v2315_v4 = vmul.f32 1.442695, %v2314_v2  ;;  %v2318_v9 = vmul.f32 1.442695, %v2317_v5 }
 0xd18   : > { %6323 = vpow2.f32 %v2315_v4 }
 0xd19   : > { %6325 = vpow2.f32 %v2318_v9  ;;  %v5118_v9 = vld [vmem:[%s7393_s6 + $0xb] ss:$0 sm:$0xff] }
 0xd22   : > { %v6324_v7 = vpop.eup %6323 }
 0xd23   : > { %5582 = vmatmul.mubr.msk.f32.vlgmr.msra.gmra.mrb[24].mxu0 %vm680_vm3, %v6324_v7  ;;  %v2320_v10 = vsel %vm680_vm3, %v6324_v7, 0.0  ;;  %v6326_v12 = vpop.eup %6325 }
 0xd24   : > { %2321 = vadd.xlane.f32.xlu1 %v2320_v10  ;;  %5597 = vmatprep.mubr.msk.f32.mxu0 %vm6428_vm0, %v6429_v6  ;;  %v2325_v15 = vmul.f32 %v6326_v12, %v6732_v1 }
 0xd35   : > { %2327 = vrot.lane.b32.xlu1 %v2325_v15, %s7398_s18  ;;  %s7412_s18 = smov 32  }
 0xdb1   : > { %v2322_v13 = vpop.xlane.xlu1 %2321 }
 0xdb2   : > { %v2323_v23 = vadd.f32 %v6326_v12, %v2322_v13 }
 0xdb4   : > { %6327 = vrcp.f32 %v2323_v23  ;;  %v6965_v23 = vld [vmem:[%s7391_s4 + $0x50] sm:$0xff] }
 0xdb5   : > { %v2328_v24 = vpop.permute.xlu1 %2327 }
 0xdbe   : > { %v6328_v29 = vpop.eup %6327 }
 0xdf6   : > { %v2399_v25 = vpop.f32.mrb[24].mxu0 }
 0xdf7   : > { %v2400_v26 = vadd.f32 %v2399_v25, %v2328_v24  ;;  %v5583_v27 = vpop.f32.mrb[25].mxu0  ;;  %v6970_v24 = vld [vmem:[%s7391_s4 + $0x60] sm:$0xff] }
 0xdf8   : > { %v6974_v25 = vpack.i.bf16 %v6970_v24, %v6965_v23  ;;  %v6986_v27 = vld [vmem:[%s7391_s4 + $0x80] sm:$0xff] }
 0xdf9   : > { %v2403_v30 = vmul.f32 %v6328_v29, %v2400_v26  ;;  %v6981_v26 = vld [vmem:[%s7391_s4 + $0x70] sm:$0xff] }
 0xdfa   : > { %v6992_v29 = vpack.i.bf16 %v6986_v27, %v6981_v26 }
 0xdfb   : > { %5587 = vmatmul.mubr.msk.f32.vlgmr.msra.gmra.mrb[22].mxu1 %vm680_vm3, %v2403_v30 }
 0xdfc   : > { %5616 = vmatprep.mubr.msk.f32.mxu1 %vm6428_vm0, %v6429_v6  ;;  %5927 = vmatpush3.bf16.msra.mxu1 %v5926_v52 }
 0xdfd   : > { %5928 = vmatprep.subr.bf16.mxu1 %v6427_v3 }
 0xece   : > { %v2476_v1 = vpop.f32.mrb[22].mxu1 }
 0xecf   : > { %v2480_v31 = vadd.f32 %v2476_v1, %v1970_v54  ;;  %v5588_v32 = vpop.f32.mrb[23].mxu1  ;;  %v2598_v54 = vld [vmem:[%s7392_s5 + $0x10] sm:$0xff] }
 0xed0   : > { %v5929_v56 = vpack.c.bf16 %v2599_v55, %v2598_v54  ;;  %v7035_v55 = vld [vmem:[%s7393_s6 + $0xe] ss:$0 sm:$0xff] }
 0xed1   : > { %v2481_v22 = vadd.f32 %v2480_v31, %v6574_v14  ;;  %v2514_v14 = vld [vmem:[%s7391_s4 + $0x18] sm:$0xff] }
 0xed2   : > { %v5920_v17 = vpack.c.bf16 %v2514_v14, %v2513_v37  ;;  %5930 = vmatpush3.bf16.msra.mxu1 %v5929_v56  ;;  %v5941_v14 = vpack.c.bf16 %v6986_v27, %v6981_v26  ;;  %v7040_v56 = vld [vmem:[%s7393_s6 + $0x10] ss:$0 sm:$0xff] }
 0xed3   : > { %v6891_v34 = vadd.f32 %v5114_v33, %v2481_v22  ;;  %5931 = vmatprep.subr.bf16.mxu1 %v6427_v3 }
 0xed4   : > { %5921 = vmatpush3.bf16.msra.mxu0 %v5920_v17 }
 0xed5   : > { %v2490_v11 = vsel %vm318_vm2, %v6891_v34, 0.0  ;;  %5922 = vmatprep.subr.bf16.mxu0 %v6427_v3 }
 0xed6   : > { %2491 = vadd.xlane.f32.xlu0 %v2490_v11  ;;  %5933 = vmatpush3.bf16.msra.mxu1 %v5932_v57  ;;  %v7045_v57 = vld [vmem:[%s7393_s6 + $0x11] ss:$0 sm:$0xff] }
 0xed7   : > { %5934 = vmatprep.subr.bf16.mxu1 %v6427_v3 }
 0xed8   : > { %5924 = vmatpush3.bf16.msra.mxu0 %v5923_v41 }
 0xed9   : > { %5937 = vmatprep.subr.bf16.mxu0 %v6427_v3 }
 0xeda   : > { %5936 = vmatpush3.bf16.msra.mxu1 %v5935_v21 }
 0xedb   : > { %5949 = vmatprep.subr.bf16.mxu1 %v6427_v3 }
 0xf63   : > { %v2492_v60 = vpop.xlane.xlu0 %2491 }
 0xf64   : > { %v2493_v20 = vmul.f32 0.03125, %v2492_v60 }
 0xf66   : > { %v2494_v63 = vsub.f32 %v6891_v34, %v2493_v20  ;;  %v5938_v20 = vpack.c.bf16 %v6970_v24, %v6965_v23 }
 0xf68   : > { %v2495_v35 = vmul.f32 %v2494_v63, %v2494_v63 }
 0xf6a   : > { %v2496_v36 = vsel %vm318_vm2, %v2495_v35, 0.0 }
 0xf6b   : > { %2497 = vadd.xlane.f32.xlu1 %v2496_v36 }
 0xf7c   : > { %6193 = vrot.lane.b32.xlu1 %v6974_v25, %s6431_s13 }
 0xf80   : > { %6203 = vrot.lane.b32.xlu1 %v6974_v25, %s6432_s14 }
 0xf84   : > { %6208 = vrot.lane.b32.xlu1 %v6992_v29, %s6432_s14 }
 0xf88   : > { %6218 = vrot.lane.b32.xlu1 %v6974_v25, %s6434_s19 }
 0xff8   : > { %v2498_v42 = vpop.xlane.xlu1 %2497 }
 0xff9   : > { %v2499_v43 = vmul.f32 0.03125, %v2498_v42 }
 0xffb   : > { %v2500_v44 = vadd.f32 1e-12, %v2499_v43  ;;  %v5120_v43 = vld [vmem:[%s7393_s6 + $0xc] ss:$0 sm:$0xff] }
 0xffc   : > { %v6194_v22 = vpop.permute.xlu1 %6193 }
 0xffd   : > { %6329 = vrsqrt.f32 %v2500_v44  ;;  %v6196_v44 = vunpack.i.h.bf16 %v6194_v22 }
0x1007   : > { %v6330_v18 = vpop.eup %6329 }
0x1008   : > { %v2502_v46 = vmul.f32 %v6330_v18, %v2494_v63  ;;  %v6195_v18 = vunpack.i.l.bf16 %v6194_v22 }
0x100a   : > { %v2507_v48 = vmul.f32 %v5115_v45, %v2502_v46 }
0x100c   : > { %v2512_v49 = vadd.f32 %v5116_v47, %v2507_v48  ;;  %v5121_v47 = vld [vmem:[%s7393_s6 + $0xd] ss:$0 sm:$0xff] }
0x100e   : > { %5598 = vmatmul.mubr.msk.f32.vlgmr.msra.gmra.mrb[26].mxu0 %vm318_vm2, %v2512_v49  ;;  %v5944_v49 = vpack.c.bf16 %v6196_v44, %v6195_v18 }
0x100f   : > { %5627 = vmatprep.mubr.msk.f32.mxu0 %vm6428_vm0, %v6429_v6  ;;  %5939 = vmatpush3.bf16.msra.mxu0 %v5938_v20 }
0x1010   : > { %5940 = vmatprep.subr.bf16.mxu0 %v6427_v3 }
0x1013   : > { %5942 = vmatpush3.bf16.msra.mxu0 %v5941_v14 }
0x1014   : > { %5943 = vmatprep.subr.bf16.mxu0 %v6427_v3 }
0x10e1   : > { %v2587_v38 = vpop.f32.mrb[26].mxu0 }
0x10e2   : > { %v2588_v61 = vadd.f32 %v2587_v38, %v2517_v8  ;;  %v5599_v62 = vpop.f32.mrb[27].mxu0 }
0x10e3   : > { %v7055_v62 = vld [vmem:[%s7393_s6 + $0xf] ss:$0 sm:$0xff] }
0x10e4   : > { %v2592_v0 = vmul.f32 0.70710677, %v2588_v61  ;;  %v2591_v4 = vmul.f32 0.5, %v2588_v61 }
0x10e6   : > { %6331 = verf.f32 %v2592_v0 }
0x10f0   : > { %v6332_v2 = vpop.eup %6331 }
0x10f1   : > { %v2594_v5 = vadd.f32 1.0, %v6332_v2 }
0x10f3   : > { %v2595_v7 = vmul.f32 %v2594_v5, %v2591_v4 }
0x10f5   : > { %5617 = vmatmul.mubr.msk.f32.vlgmr.msra.gmra.mrb[24].mxu1 %vm2609_vm5, %v2595_v7 }
0x10f6   : > { %5649 = vmatprep.mubr.msk.f32.mxu1 %vm6428_vm0, %v6429_v6 }
0x11c8   : > { %v2679_v10 = vpop.f32.mrb[24].mxu1 }
0x11c9   : > { %v2680_v12 = vadd.f32 %v5118_v9, %v2679_v10  ;;  %v5618_v15 = vpop.f32.mrb[25].mxu1 }
0x11cb   : > { %v6958_v16 = vadd.f32 %v2680_v12, %v6891_v34  ;;  %v6204_v34 = vpop.permute.xlu1 %6203 }
0x11cc   : > { %v6206_v11 = vunpack.i.h.bf16 %v6204_v34  ;;  %v6205_v60 = vunpack.i.l.bf16 %v6204_v34 }
0x11cd   : > { %v2686_v13 = vsel %vm318_vm2, %v6958_v16, 0.0 }
0x11ce   : > { %2687 = vadd.xlane.f32.xlu0 %v2686_v13  ;;  %v5950_v63 = vpack.c.bf16 %v6206_v11, %v6205_v60 }
0x11cf   : > { %v6209_v35 = vpop.permute.xlu1 %6208 }
0x11d0   : > { %v6211_v36 = vunpack.i.h.bf16 %v6209_v35  ;;  %v6210_v37 = vunpack.i.l.bf16 %v6209_v35  ;;  %5951 = vmatpush3.bf16.msra.mxu1 %v5950_v63 }
0x11d1   : > { %5952 = vmatprep.subr.bf16.mxu1 %v6427_v3 }
0x11d2   : > { %v5953_v17 = vpack.c.bf16 %v6211_v36, %v6210_v37 }
0x11d3   : > { %v6219_v5 = vpop.permute.xlu1 %6218 }
0x11d4   : > { %5954 = vmatpush3.bf16.msra.mxu1 %v5953_v17  ;;  %v6221_v7 = vunpack.i.h.bf16 %v6219_v5  ;;  %v6220_v9 = vunpack.i.l.bf16 %v6219_v5 }
0x11d5   : > { %5657 = vmatprep.subr.mxu1 %v6429_v6 }
0x11d6   : > { %v5956_v10 = vpack.c.bf16 %v6221_v7, %v6220_v9 }
0x125b   : > { %v2688_v30 = vpop.xlane.xlu0 %2687 }
0x125c   : > { %v2689_v1 = vmul.f32 0.03125, %v2688_v30 }
0x125e   : > { %v2690_v31 = vsub.f32 %v6958_v16, %v2689_v1 }
0x1260   : > { %v2691_v32 = vmul.f32 %v2690_v31, %v2690_v31 }
0x1262   : > { %v2692_v33 = vsel %vm318_vm2, %v2691_v32, 0.0 }
0x1263   : > { %2693 = vadd.xlane.f32.xlu0 %v2692_v33 }
0x1279   : > { %6198 = vrot.lane.b32.xlu0 %v6992_v29, %s6431_s13 }
0x12f0   : > { %v2694_v39 = vpop.xlane.xlu0 %2693 }
0x12f1   : > { %v2695_v40 = vmul.f32 0.03125, %v2694_v39 }
0x12f3   : > { %v2696_v41 = vadd.f32 1e-12, %v2695_v40 }
0x12f4   : > { %v6199_v46 = vpop.permute.xlu0 %6198 }
0x12f5   : > { %6333 = vrsqrt.f32 %v2696_v41  ;;  %v6201_v50 = vunpack.i.h.bf16 %v6199_v46  ;;  %v6200_v51 = vunpack.i.l.bf16 %v6199_v46 }
0x12f7   : > { %v5947_v54 = vpack.c.bf16 %v6201_v50, %v6200_v51 }
0x12ff   : > { %v6334_v42 = vpop.eup %6333 }
0x1300   : > { %v2698_v45 = vmul.f32 %v6334_v42, %v2690_v31 }
0x1302   : > { %v2703_v48 = vmul.f32 %v5120_v43, %v2698_v45 }
0x1304   : > { %v7016_v52 = vadd.f32 %v5121_v47, %v2703_v48 }
0x1306   : > { %5628 = vmatmul.mubr.msk.f32.vlgmr.msra.gmra.mrb[28].mxu0 %vm318_vm2, %v7016_v52  ;;  %5650 = vmatmul.mubr.msk.f32.vlgmr.msra.gmra.mrb[26].mxu1 %vm318_vm2, %v7016_v52 }
0x1307   : > { %5945 = vmatpush3.bf16.msra.mxu0 %v5944_v49  ;;  %5638 = vmatprep.mubr.msk.f32.mxu0 %vm6428_vm0, %v6429_v6 }
0x1308   : > { %5946 = vmatprep.subr.bf16.mxu0 %v6427_v3  ;;  %5659 = vmatprep.mubr.msk.f32.mxu1 %vm6428_vm0, %v6429_v6 }
0x130b   : > { %5948 = vmatpush3.bf16.msra.mxu0 %v5947_v54 }
0x130c   : > { %5652 = vmatprep.subr.mxu0 %v6429_v6 }
0x130e   : > { %5639 = vmatmul.mubr.msk.f32.vlgmr.msra.gmra.mrb[30].mxu0 %vm318_vm2, %v7016_v52 }
0x130f   : > { %5654 = vmatprep.mubr.msk.f32.mxu0 %vm6428_vm0, %v6429_v6 }
0x13d9   : > { %v2788_v53 = vpop.f32.mrb[28].mxu0  ;;  %v2966_v19 = vpop.f32.mrb[26].mxu1 }
0x13da   : > { %v2789_v58 = vadd.f32 %v7035_v55, %v2788_v53  ;;  %v2967_v59 = vadd.f32 %v7040_v56, %v2966_v19  ;;  %v5629_v21 = vpop.f32.mrb[29].mxu0  ;;  %v5651_v8 = vpop.f32.mrb[27].mxu1 }
0x13db   : > { %v7108_v8 = vld [vmem:[%s7393_s6 + $0x12] ss:$0 sm:$0xff] }
0x13dc   : > { %5658 = vmatpush3.msra.mxu1 %v2967_v59  ;;  %v3053_v38 = vmul.f32 %v7045_v57, %v2789_v58 }
0x13dd   : > { %5961 = vmatprep.subr.bf16.mxu1 %v6427_v3 }
0x13de   : > { %v3054_v61 = vsel %vm680_vm3, %v3053_v38, 0.0 }
0x13df   : > { %3055 = vadd.xlane.f32.xlu0 %v3054_v61 }
0x13e1   : > { %v2879_v0 = vpop.f32.mrb[30].mxu0 }
0x13e2   : > { %v2880_v2 = vadd.f32 %v7055_v62, %v2879_v0  ;;  %v5640_v4 = vpop.f32.mrb[31].mxu0 }
0x13e4   : > { %5653 = vmatpush3.xpose.msk.msra.mxu0 %vm680_vm3, %v2880_v2 }
0x13e5   : > { %5955 = vmatprep.subr.bf16.mxu0 %v6427_v3 }
0x13e7   : > { %5655 = vmatmul.mubr.msk.f32.vlgmr.msra.gmra.mrb[32].mxu0 %vm680_vm3, %v2789_v58 }
0x13e8   : > { %5670 = vmatprep.mubr.msk.f32.mxu0 %vm6428_vm0, %v6429_v6  ;;  %5957 = vmatpush3.bf16.msra.mxu0 %v5956_v10 }
0x13e9   : > { %5958 = vmatprep.subr.bf16.mxu0 %v6427_v3 }
0x13f5   : > { %6213 = vrot.lane.b32.xlu0 %v6974_v25, %s6433_s15 }
0x13f9   : > { %6223 = vrot.lane.b32.xlu0 %v6992_v29, %s6433_s15  ;;  %s7419_s15 = sshll.u32 %s6552_s21, 3  ;;  %s291_s21 = sand.u32 1, %s6417_s25  }
0x13fd   : > { %3251 = vrot.lane.b32.xlu0 %v7055_v62, %s6434_s19 }
0x1401   : > { %6233 = vrot.lane.b32.xlu0 %v6974_v25, %s6435_s20 }
0x1405   : > { %3488 = vrot.lane.b32.xlu0 %v7045_v57, %s6434_s19 }
0x146c   : > { %v3056_v1 = vpop.xlane.xlu0 %3055 }
0x1470   : > { %v6214_v31 = vpop.permute.xlu0 %6213 }
0x1471   : > { %v6216_v41 = vunpack.i.h.bf16 %v6214_v31  ;;  %v6215_v42 = vunpack.i.l.bf16 %v6214_v31 }
0x1473   : > { %v5962_v45 = vpack.c.bf16 %v6216_v41, %v6215_v42 }
0x1474   : > { %v6224_v32 = vpop.permute.xlu0 %6223 }
0x1475   : > { %v6226_v46 = vunpack.i.h.bf16 %v6224_v32  ;;  %v6225_v47 = vunpack.i.l.bf16 %v6224_v32 }
0x1477   : > { %v5965_v50 = vpack.c.bf16 %v6226_v46, %v6225_v47 }
0x1478   : > { %v7083_v33 = vpop.permute.xlu0 %3251 }
0x147c   : > { %v6234_v11 = vpop.permute.xlu0 %6233 }
0x147d   : > { %v6236_v63 = vunpack.i.h.bf16 %v6234_v11  ;;  %v6235_v14 = vunpack.i.l.bf16 %v6234_v11 }
0x147f   : > { %v5968_v40 = vpack.c.bf16 %v6236_v63, %v6235_v14 }
0x1480   : > { %v3489_v19 = vpop.permute.xlu0 %3488 }
0x14ba   : > { %v3044_v12 = vpop.f32.mrb[32].mxu0 }
0x14bb   : > { %v3048_v15 = vsel %vm762_vm4, -1e+30, %v3044_v12  ;;  %v5656_v13 = vpop.f32.mrb[33].mxu0 }
0x14bc   : > { %v3057_v30 = vsel %vm680_vm3, %v3048_v15, -inf }
0x14bd   : > { %3058 = vmax.xlane.f32.xlu1 %v3057_v30 }
0x14ce   : > { %6228 = vrot.lane.b32.xlu1 %v6992_v29, %s6434_s19 }
0x14d2   : > { %3165 = vrot.lane.b32.xlu1 %v7035_v55, %s6434_s19 }
0x14d6   : > { %6238 = vrot.lane.b32.xlu1 %v6992_v29, %s6435_s20  ;;  %s7344_s20 = scalar_lea.hbm %s7394_s7, %s5182_s22 }
0x154a   : > { %v3059_v22 = vpop.xlane.xlu1 %3058 }
0x154b   : > { %v3060_v34 = vmax.f32 %v3059_v22, %v3056_v1 }
0x154d   : > { %v3061_v60 = vsub.f32 %v3048_v15, %v3060_v34  ;;  %v3064_v51 = vsub.f32 %v3056_v1, %v3060_v34 }
0x154e   : > { %v6229_v20 = vpop.permute.xlu1 %6228 }
0x154f   : > { %v3062_v35 = vmul.f32 1.442695, %v3061_v60  ;;  %v6231_v36 = vunpack.i.h.bf16 %v6229_v20  ;;  %v6230_v37 = vunpack.i.l.bf16 %v6229_v20  ;;  %v3065_v54 = vmul.f32 1.442695, %v3064_v51 }
0x1551   : > { %6335 = vpow2.f32 %v3062_v35  ;;  %v5959_v17 = vpack.c.bf16 %v6231_v36, %v6230_v37 }
0x1552   : > { %v3166_v39 = vpop.permute.xlu1 %3165  ;;  %6337 = vpow2.f32 %v3065_v54 }
0x1553   : > { %5960 = vmatpush3.bf16.msra.mxu0 %v5959_v17 }
0x1554   : > { %5967 = vmatprep.subr.bf16.mxu0 %v6427_v3 }
0x1556   : > { %v6239_v43 = vpop.permute.xlu1 %6238  ;;  %5671 = vmatmul.mubr.msk.f32.vlgmr.msra.gmra.mrb[34].mxu0 %vm318_vm2, %v7016_v52 }
0x1557   : > { %v6241_v44 = vunpack.i.h.bf16 %v6239_v43  ;;  %v6240_v18 = vunpack.i.l.bf16 %v6239_v43  ;;  %5969 = vmatpush3.bf16.msra.mxu0 %v5968_v40  ;;  %5692 = vmatprep.mubr.msk.f32.mxu0 %vm6428_vm0, %v6429_v6 }
0x1558   : > { %5970 = vmatprep.subr.bf16.mxu0 %v6427_v3 }
0x1559   : > { %v5971_v48 = vpack.c.bf16 %v6241_v44, %v6240_v18 }
0x155b   : > { %v6336_v49 = vpop.eup %6335  ;;  %5972 = vmatpush3.bf16.msra.mxu0 %v5971_v48 }
0x155c   : > { %5660 = vmatmul.mubr.msk.f32.vlgmr.msra.gmra.mrb[28].mxu1 %vm680_vm3, %v6336_v49  ;;  %5705 = vmatprep.subr.mxu0 %v6429_v6  ;;  %v6338_v21 = vpop.eup %6337  ;;  %v3067_v10 = vsel %vm680_vm3, %v6336_v49, 0.0 }
0x155d   : > { %5963 = vmatpush3.bf16.msra.mxu1 %v5962_v45  ;;  %5681 = vmatprep.mubr.msk.f32.mxu1 %vm6428_vm0, %v6429_v6  ;;  %v3076_v61 = vmul.f32 %v6338_v21, %v7108_v8 }
0x155e   : > { %5693 = vmatmul.mubr.msk.f32.vlgmr.msra.gmra.mrb[36].mxu0 %vm318_vm2, %v7016_v52  ;;  %5964 = vmatprep.subr.bf16.mxu1 %v6427_v3 }
0x155f   : > { %5707 = vmatprep.mubr.msk.f32.mxu0 %vm6428_vm0, %v6429_v6 }
0x1561   : > { %5966 = vmatpush3.bf16.msra.mxu1 %v5965_v50 }
0x1562   : > { %5695 = vmatprep.subr.mxu1 %v6429_v6 }
0x1564   : > { %5682 = vmatmul.mubr.msk.f32.vlgmr.msra.gmra.mrb[30].mxu1 %vm318_vm2, %v7016_v52 }
0x1565   : > { %5697 = vmatprep.mubr.msk.f32.mxu1 %vm6428_vm0, %v6429_v6 }
0x1629   : > { %v3234_v53 = vpop.f32.mrb[34].mxu0 }
0x162a   : > { %v3235_v58 = vadd.f32 %v3234_v53, %v3166_v39  ;;  %v5672_v59 = vpop.f32.mrb[35].mxu0 }
0x162c   : > { %v3491_v38 = vmul.f32 %v3489_v19, %v3235_v58 }
0x162e   : > { %v3492_v0 = vsel %vm680_vm3, %v3491_v38, 0.0 }
0x162f   : > { %v3146_v2 = vpop.f32.mrb[28].mxu1  ;;  %3493 = vadd.xlane.f32.xlu1 %v3492_v0 }
0x1630   : > { %v3147_v4 = vadd.f32 %v3146_v2, %v3076_v61  ;;  %v5661_v5 = vpop.f32.mrb[29].mxu1 }
0x1631   : > { %v3406_v7 = vpop.f32.mrb[36].mxu0 }
0x1632   : > { %v5694_v9 = vpop.f32.mrb[37].mxu0 }
0x1633   : > { %3068 = vadd.xlane.f32.xlu1 %v3067_v10 }
0x1637   : > { %v3320_v12 = vpop.f32.mrb[30].mxu1 }
0x1638   : > { %v3321_v15 = vadd.f32 %v3320_v12, %v7083_v33  ;;  %v5683_v13 = vpop.f32.mrb[31].mxu1 }
0x163a   : > { %5696 = vmatpush3.xpose.msk.msra.mxu1 %vm680_vm3, %v3321_v15 }
0x163b   : > { %5700 = vmatprep.subr.mxu1 %v6429_v6 }
0x163d   : > { %5698 = vmatmul.mubr.msk.f32.vlgmr.msra.gmra.mrb[32].mxu1 %vm680_vm3, %v3235_v58 }
0x163e   : > { %5702 = vmatprep.mubr.msk.f32.mxu1 %vm6428_vm0, %v6429_v6 }
0x1644   : > { %3668 = vrot.lane.b32.xlu1 %v6965_v23, %s7412_s18 }
0x1648   : > { %3591 = vrot.lane.b32.xlu1 %v6970_v24, %s7412_s18 }
0x16bc   : > { %v3494_v30 = vpop.xlane.xlu1 %3493 }
0x16c0   : > { %v3069_v1 = vpop.xlane.xlu1 %3068 }
0x16c1   : > { %v3070_v31 = vadd.f32 %v6338_v21, %v3069_v1 }
0x16c3   : > { %6339 = vrcp.f32 %v3070_v31 }
0x16c4   : > { %v3669_v35 = vpop.permute.xlu1 %3668 }
0x16c8   : > { %v3592_v39 = vpop.permute.xlu1 %3591 }
0x16c9   : > { %5706 = vmatpush3.msra.mxu0 %v3592_v39 }
0x16ca   : > { %5973 = vmatprep.subr.bf16.mxu0 %v6427_v3 }
0x16cd   : > { %v6340_v32 = vpop.eup %6339 }
0x16ce   : > { %v3150_v33 = vmul.f32 %v6340_v32, %v3147_v4 }
0x1710   : > { %v3482_v22 = vpop.f32.mrb[32].mxu1 }
0x1711   : > { %v3486_v34 = vsel %vm762_vm4, -1e+30, %v3482_v22  ;;  %v5699_v11 = vpop.f32.mrb[33].mxu1 }
0x1712   : > { %v3495_v60 = vsel %vm680_vm3, %v3486_v34, -inf }
0x1713   : > { %3496 = vmax.xlane.f32.xlu0 %v3495_v60 }
0x1729   : > { %3337 = vrot.lane.b32.xlu0 %v7040_v56, %s6434_s19 }
0x172d   : > { %6243 = vrot.lane.b32.xlu0 %v6974_v25, %s7413_s29 }
0x17a0   : > { %v3497_v23 = vpop.xlane.xlu0 %3496 }
0x17a1   : > { %v3498_v24 = vmax.f32 %v3497_v23, %v3494_v30 }
0x17a3   : > { %v3499_v20 = vsub.f32 %v3486_v34, %v3498_v24  ;;  %v3502_v63 = vsub.f32 %v3494_v30, %v3498_v24 }
0x17a4   : > { %v3338_v36 = vpop.permute.xlu0 %3337 }
0x17a5   : > { %v3500_v37 = vmul.f32 1.442695, %v3499_v20  ;;  %v3503_v14 = vmul.f32 1.442695, %v3502_v63  ;;  %v3407_v17 = vadd.f32 %v3406_v7, %v3338_v36 }
0x17a7   : > { %6341 = vpow2.f32 %v3500_v37  ;;  %5701 = vmatpush3.msra.mxu1 %v3407_v17 }
0x17a8   : > { %6343 = vpow2.f32 %v3503_v14  ;;  %5710 = vmatprep.subr.mxu1 %v6429_v6  ;;  %v6244_v40 = vpop.permute.xlu0 %6243 }
0x17a9   : > { %v6246_v41 = vunpack.i.h.bf16 %v6244_v40  ;;  %v6245_v42 = vunpack.i.l.bf16 %v6244_v40 }
0x17ab   : > { %v5980_v46 = vpack.c.bf16 %v6246_v41, %v6245_v42 }
0x17b1   : > { %v6342_v43 = vpop.eup %6341 }
0x17b2   : > { %v6344_v44 = vpop.eup %6343  ;;  %5703 = vmatmul.mubr.msk.f32.vlgmr.msra.gmra.mrb[34].mxu1 %vm680_vm3, %v6342_v43  ;;  %v3505_v18 = vsel %vm680_vm3, %v6342_v43, 0.0 }
0x17b3   : > { %3506 = vadd.xlane.f32.xlu1 %v3505_v18  ;;  %v3510_v45 = vmul.f32 %v6344_v44, %v7108_v8  ;;  %5711 = vmatpush3.msra.mxu1 %v3669_v35 }
0x17b4   : > { %5712 = vmatprep.mubr.msk.f32.mxu1 %vm6428_vm0, %v6429_v6  ;;  %5979 = vmatprep.subr.bf16.mxu1 %v6427_v3 }
0x17b5   : > { %3512 = vrot.lane.b32.xlu0 %v3510_v45, %s6434_s19  ;;  %s7415_s19 = smov 48  }
0x17b6   : > { %5713 = vmatmul.mubr.msk.f32.vlgmr.msra.gmra.mrb[36].mxu1 %vm680_vm3, %v3150_v33 }
0x17b7   : > { %5981 = vmatpush3.bf16.msra.mxu1 %v5980_v46  ;;  %5734 = vmatprep.mubr.msk.f32.mxu1 %vm6428_vm0, %v6429_v6 }
0x17b8   : > { %5982 = vmatprep.subr.bf16.mxu1 %v6427_v3 }
0x17b9   : > { %6248 = vrot.lane.b32.xlu0 %v6974_v25, %s7414_s16 }
0x17bd   : > { %6258 = vrot.lane.b32.xlu0 %v6992_v29, %s7414_s16 }
0x17c1   : > { %3756 = vrot.lane.b32.xlu0 %v7035_v55, %s7414_s16 }
0x17c4   : > { %6253 = vrot.lane.b32.xlu1 %v6992_v29, %s7413_s29  ;;  %s301_s29 = scalar_lea.vmem %s7388_s1, %s7419_s15 }
0x17c5   : > { %6268 = vrot.lane.b32.xlu0 %v6992_v29, %s7415_s19 }
0x17c8   : > { %3841 = vrot.lane.b32.xlu1 %v7055_v62, %s7414_s16 }
0x17cc   : > { %6263 = vrot.lane.b32.xlu1 %v6974_v25, %s7415_s19 }
0x17d0   : > { %4076 = vrot.lane.b32.xlu1 %v7045_v57, %s7414_s16 }
0x1827   : > { %v3513_v54 = vpop.permute.xlu0 %3512 }
0x182b   : > { %v6249_v19 = vpop.permute.xlu0 %6248 }
0x182c   : > { %v6251_v21 = vunpack.i.h.bf16 %v6249_v19  ;;  %v6250_v38 = vunpack.i.l.bf16 %v6249_v19 }
0x182e   : > { %v5974_v7 = vpack.c.bf16 %v6251_v21, %v6250_v38 }
0x182f   : > { %v6259_v58 = vpop.permute.xlu0 %6258 }
0x1830   : > { %v6261_v9 = vunpack.i.h.bf16 %v6259_v58  ;;  %v6260_v10 = vunpack.i.l.bf16 %v6259_v58 }
0x1832   : > { %v5977_v1 = vpack.c.bf16 %v6261_v9, %v6260_v10 }
0x1833   : > { %v3757_v4 = vpop.permute.xlu0 %3756 }
0x1837   : > { %v6269_v33 = vpop.permute.xlu0 %6268 }
0x1838   : > { %v6271_v34 = vunpack.i.h.bf16 %v6269_v33  ;;  %v6270_v11 = vunpack.i.l.bf16 %v6269_v33 }
0x183a   : > { %v5989_v60 = vpack.c.bf16 %v6271_v34, %v6270_v11 }
0x1840   : > { %v3507_v47 = vpop.xlane.xlu1 %3506 }
0x1841   : > { %v3508_v53 = vadd.f32 %v6344_v44, %v3507_v47 }
0x1843   : > { %6345 = vrcp.f32 %v3508_v53 }
0x1844   : > { %v6254_v48 = vpop.permute.xlu1 %6253 }
0x1845   : > { %v6256_v49 = vunpack.i.h.bf16 %v6254_v48  ;;  %v6255_v50 = vunpack.i.l.bf16 %v6254_v48 }
0x1847   : > { %v5983_v51 = vpack.c.bf16 %v6256_v49, %v6255_v50 }
0x1848   : > { %v3842_v59 = vpop.permute.xlu1 %3841 }
0x1849   : > { %5984 = vmatpush3.bf16.msra.mxu1 %v5983_v51 }
0x184a   : > { %5748 = vmatprep.subr.mxu1 %v6429_v6 }
0x184c   : > { %5735 = vmatmul.mubr.msk.f32.vlgmr.msra.gmra.mrb[38].mxu1 %vm318_vm2, %v7016_v52  ;;  %v6264_v15 = vpop.permute.xlu1 %6263 }
0x184d   : > { %5750 = vmatprep.mubr.msk.f32.mxu1 %vm6428_vm0, %v6429_v6  ;;  %v6346_v5 = vpop.eup %6345  ;;  %v6266_v31 = vunpack.i.h.bf16 %v6264_v15  ;;  %v6265_v32 = vunpack.i.l.bf16 %v6264_v15 }
0x184f   : > { %v5986_v22 = vpack.c.bf16 %v6266_v31, %v6265_v32 }
0x1850   : > { %v4077_v14 = vpop.permute.xlu1 %4076 }
0x1885   : > { %v3584_v61 = vpop.f32.mrb[34].mxu1 }
0x1886   : > { %v3585_v0 = vadd.f32 %v3584_v61, %v3513_v54  ;;  %v5704_v2 = vpop.f32.mrb[35].mxu1 }
0x1888   : > { %v3588_v12 = vmul.f32 %v6346_v5, %v3585_v0 }
0x1889   : > { %v3740_v13 = vpop.f32.mrb[36].mxu1 }
0x188a   : > { %5708 = vmatmul.mubr.msk.f32.vlgmr.msra.gmra.mrb[38].mxu0 %vm680_vm3, %v3588_v12  ;;  %v5714_v30 = vpop.f32.mrb[37].mxu1 }
0x188b   : > { %5975 = vmatpush3.bf16.msra.mxu0 %v5974_v7  ;;  %5723 = vmatprep.mubr.msk.f32.mxu0 %vm6428_vm0, %v6429_v6 }
0x188c   : > { %5976 = vmatprep.subr.bf16.mxu0 %v6427_v3 }
0x188f   : > { %5978 = vmatpush3.bf16.msra.mxu0 %v5977_v1 }
0x1890   : > { %5985 = vmatprep.subr.bf16.mxu0 %v6427_v3 }
0x1892   : > { %5724 = vmatmul.mubr.msk.f32.vlgmr.msra.gmra.mrb[40].mxu0 %vm318_vm2, %v7016_v52 }
0x1893   : > { %5987 = vmatpush3.bf16.msra.mxu0 %v5986_v22  ;;  %5745 = vmatprep.mubr.msk.f32.mxu0 %vm6428_vm0, %v6429_v6 }
0x1894   : > { %5988 = vmatprep.subr.bf16.mxu0 %v6427_v3 }
0x1897   : > { %5990 = vmatpush3.bf16.msra.mxu0 %v5989_v60 }
0x1898   : > { %5758 = vmatprep.subr.mxu0 %v6429_v6 }
0x189a   : > { %5746 = vmatmul.mubr.msk.f32.vlgmr.msra.gmra.mrb[42].mxu0 %vm318_vm2, %v7016_v52 }
0x189b   : > { %5760 = vmatprep.mubr.msk.f32.mxu0 %vm6428_vm0, %v6429_v6 }
0x191f   : > { %v3910_v23 = vpop.f32.mrb[38].mxu1 }
0x1920   : > { %v3911_v24 = vadd.f32 %v3910_v23, %v3842_v59  ;;  %v5736_v20 = vpop.f32.mrb[39].mxu1 }
0x1922   : > { %5749 = vmatpush3.xpose.msk.msra.mxu1 %vm680_vm3, %v3911_v24 }
0x1923   : > { %5753 = vmatprep.subr.mxu1 %v6429_v6 }
0x195d   : > { %v3663_v63 = vpop.f32.mrb[38].mxu0 }
0x195e   : > { %v7181_v35 = vadd.f32 %v3740_v13, %v3663_v63  ;;  %v5709_v36 = vpop.f32.mrb[39].mxu0 }
0x1965   : > { %v3825_v37 = vpop.f32.mrb[40].mxu0 }
0x1966   : > { %v3826_v17 = vadd.f32 %v3825_v37, %v3757_v4  ;;  %v5725_v39 = vpop.f32.mrb[41].mxu0 }
0x1968   : > { %v4079_v40 = vmul.f32 %v4077_v14, %v3826_v17  ;;  %5751 = vmatmul.mubr.msk.f32.vlgmr.msra.gmra.mrb[40].mxu1 %vm680_vm3, %v3826_v17 }
0x1969   : > { %5755 = vmatprep.mubr.msk.f32.mxu1 %vm6428_vm0, %v6429_v6 }
0x196a   : > { %v4080_v41 = vsel %vm680_vm3, %v4079_v40, 0.0 }
0x196b   : > { %4081 = vadd.xlane.f32.xlu0 %v4080_v41 }
0x196d   : > { %v3995_v42 = vpop.f32.mrb[42].mxu0 }
0x196e   : > { %v5747_v43 = vpop.f32.mrb[43].mxu0 }
0x1981   : > { %3926 = vrot.lane.b32.xlu0 %v7040_v56, %s7414_s16 }
0x1985   : > { %4179 = vrot.lane.b32.xlu0 %v6981_v26, %s7412_s18 }
0x1989   : > { %6273 = vrot.lane.b32.xlu0 %v6974_v25, %s7416_s17 }
0x198d   : > { %6283 = vrot.lane.b32.xlu0 %v6992_v29, %s7416_s17  ;;  %s5074_s17 = sshll.u32 %s291_s21, 3 }
0x198e   : > { %s293_s23 = scalar_lea.vmem [#allocation2], %s5074_s17 }
0x198f   : > { %s4990_s13 = sshll.u32 %s293_s23, 4  ;;  %s7346_s13 = int_to_ptr.vmem [resolvable:$true] %s4990_s13 }
0x1991   : > { %4353 = vrot.lane.b32.xlu0 %v7055_v62, %s7417_s8 }
0x1995   : > { %6293 = vrot.lane.b32.xlu0 %v6974_v25, %s7418_s9 }
0x1999   : > { %4588 = vrot.lane.b32.xlu0 %v7045_v57, %s7417_s8 }
0x19f8   : > { %v4082_v44 = vpop.xlane.xlu0 %4081 }
0x19fc   : > { %v3927_v18 = vpop.permute.xlu0 %3926 }
0x19fd   : > { %v3996_v45 = vadd.f32 %v3995_v42, %v3927_v18 }
0x19ff   : > { %5754 = vmatpush3.msra.mxu1 %v3996_v45 }
0x1a00   : > { %5991 = vmatprep.subr.bf16.mxu1 %v6427_v3  ;;  %v4180_v62 = vpop.permute.xlu0 %4179 }
0x1a01   : > { %5759 = vmatpush3.msra.mxu0 %v4180_v62 }
0x1a02   : > { %5997 = vmatprep.subr.bf16.mxu0 %v6427_v3 }
0x1a04   : > { %v6274_v38 = vpop.permute.xlu0 %6273 }
0x1a05   : > { %v6276_v60 = vunpack.i.h.bf16 %v6274_v38  ;;  %v6275_v23 = vunpack.i.l.bf16 %v6274_v38 }
0x1a07   : > { %v5998_v37 = vpack.c.bf16 %v6276_v60, %v6275_v23  ;;  %v5165_v23 = vld [vmem:[%s7391_s4 + $0x58] sm:$0xff] }
0x1a08   : > { %v6284_v61 = vpop.permute.xlu0 %6283 }
0x1a09   : > { %v6286_v14 = vunpack.i.h.bf16 %v6284_v61  ;;  %v6285_v17 = vunpack.i.l.bf16 %v6284_v61 }
0x1a0b   : > { %v6001_v40 = vpack.c.bf16 %v6286_v14, %v6285_v17 }
0x1a0c   : > { %v7220_v4 = vpop.permute.xlu0 %4353 }
0x1a10   : > { %v6294_v10 = vpop.permute.xlu0 %6293 }
0x1a11   : > { %v6296_v30 = vunpack.i.h.bf16 %v6294_v10 }
0x1a14   : > { %v4589_v42 = vpop.permute.xlu0 %4588 }
0x1a3b   : > { %v4071_v26 = vpop.f32.mrb[40].mxu1 }
0x1a3c   : > { %v4075_v46 = vsel %vm762_vm4, -1e+30, %v4071_v26  ;;  %v5752_v47 = vpop.f32.mrb[41].mxu1 }
0x1a3d   : > { %v4083_v48 = vsel %vm680_vm3, %v4075_v46, -inf }
0x1a3e   : > { %4084 = vmax.xlane.f32.xlu1 %v4083_v48 }
0x1acb   : > { %v4085_v49 = vpop.xlane.xlu1 %4084 }
0x1acc   : > { %v4086_v57 = vmax.f32 %v4085_v49, %v4082_v44 }
0x1ace   : > { %v4087_v50 = vsub.f32 %v4075_v46, %v4086_v57  ;;  %v4090_v54 = vsub.f32 %v4082_v44, %v4086_v57 }
0x1ad0   : > { %v4088_v51 = vmul.f32 1.442695, %v4087_v50  ;;  %v4091_v19 = vmul.f32 1.442695, %v4090_v54 }
0x1ad2   : > { %6347 = vpow2.f32 %v4088_v51 }
0x1ad3   : > { %6349 = vpow2.f32 %v4091_v19 }
0x1adc   : > { %v6348_v53 = vpop.eup %6347 }
0x1add   : > { %5756 = vmatmul.mubr.msk.f32.vlgmr.msra.gmra.mrb[42].mxu1 %vm680_vm3, %v6348_v53  ;;  %v4093_v58 = vsel %vm680_vm3, %v6348_v53, 0.0  ;;  %v6350_v59 = vpop.eup %6349 }
0x1ade   : > { %4094 = vadd.xlane.f32.xlu1 %v4093_v58  ;;  %5771 = vmatprep.mubr.msk.f32.mxu1 %vm6428_vm0, %v6429_v6  ;;  %v4098_v21 = vmul.f32 %v6350_v59, %v7108_v8 }
0x1aef   : > { %4100 = vrot.lane.b32.xlu1 %v4098_v21, %s7414_s16  ;;  %s6367_s16 = sshll.u32 %s6443_s28, 4  ;;  %s6368_s16 = int_to_ptr.vmem [resolvable:$false] %s6367_s16 }
0x1af0   : > { %s6369_s19 = scalar_lea.vmem %s6368_s16, 256  ;;  %p6370_p0 = scmp.lt.s32.totalorder %s7346_s13, %s6368_s16 }
0x1af3   : > { %6278 = vrot.lane.b32.xlu1 %v6974_v25, %s7417_s8 }
0x1af7   : > { %6288 = vrot.lane.b32.xlu1 %v6992_v29, %s7417_s8 }
0x1afb   : > { %4268 = vrot.lane.b32.xlu1 %v7035_v55, %s7417_s8  ;;  %v6295_v55 = vunpack.i.l.bf16 %v6294_v10 }
0x1afd   : > { %v6004_v31 = vpack.c.bf16 %v6296_v30, %v6295_v55 }
0x1aff   : > { %6298 = vrot.lane.b32.xlu1 %v6992_v29, %s7418_s9 }
0x1b6b   : > { %v4095_v0 = vpop.xlane.xlu1 %4094 }
0x1b6c   : > { %v4096_v11 = vadd.f32 %v6350_v59, %v4095_v0 }
0x1b6e   : > { %6351 = vrcp.f32 %v4096_v11 }
0x1b6f   : > { %v4101_v2 = vpop.permute.xlu1 %4100 }
0x1b73   : > { %v6279_v5 = vpop.permute.xlu1 %6278 }
0x1b74   : > { %v6281_v7 = vunpack.i.h.bf16 %v6279_v5  ;;  %v6280_v9 = vunpack.i.l.bf16 %v6279_v5 }
0x1b76   : > { %v5992_v25 = vpack.c.bf16 %v6281_v7, %v6280_v9 }
0x1b77   : > { %v6289_v12 = vpop.permute.xlu1 %6288 }
0x1b78   : > { %v6291_v15 = vunpack.i.h.bf16 %v6289_v12  ;;  %v6290_v13 = vunpack.i.l.bf16 %v6289_v12  ;;  %5993 = vmatpush3.bf16.msra.mxu1 %v5992_v25  ;;  %v6352_v36 = vpop.eup %6351 }
0x1b79   : > { %5994 = vmatprep.subr.bf16.mxu1 %v6427_v3 }
0x1b7a   : > { %v5995_v29 = vpack.c.bf16 %v6291_v15, %v6290_v13 }
0x1b7b   : > { %v4269_v1 = vpop.permute.xlu1 %4268 }
0x1b7c   : > { %5996 = vmatpush3.bf16.msra.mxu1 %v5995_v29 }
0x1b7d   : > { %6003 = vmatprep.subr.bf16.mxu1 %v6427_v3 }
0x1b7f   : > { %v6299_v32 = vpop.permute.xlu1 %6298  ;;  %5772 = vmatmul.mubr.msk.f32.vlgmr.msra.gmra.mrb[44].mxu1 %vm318_vm2, %v7016_v52 }
0x1b80   : > { %v6301_v33 = vunpack.i.h.bf16 %v6299_v32  ;;  %v6300_v22 = vunpack.i.l.bf16 %v6299_v32  ;;  %6005 = vmatpush3.bf16.msra.mxu1 %v6004_v31  ;;  %5793 = vmatprep.mubr.msk.f32.mxu1 %vm6428_vm0, %v6429_v6 }
0x1b81   : > { %6006 = vmatprep.subr.bf16.mxu1 %v6427_v3 }
0x1b82   : > { %v6007_v34 = vpack.c.bf16 %v6301_v33, %v6300_v22 }
0x1b84   : > { %6008 = vmatpush3.bf16.msra.mxu1 %v6007_v34 }
0x1b85   : > { %5806 = vmatprep.subr.mxu1 %v6429_v6 }
0x1b87   : > { %5794 = vmatmul.mubr.msk.f32.vlgmr.msra.gmra.mrb[46].mxu1 %vm318_vm2, %v7016_v52 }
0x1b88   : > { %5808 = vmatprep.mubr.msk.f32.mxu1 %vm6428_vm0, %v6429_v6 }
0x1bb0   : > { %v4172_v24 = vpop.f32.mrb[42].mxu1 }
0x1bb1   : > { %v4173_v20 = vadd.f32 %v4172_v24, %v4101_v2  ;;  %v5757_v63 = vpop.f32.mrb[43].mxu1 }
0x1bb2   : > { %v5168_v63 = vld [vmem:[%s7391_s4 + $0x88] sm:$0xff] }
0x1bb3   : > { %v4176_v39 = vmul.f32 %v6352_v36, %v4173_v20  ;;  %v5167_v20 = vld [vmem:[%s7391_s4 + $0x78] sm:$0xff] }
0x1bb4   : > { %v6013_v36 = vpack.c.bf16 %v5168_v63, %v5167_v20 }
0x1bb5   : > { %5761 = vmatmul.mubr.msk.f32.vlgmr.msra.gmra.mrb[44].mxu0 %vm680_vm3, %v4176_v39 }
0x1bb6   : > { %5999 = vmatpush3.bf16.msra.mxu0 %v5998_v37  ;;  %5782 = vmatprep.mubr.msk.f32.mxu0 %vm6428_vm0, %v6429_v6 }
0x1bb7   : > { %6000 = vmatprep.subr.bf16.mxu0 %v6427_v3 }
0x1bba   : > { %6002 = vmatpush3.bf16.msra.mxu0 %v6001_v40  ;;  %v5163_v40 = vld [vmem:[%s7393_s6 + $0x14] ss:$0 sm:$0xff] }
0x1bbb   : > { %5796 = vmatprep.subr.mxu0 %v6429_v6 }
0x1bbd   : > { %5783 = vmatmul.mubr.msk.f32.vlgmr.msra.gmra.mrb[46].mxu0 %vm318_vm2, %v7016_v52 }
0x1bbe   : > { %5798 = vmatprep.mubr.msk.f32.mxu0 %vm6428_vm0, %v6429_v6 }
0x1c52   : > { %v4337_v41 = vpop.f32.mrb[44].mxu1 }
0x1c53   : > { %v4338_v43 = vadd.f32 %v4337_v41, %v4269_v1  ;;  %v5773_v44 = vpop.f32.mrb[45].mxu1  ;;  %v5162_v1 = vld [vmem:[%s7393_s6 + $0x13] ss:$0 sm:$0xff] }
0x1c55   : > { %v4591_v18 = vmul.f32 %v4589_v42, %v4338_v43  ;;  %v5164_v42 = vld [vmem:[%s7393_s6 + $0x15] ss:$0 sm:$0xff] }
0x1c57   : > { %v4592_v45 = vsel %vm680_vm3, %v4591_v18, 0.0  ;;  %v5171_v18 = vld [vmem:[%s7392_s5 + $0x40] sm:$0xff] }
0x1c58   : > { %4593 = vadd.xlane.f32.xlu1 %v4592_v45  ;;  %v5172_v45 = vld [vmem:[%s7392_s5 + $0x48] sm:$0xff] }
0x1c5a   : > { %v4507_v26 = vpop.f32.mrb[46].mxu1 }
0x1c5b   : > { %v5795_v46 = vpop.f32.mrb[47].mxu1 }
0x1c5c   : > { %v5173_v46 = vld [vmem:[%s7392_s5 + $0x50] sm:$0xff] }
0x1c88   : > { %v4251_v47 = vpop.f32.mrb[44].mxu0 }
0x1c89   : > { %v4255_v48 = vadd.f32 %v4251_v47, %v7181_v35  ;;  %v5762_v62 = vpop.f32.mrb[45].mxu0  ;;  %v5174_v47 = vld [vmem:[%s7392_s5 + $0x58] sm:$0xff] }
0x1c8a   : > { %v5175_v62 = vld [vmem:[%s7392_s5 + $0x60] sm:$0xff] }
0x1c90   : > { %v4422_v49 = vpop.f32.mrb[46].mxu0 }
0x1c91   : > { %v4423_v52 = vadd.f32 %v4422_v49, %v7220_v4  ;;  %v5784_v57 = vpop.f32.mrb[47].mxu0  ;;  %v5176_v49 = vld [vmem:[%s7392_s5 + $0x68] sm:$0xff] }
0x1c92   : > { %v5177_v57 = vld [vmem:[%s7392_s5 + $0x70] sm:$0xff] }
0x1c93   : > { %5797 = vmatpush3.xpose.msk.msra.mxu0 %vm680_vm3, %v4423_v52  ;;  %v6022_v52 = vpack.c.bf16 %v5176_v49, %v5175_v62 }
0x1c94   : > { %5801 = vmatprep.subr.mxu0 %v6429_v6 }
0x1c96   : > { %5799 = vmatmul.mubr.msk.f32.vlgmr.msra.gmra.mrb[48].mxu0 %vm680_vm3, %v4338_v43 }
0x1c97   : > { %5803 = vmatprep.mubr.msk.f32.mxu0 %vm6428_vm0, %v6429_v6 }
0x1ce5   : > { %v4594_v53 = vpop.xlane.xlu1 %4593 }
0x1d69   : > { %v4583_v50 = vpop.f32.mrb[48].mxu0 }
0x1d6a   : > { %v4587_v51 = vsel %vm762_vm4, -1e+30, %v4583_v50  ;;  %v5800_v54 = vpop.f32.mrb[49].mxu0  ;;  %v5178_v50 = vld [vmem:[%s7392_s5 + $0x78] sm:$0xff] }
0x1d6b   : > { %v4595_v35 = vsel %vm680_vm3, %v4587_v51, -inf  ;;  %v305_v54 = vld [vmem:[%s301_s29] sm:$0xff]  ;;  %s6363_s29 = scalar_lea.vmem %s7346_s13, 128 }
0x1d6c   : > { %4596 = vmax.xlane.f32.xlu0 %v4595_v35  ;;  %p6364_p11 = scmp.ne.s32.totalorder %s7346_s13, %s6363_s29  ;;  %p6371_p1 = scmp.lt.s32.totalorder %s6369_s19, %s6363_s29 }
0x1d6e   : > { %p6365_p12 = pnand %p6364_p11, %p6522_p5  ;;  %p6372_p2 = por %p6371_p1, %p6370_p0 }
0x1d70   : > { %p6366_p13 = pneg %p6365_p12 }
0x1d72   : > { %p6373_p3 = pnand %p6372_p2, %p6366_p13 }
0x1d82   : > { %4438 = vrot.lane.b32.xlu0 %v7040_v56, %s7417_s8 }
0x1d86   : > { %4689 = vrot.lane.b32.xlu0 %v6986_v27, %s7412_s18  ;;  %s4977_s18 = scalar_lea.sflag [#allocation3], %s291_s21 }
0x1df9   : > { %v4597_v19 = vpop.xlane.xlu0 %4596 }
0x1dfa   : > { %v4598_v58 = vmax.f32 %v4597_v19, %v4594_v53 }
0x1dfc   : > { %v4599_v59 = vsub.f32 %v4587_v51, %v4598_v58  ;;  %v4602_v28 = vsub.f32 %v4594_v53, %v4598_v58  ;;  %v6025_v51 = vpack.c.bf16 %v5178_v50, %v5177_v57 }
0x1dfd   : > { %v4439_v21 = vpop.permute.xlu0 %4438 }
0x1dfe   : > { %v4600_v38 = vmul.f32 1.442695, %v4599_v59  ;;  %v4508_v61 = vadd.f32 %v4507_v26, %v4439_v21  ;;  %v4603_v2 = vmul.f32 1.442695, %v4602_v28  ;;  %v6016_v26 = vpack.c.bf16 %v5172_v45, %v5171_v18  ;;  %v5179_v28 = vld [vmem:[%s7393_s6 + $0x16] ss:$0 sm:$0xff] }
0x1e00   : > { %6353 = vpow2.f32 %v4600_v38  ;;  %5802 = vmatpush3.msra.mxu0 %v4508_v61 }
0x1e01   : > { %6009 = vmatprep.subr.bf16.mxu0 %v6427_v3  ;;  %6355 = vpow2.f32 %v4603_v2  ;;  %v4690_v5 = vpop.permute.xlu0 %4689 }
0x1e02   : > { %5807 = vmatpush3.msra.mxu1 %v4690_v5 }
0x1e03   : > { %6015 = vmatprep.subr.bf16.mxu1 %v6427_v3 }
0x1e0a   : > { %v6354_v0 = vpop.eup %6353 }
0x1e0b   : > { %5804 = vmatmul.mubr.msk.f32.vlgmr.msra.gmra.mrb[50].mxu0 %vm680_vm3, %v6354_v0  ;;  %v4605_v56 = vsel %vm680_vm3, %v6354_v0, 0.0  ;;  %v6356_v27 = vpop.eup %6355 }
0x1e0c   : > { %4606 = vadd.xlane.f32.xlu1 %v4605_v56  ;;  %5819 = vmatprep.mubr.msk.f32.mxu0 %vm6428_vm0, %v6429_v6  ;;  %v4610_v4 = vmul.f32 %v6356_v27, %v7108_v8 }
0x1e1d   : > { %4612 = vrot.lane.b32.xlu1 %v4610_v4, %s7417_s8 }
0x1e99   : > { %v4607_v7 = vpop.xlane.xlu1 %4606 }
0x1e9a   : > { %v4608_v9 = vadd.f32 %v6356_v27, %v4607_v7 }
0x1e9c   : > { %6357 = vrcp.f32 %v4608_v9 }
0x1e9d   : > { %v4613_v10 = vpop.permute.xlu1 %4612 }
0x1ea6   : > { %v6358_v13 = vpop.eup %6357 }
0x1ede   : > { %v4684_v25 = vpop.f32.mrb[50].mxu0 }
0x1edf   : > { %v4685_v12 = vadd.f32 %v4684_v25, %v4613_v10  ;;  %v5805_v15 = vpop.f32.mrb[51].mxu0 }
0x1ee1   : > { %v4688_v30 = vmul.f32 %v6358_v13, %v4685_v12 }
0x1ee3   : > { %5809 = vmatmul.mubr.msk.f32.vlgmr.msra.gmra.mrb[48].mxu1 %vm680_vm3, %v4688_v30 }
0x1ee4   : > { %5838 = vmatprep.mubr.msk.f32.mxu1 %vm6428_vm0, %v6429_v6  ;;  %6017 = vmatpush3.bf16.msra.mxu1 %v6016_v26 }
0x1ee5   : > { %6018 = vmatprep.subr.bf16.mxu1 %v6427_v3 }
0x1fb6   : > { %v4761_v8 = vpop.f32.mrb[48].mxu1 }
0x1fb7   : > { %v4765_v55 = vadd.f32 %v4761_v8, %v4255_v48  ;;  %v5810_v29 = vpop.f32.mrb[49].mxu1  ;;  %v6019_v48 = vpack.c.bf16 %v5174_v47, %v5173_v46 }
0x1fb9   : > { %v4766_v31 = vadd.f32 %v4765_v55, %v6958_v16  ;;  %v5166_v16 = vld [vmem:[%s7391_s4 + $0x68] sm:$0xff]  ;;  %6020 = vmatpush3.bf16.msra.mxu1 %v6019_v48 }
0x1fba   : > { %v6010_v24 = vpack.c.bf16 %v5166_v16, %v5165_v23  ;;  %6021 = vmatprep.subr.bf16.mxu1 %v6427_v3 }
0x1fbb   : > { %v7273_v32 = vadd.f32 %v5162_v1, %v4766_v31 }
0x1fbc   : > { %6011 = vmatpush3.bf16.msra.mxu0 %v6010_v24 }
0x1fbd   : > { %v4775_v33 = vsel %vm318_vm2, %v7273_v32, 0.0  ;;  %6012 = vmatprep.subr.bf16.mxu0 %v6427_v3  ;;  %6023 = vmatpush3.bf16.msra.mxu1 %v6022_v52 }
0x1fbe   : > { %4776 = vadd.xlane.f32.xlu1 %v4775_v33  ;;  %6024 = vmatprep.subr.bf16.mxu1 %v6427_v3  ;;  %v5169_v3 = vld [vmem:[%s7391_s4 + $0x98] ss:$0 sm:$0xff] }
0x1fc0   : > { %6014 = vmatpush3.bf16.msra.mxu0 %v6013_v36 }
0x1fc1   : > { %6026 = vmatpush3.bf16.msra.mxu1 %v6025_v51 }
0x204b   : > { %v4777_v22 = vpop.xlane.xlu1 %4776 }
0x204c   : > { %v4778_v34 = vmul.f32 0.03125, %v4777_v22 }
0x204e   : > { %v4779_v11 = vsub.f32 %v7273_v32, %v4778_v34 }
0x2050   : > { %v4780_v6 = vmul.f32 %v4779_v11, %v4779_v11 }
0x2052   : > { %v4781_v60 = vsel %vm318_vm2, %v4780_v6, 0.0 }
0x2053   : > { %4782 = vadd.xlane.f32.xlu0 %v4781_v60 }
0x2069   : > { %4971 = vperm.xlu0 %6302, %v305_v54  }
0x20e0   : > { %v4783_v37 = vpop.xlane.xlu0 %4782 }
0x20e1   : > { %v4784_v14 = vmul.f32 0.03125, %v4783_v37 }
0x20e3   : > { %v4785_v17 = vadd.f32 1e-12, %v4784_v14 }
0x20e5   : > { %6359 = vrsqrt.f32 %v4785_v17 }
0x20e8   : > { %v4972_v27 = vpop.permute.xlu0 %4971 }
0x20ef   : > { %v6360_v39 = vpop.eup %6359 }
0x20f0   : > { %v4787_v41 = vmul.f32 %v6360_v39, %v4779_v11 }
0x20f2   : > { %v4792_v43 = vmul.f32 %v5163_v40, %v4787_v41 }
0x20f4   : > { %v4797_v44 = vadd.f32 %v5164_v42, %v4792_v43 }
0x20f6   : > { %5820 = vmatmul.mubr.msk.f32.vlgmr.msra.gmra.mrb[52].mxu0 %vm318_vm2, %v4797_v44 }
0x21c9   : > { %v4872_v35 = vpop.f32.mrb[52].mxu0 }
0x21ca   : > { %v4873_v53 = vadd.f32 %v5169_v3, %v4872_v35  ;;  %v5821_v19 = vpop.f32.mrb[53].mxu0 }
0x21cc   : > { %v4877_v58 = vmul.f32 0.70710677, %v4873_v53  ;;  %v4876_v21 = vmul.f32 0.5, %v4873_v53 }
0x21ce   : > { %6361 = verf.f32 %v4877_v58 }
0x21d8   : > { %v6362_v59 = vpop.eup %6361 }
0x21d9   : > { %v4879_v38 = vadd.f32 1.0, %v6362_v59 }
0x21db   : > { %v4880_v61 = vmul.f32 %v4879_v38, %v4876_v21 }
0x21dd   : > { %5839 = vmatmul.mubr.msk.f32.vlgmr.msra.gmra.mrb[50].mxu1 %vm2609_vm5, %v4880_v61 }
0x22b0   : > { %v4964_v0 = vpop.f32.mrb[50].mxu1 }
0x22b1   : > { %v4965_v2 = vadd.f32 %v5179_v28, %v4964_v0  ;;  %v5840_v56 = vpop.f32.mrb[51].mxu1 }
0x22b3   : > { %v4968_v4 = vadd.f32 %v4965_v2, %v7273_v32 }
0x22b5   : > { %v4974_v5 = vmul.f32 %v4972_v27, %v4968_v4 }
0x22b7   : > { %4975 = vst.msk [vmem:[%s293_s23] sm:$0xff] %vm318_vm2, %v4974_v5 }
0x22b8   : > { %6376 = shalt.err (!%p6373_p3)
}
0x22b9   : > { %s6377_s21 = scalar_lea.hbm %s7344_s20, 128  ;;  %s6381_s9 = scalar_lea.hbm %s7394_s7, 256 }
0x22ba   : > { %p6378_p4 = scmp.ne.s32.totalorder %s7344_s20, %s6377_s21  ;;  %p6382_p9 = scmp.lt.u32.totalorder %s7344_s20, %s7394_s7 }
0x22bb   : > { %p6383_p10 = scmp.lt.u32.totalorder %s6381_s9, %s6377_s21  ;;  %p6385_p12 = scmp.lt.u32.totalorder %s6377_s21, %s7344_s20 }
0x22bc   : > { %p6379_p7 = pnand %p6378_p4, %p6522_p5 }
0x22bd   : > { %p6384_p11 = por %p6383_p10, %p6382_p9 }
0x22be   : > { %p6380_p8 = pneg %p6379_p7 }
0x22bf   : > { %p6386_p13 = por %p6385_p12, %p6384_p11 }
0x22c1   : > { %p6387_p0 = pnand %p6386_p13, %p6380_p8 }
0x22c3   : > { %6390 = shalt.err (!%p6387_p0)
}
0x22c4   : > { %6027 = dma.vmem_to_hbm [thread:$0]  (%p6522_p5), %s7346_s13, 128, %s7344_s20, %s4977_s18  }
0x22c5 PF: > { %p6033_p1 = scmp.ge.s32.totalorder %s6425_s27, 2  ;;  %s5002_s14 = sand.u32 1, %s6413_s24  }
0x22c6   : > { %s5003_s15 = scalar_lea.sflag [#allocation3], %s5002_s14 }
0x22c7   : > { %p6030_p2 = pnand %p6033_p1, %p6526_p6 }
0x22c9   : > { %6408 = dma.done.wait (!%p6030_p2), %s5003_s15, 128  }
0x22ca   : > { %6410 = vsyncadd (!%p6030_p2), %s5003_s15, 4294967168  ;;  %p17_p3 = scmp.ge.s32.totalorder %s6509_s30, 4   ;;  %s7420_s24 = smov %s6417_s25 }
0x22cb   : > { %s7421_s25 = smov %s6421_s26  ;;  %s7422_s26 = smov %s6520_s10 }
0x22cc   : > { %s7423_s27 = smov %s6509_s30  ;;  %19 = sbr.rel (!%p17_p3) target bundleno = 3 (0x3), region = 91 }
0x22d3   :  { %5008 = vsyncpa [#allocation3], 1 }
0x22d4   :  { %5010 = vsyncpa [#allocation3 + $0x1], 1 }

</bundles_post_ra>
